<compile_context>
chip_gen: v6e
topology: v6e:2x2x1
jax: 0.10.0
libtpu: 0.0.40
codegen_flags: <defaults>
</compile_context>

<pallas_src>
import numpy as np

import jax
import jax.numpy as jnp
from jax.experimental import pallas as pl
from jax.experimental.pallas import tpu as pltpu


# =============================================================================
# Fused LeNet5 forward kernel (one batch tile per grid step)
# =============================================================================
def _lenet5_kernel(x_ref, w1_ref, b1_ref, w2_ref, b2_ref,
                   wf1_ref, bf1_ref, wf2_ref, bf2_ref, wc_ref, bc_ref,
                   o_ref, z1e_s, z1o_s, z2_s):
    tb = x_ref.shape[0]
    f32 = jnp.float32
    bf16 = jnp.bfloat16

    # Rows 8..9 of the z1 scratch are read by the +1/+2 row-offset slices below
    # but never written per step; zero them so stale VMEM can never leak in.
    zeros2 = jnp.zeros((tb, 2, 128), f32)
    z1e_s[:, 8:10, :] = zeros2
    z1o_s[:, 8:10, :] = zeros2

    # ---------------- conv1 (5x5, pad 2) + ReLU + 2x2 max-pool ----------------
    # x_ref (tb, 8, 256) bf16 is the ready-made banded-matmul LHS:
    #   row k, lane o*128 + p*32 + w  ==  padded 32x32 image row 4*(k+o)+p, col w.
    # w1 columns: r*256 + par*128 + (wh*6 + c); conv row ho = 4k+r, col wo = 2wh+par.
    lhs1 = x_ref[...].reshape(tb * 8, 256)
    y1 = jnp.dot(lhs1, w1_ref[...], preferred_element_type=f32) + b1_ref[...]
    # H-pool: rows (4k, 4k+1) -> pooled row 2k; rows (4k+2, 4k+3) -> pooled row 2k+1.
    t_e = jnp.maximum(y1[:, 0:256], y1[:, 256:512])
    t_o = jnp.maximum(y1[:, 512:768], y1[:, 768:1024])
    # W-pool over the wo-parity halves, then ReLU (relu commutes with max).
    z1e = jnp.maximum(jnp.maximum(t_e[:, 0:128], t_e[:, 128:256]), 0.0)
    z1o = jnp.maximum(jnp.maximum(t_o[:, 0:128], t_o[:, 128:256]), 0.0)
    z1e_s[:, 0:8, :] = z1e.reshape(tb, 8, 128)   # pooled row 2k   ; lane = wh*6 + c
    z1o_s[:, 0:8, :] = z1o.reshape(tb, 8, 128)   # pooled row 2k+1 ; lane = wh*6 + c

    # ---------------- conv2 (5x5, valid) + ReLU + 2x2 max-pool ----------------
    # LHS rows (b, m): conv2 output row 2m (even pass) / 2m+1 (odd pass).
    # LHS column block i = pooled-conv1 row (2m+s)+i, lanes wh*6 + cin.
    a = z1e_s[:, 0:8, :].astype(bf16)
    b = z1o_s[:, 0:8, :].astype(bf16)
    c = z1e_s[:, 1:9, :].astype(bf16)
    d = z1o_s[:, 1:9, :].astype(bf16)
    e = z1e_s[:, 2:10, :].astype(bf16)
    f = z1o_s[:, 2:10, :].astype(bf16)
    lhs2e = jnp.concatenate([a, b, c, d, e], axis=-1).reshape(tb * 8, 640)
    lhs2o = jnp.concatenate([b, c, d, e, f], axis=-1).reshape(tb * 8, 640)
    # w2 columns: par*128 + (w5*16 + cout); conv2 col wo2 = 2*w5 + par.
    y2e = jnp.dot(lhs2e, w2_ref[...], preferred_element_type=f32) + b2_ref[...]
    y2o = jnp.dot(lhs2o, w2_ref[...], preferred_element_type=f32) + b2_ref[...]
    y2 = jnp.maximum(y2e, y2o)                                       # H-pool
    z2 = jnp.maximum(jnp.maximum(y2[:, 0:128], y2[:, 128:256]), 0.0)  # W-pool + ReLU
    z2_s[...] = z2.reshape(tb, 8, 128)   # rows m=0..4 valid; lanes 0..79 valid

    # ---------------- fc1 (5 partial matmuls) + fc2 + classifier --------------
    acc = jnp.dot(z2_s[:, 0, :].astype(bf16), wf1_ref[0], preferred_element_type=f32)
    for h in range(1, 5):
        acc = acc + jnp.dot(z2_s[:, h, :].astype(bf16), wf1_ref[h],
                            preferred_element_type=f32)
    h1 = jnp.maximum(acc + bf1_ref[...], 0.0)
    h2 = jnp.dot(h1.astype(bf16), wf2_ref[...], preferred_element_type=f32) + bf2_ref[...]
    h2 = jnp.maximum(h2, 0.0)
    logits = jnp.dot(h2.astype(bf16), wc_ref[...], preferred_element_type=f32) + bc_ref[...]
    o_ref[...] = logits.astype(o_ref.dtype)


# =============================================================================
# Trace-time weight preparation (tiny arrays; pure XLA glue outside the kernel)
# =============================================================================
def _conv1_rhs(conv1_w, conv1_b):
    """Banded matmul form of Conv2d(1, 6, 5, pad=2).

    Rows:    o*128 + p*32 + w_in            (o = extra-row offset, p = row%4)  -> 256
    Columns: r*256 + par*128 + wh*6 + c     (ho = 4k+r, wo = 2*wh+par)         -> 1024
    """
    f32 = jnp.float32
    w = conv1_w[:, 0].astype(f32)                                   # (c=6, i, j)
    i_ = np.arange(5); r_ = np.arange(4); o_ = np.arange(2); p_ = np.arange(4)
    row_sel = (r_[None, :, None, None] + i_[:, None, None, None]
               == 4 * o_[None, None, :, None] + p_[None, None, None, :]
               ).astype(np.float32)                                 # (i, r, o, p)
    v_ = np.arange(32); x_ = np.arange(28); j_ = np.arange(5)
    col_sel = (v_[None, :, None] - x_[None, None, :]
               == j_[:, None, None]).astype(np.float32)             # (j, v=w_in, x=wo)
    rhs = jnp.einsum('irop,jvx,cij->opvrxc', row_sel, col_sel, w)   # (2,4,32,4,28,6)
    rhs = rhs.reshape(2, 4, 32, 4, 14, 2, 6).transpose(0, 1, 2, 3, 5, 4, 6)
    rhs = rhs.reshape(256, 4, 2, 84)
    rhs = jnp.pad(rhs, ((0, 0), (0, 0), (0, 0), (0, 44))).reshape(256, 1024)
    bias = jnp.pad(jnp.tile(conv1_b.astype(f32), 14), (0, 44))      # (128,)
    bias = jnp.tile(bias, 8)[None, :]                               # (1, 1024)
    return rhs, bias


def _conv2_rhs(conv2_w, conv2_b):
    """Banded matmul form of Conv2d(6, 16, 5).

    Rows:    i*128 + wh*6 + cin             (i = kernel row)                   -> 640
    Columns: par*128 + w5*16 + cout         (wo2 = 2*w5 + par)                 -> 256
    """
    f32 = jnp.float32
    w = conv2_w.astype(f32)                                         # (n=16, c=6, i, j)
    v_ = np.arange(14); x_ = np.arange(10); j_ = np.arange(5)
    col_sel = (v_[None, :, None] - x_[None, None, :]
               == j_[:, None, None]).astype(np.float32)             # (j, v=wh, x=wo2)
    rhs = jnp.einsum('jvx,ncij->ivcxn', col_sel, w)                 # (5,14,6,10,16)
    rhs = rhs.reshape(5, 14, 6, 5, 2, 16).transpose(0, 1, 2, 4, 3, 5)
    rhs = rhs.reshape(5, 84, 2, 80)
    rhs = jnp.pad(rhs, ((0, 0), (0, 44), (0, 0), (0, 48))).reshape(640, 256)
    bias = jnp.pad(jnp.tile(conv2_b.astype(f32), 5), (0, 48))       # (128,)
    bias = jnp.tile(bias, 2)[None, :]                               # (1, 256)
    return rhs, bias


def _pick_block_b(batch):
    # Large enough to fill the MXU and amortize per-step overhead, small enough
    # for v7x's 64 MiB VMEM, and >= 2 grid steps (2 TensorCores on v7x) whenever
    # the batch allows.  TODO(synk): sweep per TPU generation / batch size.
    half = pl.cdiv(max(batch, 1), 2)
    return int(min(128, max(8, 8 * pl.cdiv(half, 8))))


# =============================================================================
# LeNet5 forward (matches the PyTorch module's semantics)
# =============================================================================
def lenet5_forward(x, params, *, block_b=None):
    B = x.shape[0]
    assert x.shape[1:] == (1, 28, 28), x.shape
    nc = params["cls_b"].shape[0]
    assert nc <= 128
    f32, bf16 = jnp.float32, jnp.bfloat16

    if block_b is None:
        block_b = _pick_block_b(B)

    # ---- weights: banded conv matrices + 128-lane-padded FC chain (trace time)
    w1, b1 = _conv1_rhs(params["conv1_w"], params["conv1_b"])
    w2, b2 = _conv2_rhs(params["conv2_w"], params["conv2_b"])
    # fc1 rows reordered from PyTorch's NCHW flatten (c*25 + h*5 + w) to the
    # kernel's (h, w*16 + c) layout, split per pooled row h.
    wf1 = params["fc1_w"].reshape(120, 16, 5, 5).transpose(2, 3, 1, 0).reshape(5, 80, 120)
    wf1 = jnp.pad(wf1, ((0, 0), (0, 48), (0, 8)))
    wf2 = jnp.pad(params["fc2_w"].T, ((0, 8), (0, 44)))
    wc = jnp.pad(params["cls_w"].T, ((0, 44), (0, 128 - nc)))
    w1, w2, wf1, wf2, wc = (a.astype(bf16) for a in (w1, w2, wf1, wf2, wc))
    bf1 = jnp.pad(params["fc1_b"], (0, 8)).astype(f32)[None, :]
    bf2 = jnp.pad(params["fc2_b"], (0, 44)).astype(f32)[None, :]
    bc = jnp.pad(params["cls_b"], (0, 128 - nc)).astype(f32)[None, :]

    # ---- input prep: pad to 32x32, pack row-phases into lanes, pre-build the
    #      conv1 banded LHS (lanes 0:128 = row k, lanes 128:256 = row k+1), bf16.
    xp = jnp.pad(x[:, 0].astype(f32), ((0, 0), (2, 2), (2, 2)))       # (B, 32, 32)
    x0 = xp.reshape(B, 8, 128)                       # row k, lane (img_row%4)*32 + col
    x1 = jnp.concatenate([x0[:, 1:, :], jnp.zeros((B, 1, 128), f32)], axis=1)
    x_in = jnp.concatenate([x0, x1], axis=-1).astype(bf16)            # (B, 8, 256)

    b_pad = pl.cdiv(B, block_b) * block_b
    if b_pad != B:
        x_in = jnp.pad(x_in, ((0, b_pad - B), (0, 0), (0, 0)))

    c2 = lambda t: (0, 0)
    c3 = lambda t: (0, 0, 0)

    out = pl.pallas_call(
        _lenet5_kernel,
        out_shape=jax.ShapeDtypeStruct((b_pad, 128), jnp.float32),
        grid_spec=pltpu.PrefetchScalarGridSpec(
            num_scalar_prefetch=0,
            grid=(b_pad // block_b,),
            in_specs=[
                pl.BlockSpec((block_b, 8, 256), lambda t: (t, 0, 0)),   # input / conv1 LHS
                pl.BlockSpec((256, 1024), c2),                          # conv1 RHS
                pl.BlockSpec((1, 1024), c2),                            # conv1 bias
                pl.BlockSpec((640, 256), c2),                           # conv2 RHS
                pl.BlockSpec((1, 256), c2),                             # conv2 bias
                pl.BlockSpec((5, 128, 128), c3),                        # fc1 (per pooled row)
                pl.BlockSpec((1, 128), c2),                             # fc1 bias
                pl.BlockSpec((128, 128), c2),                           # fc2
                pl.BlockSpec((1, 128), c2),                             # fc2 bias
                pl.BlockSpec((128, 128), c2),                           # classifier
                pl.BlockSpec((1, 128), c2),                             # classifier bias
            ],
            out_specs=pl.BlockSpec((block_b, 128), lambda t: (t, 0)),
            scratch_shapes=[
                pltpu.VMEM((block_b, 16, 128), jnp.float32),  # pooled conv1, even rows
                pltpu.VMEM((block_b, 16, 128), jnp.float32),  # pooled conv1, odd rows
                pltpu.VMEM((block_b, 8, 128), jnp.float32),   # pooled conv2
            ],
        ),
        compiler_params=pltpu.CompilerParams(
            dimension_semantics=("parallel",),
            vmem_limit_bytes=48 * 1024 * 1024,
        ),
    )(x_in, w1, b1, w2, b2, wf1, bf1, wf2, bf2, wc, bc)
    return out[:B, :nc]


# =============================================================================
# Pure-JAX reference (mirrors the PyTorch module exactly, f32)
# =============================================================================
def lenet5_reference(x, params):
    f32 = jnp.float32
    y = jax.lax.conv_general_dilated(
        x.astype(f32), params["conv1_w"].astype(f32), (1, 1), ((2, 2), (2, 2)),
        dimension_numbers=("NCHW", "OIHW", "NCHW"))
    y = jnp.maximum(y + params["conv1_b"][None, :, None, None], 0.0)
    y = jax.lax.reduce_window(y, -jnp.inf, jax.lax.max, (1, 1, 2, 2), (1, 1, 2, 2), "VALID")
    y = jax.lax.conv_general_dilated(
        y, params["conv2_w"].astype(f32), (1, 1), ((0, 0), (0, 0)),
        dimension_numbers=("NCHW", "OIHW", "NCHW"))
    y = jnp.maximum(y + params["conv2_b"][None, :, None, None], 0.0)
    y = jax.lax.reduce_window(y, -jnp.inf, jax.lax.max, (1, 1, 2, 2), (1, 1, 2, 2), "VALID")
    y = y.reshape(y.shape[0], -1)
    y = jnp.maximum(y @ params["fc1_w"].T + params["fc1_b"], 0.0)
    y = jnp.maximum(y @ params["fc2_w"].T + params["fc2_b"], 0.0)
    return y @ params["cls_w"].T + params["cls_b"]


def init_params(key, num_classes):
    ks = jax.random.split(key, 10)
    s = 0.05
    return {
        "conv1_w": s * jax.random.normal(ks[0], (6, 1, 5, 5), jnp.float32),
        "conv1_b": s * jax.random.normal(ks[1], (6,), jnp.float32),
        "conv2_w": s * jax.random.normal(ks[2], (16, 6, 5, 5), jnp.float32),
        "conv2_b": s * jax.random.normal(ks[3], (16,), jnp.float32),
        "fc1_w": s * jax.random.normal(ks[4], (120, 400), jnp.float32),   # (out, in)
        "fc1_b": s * jax.random.normal(ks[5], (120,), jnp.float32),
        "fc2_w": s * jax.random.normal(ks[6], (84, 120), jnp.float32),
        "fc2_b": s * jax.random.normal(ks[7], (84,), jnp.float32),
        "cls_w": s * jax.random.normal(ks[8], (num_classes, 84), jnp.float32),
        "cls_b": s * jax.random.normal(ks[9], (num_classes,), jnp.float32),
    }


if __name__ == "__main__":
    num_classes = 10
    key = jax.random.PRNGKey(0)
    k_x, k_p = jax.random.split(key)

    # LeNet5's 16*5*5 flatten fixes the input at 1x28x28.
    x = jax.random.normal(k_x, (2, 1, 28, 28), jnp.float32)
    params = init_params(k_p, num_classes)

    fwd = jax.jit(lenet5_forward)
    out = fwd(x, params)
    jax.block_until_ready(out)

    assert out.shape == (2, num_classes), out.shape
    assert out.dtype == jnp.float32

    ref = lenet5_reference(x, params)
    err = float(jnp.max(jnp.abs(out - ref)))
    assert np.allclose(np.asarray(out), np.asarray(ref), rtol=6e-2, atol=6e-3), (
        f"mismatch vs reference, max abs err = {err}")
    print("KERNEL_OK")
</pallas_src>

<mosaic_0001>
module attributes {stable_mosaic.version = 11 : i64} {
  func.func @_lenet5_kernel(%arg0: i32, %arg1: memref<8x8x256xbf16, #tpu.memory_space<vmem>>, %arg2: memref<256x1024xbf16, #tpu.memory_space<vmem>>, %arg3: memref<1x1024xf32, #tpu.memory_space<vmem>>, %arg4: memref<640x256xbf16, #tpu.memory_space<vmem>>, %arg5: memref<1x256xf32, #tpu.memory_space<vmem>>, %arg6: memref<5x128x128xbf16, #tpu.memory_space<vmem>>, %arg7: memref<1x128xf32, #tpu.memory_space<vmem>>, %arg8: memref<128x128xbf16, #tpu.memory_space<vmem>>, %arg9: memref<1x128xf32, #tpu.memory_space<vmem>>, %arg10: memref<128x128xbf16, #tpu.memory_space<vmem>>, %arg11: memref<1x128xf32, #tpu.memory_space<vmem>>, %arg12: memref<8x128xf32, #tpu.memory_space<vmem>>, %arg13: memref<8x16x128xf32, #tpu.memory_space<vmem>>, %arg14: memref<8x16x128xf32, #tpu.memory_space<vmem>>, %arg15: memref<8x8x128xf32, #tpu.memory_space<vmem>>) attributes {dimension_semantics = [#tpu.dimension_semantics<parallel>], iteration_bounds = array<i64: 1>, scalar_prefetch = 0 : i64, scratch_operands = 3 : i64, tpu.core_type = #tpu.core_type<tc>, window_params = [{transform_indices = @transform_0, window_bounds = array<i64: 8, 8, 256>}, {pipeline_mode = #tpu.pipeline_mode<synchronous>, transform_indices = @transform_1, window_bounds = array<i64: 256, 1024>}, {pipeline_mode = #tpu.pipeline_mode<synchronous>, transform_indices = @transform_2, window_bounds = array<i64: 1, 1024>}, {pipeline_mode = #tpu.pipeline_mode<synchronous>, transform_indices = @transform_3, window_bounds = array<i64: 640, 256>}, {pipeline_mode = #tpu.pipeline_mode<synchronous>, transform_indices = @transform_4, window_bounds = array<i64: 1, 256>}, {pipeline_mode = #tpu.pipeline_mode<synchronous>, transform_indices = @transform_5, window_bounds = array<i64: 5, 128, 128>}, {pipeline_mode = #tpu.pipeline_mode<synchronous>, transform_indices = @transform_6, window_bounds = array<i64: 1, 128>}, {pipeline_mode = #tpu.pipeline_mode<synchronous>, transform_indices = @transform_7, window_bounds = array<i64: 128, 128>}, {pipeline_mode = #tpu.pipeline_mode<synchronous>, transform_indices = @transform_8, window_bounds = array<i64: 1, 128>}, {pipeline_mode = #tpu.pipeline_mode<synchronous>, transform_indices = @transform_9, window_bounds = array<i64: 128, 128>}, {pipeline_mode = #tpu.pipeline_mode<synchronous>, transform_indices = @transform_10, window_bounds = array<i64: 1, 128>}, {transform_indices = @transform_11, window_bounds = array<i64: 8, 128>}]} {
    %cst = arith.constant 0.000000e+00 : f32
    %0 = vector.broadcast %cst : f32 to vector<8x2x128xf32>
    %c0 = arith.constant 0 : index
    %c8 = arith.constant 8 : index
    %c0_0 = arith.constant 0 : index
    %1 = vector.load %arg13[%c0, %c8, %c0_0] : memref<8x16x128xf32, #tpu.memory_space<vmem>>, vector<8x2x128xf32>
    tpu.vector_store %arg13[%c0, %c8, %c0_0], %0 {strides = array<i32>} : memref<8x16x128xf32, #tpu.memory_space<vmem>>, vector<8x2x128xf32>,
    %c0_1 = arith.constant 0 : index
    %c8_2 = arith.constant 8 : index
    %c0_3 = arith.constant 0 : index
    %2 = vector.load %arg14[%c0_1, %c8_2, %c0_3] : memref<8x16x128xf32, #tpu.memory_space<vmem>>, vector<8x2x128xf32>
    tpu.vector_store %arg14[%c0_1, %c8_2, %c0_3], %0 {strides = array<i32>} : memref<8x16x128xf32, #tpu.memory_space<vmem>>, vector<8x2x128xf32>,
    %c0_4 = arith.constant 0 : index
    %c0_5 = arith.constant 0 : index
    %c0_6 = arith.constant 0 : index
    %3 = vector.load %arg1[%c0_4, %c0_5, %c0_6] : memref<8x8x256xbf16, #tpu.memory_space<vmem>>, vector<8x8x256xbf16>
    %4 = vector.shape_cast %3 : vector<8x8x256xbf16> to vector<64x256xbf16>
    %c0_7 = arith.constant 0 : index
    %c0_8 = arith.constant 0 : index
    %5 = vector.load %arg2[%c0_7, %c0_8] : memref<256x1024xbf16, #tpu.memory_space<vmem>>, vector<256x1024xbf16>
    %cst_9 = arith.constant dense<0.000000e+00> : vector<64x1024xf32>
    %6 = tpu.matmul %4, %5, %cst_9 {dimension_numbers = #tpu.dot_dimension_numbers<[1], [0], [0], [1], [0, 0, 1, 1], [], []>} : vector<64x256xbf16>, vector<256x1024xbf16>, vector<64x1024xf32> -> vector<64x1024xf32>
    %c0_10 = arith.constant 0 : index
    %c0_11 = arith.constant 0 : index
    %7 = vector.load %arg3[%c0_10, %c0_11] : memref<1x1024xf32, #tpu.memory_space<vmem>>, vector<1x1024xf32>
    %8 = vector.broadcast %7 : vector<1x1024xf32> to vector<64x1024xf32>
    %9 = arith.addf %6, %8 : vector<64x1024xf32>
    %10 = vector.extract_strided_slice %9 {offsets = [0, 0], sizes = [64, 256], strides = [1, 1]} : vector<64x1024xf32> to vector<64x256xf32>
    %11 = vector.extract_strided_slice %9 {offsets = [0, 256], sizes = [64, 256], strides = [1, 1]} : vector<64x1024xf32> to vector<64x256xf32>
    %12 = arith.maximumf %10, %11 : vector<64x256xf32>
    %13 = vector.extract_strided_slice %9 {offsets = [0, 512], sizes = [64, 256], strides = [1, 1]} : vector<64x1024xf32> to vector<64x256xf32>
    %14 = vector.extract_strided_slice %9 {offsets = [0, 768], sizes = [64, 256], strides = [1, 1]} : vector<64x1024xf32> to vector<64x256xf32>
    %15 = arith.maximumf %13, %14 : vector<64x256xf32>
    %16 = vector.extract_strided_slice %12 {offsets = [0, 0], sizes = [64, 128], strides = [1, 1]} : vector<64x256xf32> to vector<64x128xf32>
    %17 = vector.extract_strided_slice %12 {offsets = [0, 128], sizes = [64, 128], strides = [1, 1]} : vector<64x256xf32> to vector<64x128xf32>
    %18 = arith.maximumf %16, %17 : vector<64x128xf32>
    %cst_12 = arith.constant 0.000000e+00 : f32
    %19 = vector.broadcast %cst_12 : f32 to vector<64x128xf32>
    %20 = arith.maximumf %18, %19 : vector<64x128xf32>
    %21 = vector.extract_strided_slice %15 {offsets = [0, 0], sizes = [64, 128], strides = [1, 1]} : vector<64x256xf32> to vector<64x128xf32>
    %22 = vector.extract_strided_slice %15 {offsets = [0, 128], sizes = [64, 128], strides = [1, 1]} : vector<64x256xf32> to vector<64x128xf32>
    %23 = arith.maximumf %21, %22 : vector<64x128xf32>
    %cst_13 = arith.constant 0.000000e+00 : f32
    %24 = vector.broadcast %cst_13 : f32 to vector<64x128xf32>
    %25 = arith.maximumf %23, %24 : vector<64x128xf32>
    %26 = vector.shape_cast %20 : vector<64x128xf32> to vector<8x8x128xf32>
    %c0_14 = arith.constant 0 : index
    %c0_15 = arith.constant 0 : index
    %c0_16 = arith.constant 0 : index
    %27 = vector.load %arg13[%c0_14, %c0_15, %c0_16] : memref<8x16x128xf32, #tpu.memory_space<vmem>>, vector<8x8x128xf32>
    tpu.vector_store %arg13[%c0_14, %c0_15, %c0_16], %26 {strides = array<i32>} : memref<8x16x128xf32, #tpu.memory_space<vmem>>, vector<8x8x128xf32>,
    %28 = vector.shape_cast %25 : vector<64x128xf32> to vector<8x8x128xf32>
    %c0_17 = arith.constant 0 : index
    %c0_18 = arith.constant 0 : index
    %c0_19 = arith.constant 0 : index
    %29 = vector.load %arg14[%c0_17, %c0_18, %c0_19] : memref<8x16x128xf32, #tpu.memory_space<vmem>>, vector<8x8x128xf32>
    tpu.vector_store %arg14[%c0_17, %c0_18, %c0_19], %28 {strides = array<i32>} : memref<8x16x128xf32, #tpu.memory_space<vmem>>, vector<8x8x128xf32>,
    %c0_20 = arith.constant 0 : index
    %c0_21 = arith.constant 0 : index
    %c0_22 = arith.constant 0 : index
    %30 = vector.load %arg13[%c0_20, %c0_21, %c0_22] : memref<8x16x128xf32, #tpu.memory_space<vmem>>, vector<8x8x128xf32>
    %31 = arith.truncf %30 : vector<8x8x128xf32> to vector<8x8x128xbf16>
    %c0_23 = arith.constant 0 : index
    %c0_24 = arith.constant 0 : index
    %c0_25 = arith.constant 0 : index
    %32 = vector.load %arg14[%c0_23, %c0_24, %c0_25] : memref<8x16x128xf32, #tpu.memory_space<vmem>>, vector<8x8x128xf32>
    %33 = arith.truncf %32 : vector<8x8x128xf32> to vector<8x8x128xbf16>
    %c0_26 = arith.constant 0 : index
    %c1 = arith.constant 1 : index
    %c0_27 = arith.constant 0 : index
    %34 = vector.load %arg13[%c0_26, %c1, %c0_27] : memref<8x16x128xf32, #tpu.memory_space<vmem>>, vector<8x8x128xf32>
    %35 = arith.truncf %34 : vector<8x8x128xf32> to vector<8x8x128xbf16>
    %c0_28 = arith.constant 0 : index
    %c1_29 = arith.constant 1 : index
    %c0_30 = arith.constant 0 : index
    %36 = vector.load %arg14[%c0_28, %c1_29, %c0_30] : memref<8x16x128xf32, #tpu.memory_space<vmem>>, vector<8x8x128xf32>
    %37 = arith.truncf %36 : vector<8x8x128xf32> to vector<8x8x128xbf16>
    %c0_31 = arith.constant 0 : index
    %c2 = arith.constant 2 : index
    %c0_32 = arith.constant 0 : index
    %38 = vector.load %arg13[%c0_31, %c2, %c0_32] : memref<8x16x128xf32, #tpu.memory_space<vmem>>, vector<8x8x128xf32>
    %39 = arith.truncf %38 : vector<8x8x128xf32> to vector<8x8x128xbf16>
    %c0_33 = arith.constant 0 : index
    %c2_34 = arith.constant 2 : index
    %c0_35 = arith.constant 0 : index
    %40 = vector.load %arg14[%c0_33, %c2_34, %c0_35] : memref<8x16x128xf32, #tpu.memory_space<vmem>>, vector<8x8x128xf32>
    %41 = arith.truncf %40 : vector<8x8x128xf32> to vector<8x8x128xbf16>
    %42 = tpu.concatenate %31, %33, %35, %37, %39 in 2 : vector<8x8x128xbf16>, vector<8x8x128xbf16>, vector<8x8x128xbf16>, vector<8x8x128xbf16>, vector<8x8x128xbf16> -> vector<8x8x640xbf16>
    %43 = vector.shape_cast %42 : vector<8x8x640xbf16> to vector<64x640xbf16>
    %44 = tpu.concatenate %33, %35, %37, %39, %41 in 2 : vector<8x8x128xbf16>, vector<8x8x128xbf16>, vector<8x8x128xbf16>, vector<8x8x128xbf16>, vector<8x8x128xbf16> -> vector<8x8x640xbf16>
    %45 = vector.shape_cast %44 : vector<8x8x640xbf16> to vector<64x640xbf16>
    %c0_36 = arith.constant 0 : index
    %c0_37 = arith.constant 0 : index
    %46 = vector.load %arg4[%c0_36, %c0_37] : memref<640x256xbf16, #tpu.memory_space<vmem>>, vector<640x256xbf16>
    %cst_38 = arith.constant dense<0.000000e+00> : vector<64x256xf32>
    %47 = tpu.matmul %43, %46, %cst_38 {dimension_numbers = #tpu.dot_dimension_numbers<[1], [0], [0], [1], [0, 0, 1, 1], [], []>} : vector<64x640xbf16>, vector<640x256xbf16>, vector<64x256xf32> -> vector<64x256xf32>
    %c0_39 = arith.constant 0 : index
    %c0_40 = arith.constant 0 : index
    %48 = vector.load %arg5[%c0_39, %c0_40] : memref<1x256xf32, #tpu.memory_space<vmem>>, vector<1x256xf32>
    %49 = vector.broadcast %48 : vector<1x256xf32> to vector<64x256xf32>
    %50 = arith.addf %47, %49 : vector<64x256xf32>
    %c0_41 = arith.constant 0 : index
    %c0_42 = arith.constant 0 : index
    %51 = vector.load %arg4[%c0_41, %c0_42] : memref<640x256xbf16, #tpu.memory_space<vmem>>, vector<640x256xbf16>
    %cst_43 = arith.constant dense<0.000000e+00> : vector<64x256xf32>
    %52 = tpu.matmul %45, %51, %cst_43 {dimension_numbers = #tpu.dot_dimension_numbers<[1], [0], [0], [1], [0, 0, 1, 1], [], []>} : vector<64x640xbf16>, vector<640x256xbf16>, vector<64x256xf32> -> vector<64x256xf32>
    %c0_44 = arith.constant 0 : index
    %c0_45 = arith.constant 0 : index
    %53 = vector.load %arg5[%c0_44, %c0_45] : memref<1x256xf32, #tpu.memory_space<vmem>>, vector<1x256xf32>
    %54 = vector.broadcast %53 : vector<1x256xf32> to vector<64x256xf32>
    %55 = arith.addf %52, %54 : vector<64x256xf32>
    %56 = arith.maximumf %50, %55 : vector<64x256xf32>
    %57 = vector.extract_strided_slice %56 {offsets = [0, 0], sizes = [64, 128], strides = [1, 1]} : vector<64x256xf32> to vector<64x128xf32>
    %58 = vector.extract_strided_slice %56 {offsets = [0, 128], sizes = [64, 128], strides = [1, 1]} : vector<64x256xf32> to vector<64x128xf32>
    %59 = arith.maximumf %57, %58 : vector<64x128xf32>
    %cst_46 = arith.constant 0.000000e+00 : f32
    %60 = vector.broadcast %cst_46 : f32 to vector<64x128xf32>
    %61 = arith.maximumf %59, %60 : vector<64x128xf32>
    %62 = vector.shape_cast %61 : vector<64x128xf32> to vector<8x8x128xf32>
    %c0_47 = arith.constant 0 : index
    %c0_48 = arith.constant 0 : index
    %c0_49 = arith.constant 0 : index
    %63 = vector.load %arg15[%c0_47, %c0_48, %c0_49] : memref<8x8x128xf32, #tpu.memory_space<vmem>>, vector<8x8x128xf32>
    tpu.vector_store %arg15[%c0_47, %c0_48, %c0_49], %62 {strides = array<i32>} : memref<8x8x128xf32, #tpu.memory_space<vmem>>, vector<8x8x128xf32>,
    %c0_50 = arith.constant 0 : index
    %c0_51 = arith.constant 0 : index
    %c0_52 = arith.constant 0 : index
    %64 = vector.load %arg15[%c0_50, %c0_51, %c0_52] : memref<8x8x128xf32, #tpu.memory_space<vmem>>, vector<8x1x128xf32>
    %65 = vector.shape_cast %64 : vector<8x1x128xf32> to vector<8x128xf32>
    %66 = arith.truncf %65 : vector<8x128xf32> to vector<8x128xbf16>
    %c0_53 = arith.constant 0 : index
    %c0_54 = arith.constant 0 : index
    %c0_55 = arith.constant 0 : index
    %67 = vector.load %arg6[%c0_53, %c0_54, %c0_55] : memref<5x128x128xbf16, #tpu.memory_space<vmem>>, vector<1x128x128xbf16>
    %68 = vector.shape_cast %67 : vector<1x128x128xbf16> to vector<128x128xbf16>
    %cst_56 = arith.constant dense<0.000000e+00> : vector<8x128xf32>
    %69 = tpu.matmul %66, %68, %cst_56 {dimension_numbers = #tpu.dot_dimension_numbers<[1], [0], [0], [1], [0, 0, 1, 1], [], []>} : vector<8x128xbf16>, vector<128x128xbf16>, vector<8x128xf32> -> vector<8x128xf32>
    %c0_57 = arith.constant 0 : index
    %c1_58 = arith.constant 1 : index
    %c0_59 = arith.constant 0 : index
    %70 = vector.load %arg15[%c0_57, %c1_58, %c0_59] : memref<8x8x128xf32, #tpu.memory_space<vmem>>, vector<8x1x128xf32>
    %71 = vector.shape_cast %70 : vector<8x1x128xf32> to vector<8x128xf32>
    %72 = arith.truncf %71 : vector<8x128xf32> to vector<8x128xbf16>
    %c1_60 = arith.constant 1 : index
    %c0_61 = arith.constant 0 : index
    %c0_62 = arith.constant 0 : index
    %73 = vector.load %arg6[%c1_60, %c0_61, %c0_62] : memref<5x128x128xbf16, #tpu.memory_space<vmem>>, vector<1x128x128xbf16>
    %74 = vector.shape_cast %73 : vector<1x128x128xbf16> to vector<128x128xbf16>
    %cst_63 = arith.constant dense<0.000000e+00> : vector<8x128xf32>
    %75 = tpu.matmul %72, %74, %cst_63 {dimension_numbers = #tpu.dot_dimension_numbers<[1], [0], [0], [1], [0, 0, 1, 1], [], []>} : vector<8x128xbf16>, vector<128x128xbf16>, vector<8x128xf32> -> vector<8x128xf32>
    %76 = arith.addf %69, %75 : vector<8x128xf32>
    %c0_64 = arith.constant 0 : index
    %c2_65 = arith.constant 2 : index
    %c0_66 = arith.constant 0 : index
    %77 = vector.load %arg15[%c0_64, %c2_65, %c0_66] : memref<8x8x128xf32, #tpu.memory_space<vmem>>, vector<8x1x128xf32>
    %78 = vector.shape_cast %77 : vector<8x1x128xf32> to vector<8x128xf32>
    %79 = arith.truncf %78 : vector<8x128xf32> to vector<8x128xbf16>
    %c2_67 = arith.constant 2 : index
    %c0_68 = arith.constant 0 : index
    %c0_69 = arith.constant 0 : index
    %80 = vector.load %arg6[%c2_67, %c0_68, %c0_69] : memref<5x128x128xbf16, #tpu.memory_space<vmem>>, vector<1x128x128xbf16>
    %81 = vector.shape_cast %80 : vector<1x128x128xbf16> to vector<128x128xbf16>
    %cst_70 = arith.constant dense<0.000000e+00> : vector<8x128xf32>
    %82 = tpu.matmul %79, %81, %cst_70 {dimension_numbers = #tpu.dot_dimension_numbers<[1], [0], [0], [1], [0, 0, 1, 1], [], []>} : vector<8x128xbf16>, vector<128x128xbf16>, vector<8x128xf32> -> vector<8x128xf32>
    %83 = arith.addf %76, %82 : vector<8x128xf32>
    %c0_71 = arith.constant 0 : index
    %c3 = arith.constant 3 : index
    %c0_72 = arith.constant 0 : index
    %84 = vector.load %arg15[%c0_71, %c3, %c0_72] : memref<8x8x128xf32, #tpu.memory_space<vmem>>, vector<8x1x128xf32>
    %85 = vector.shape_cast %84 : vector<8x1x128xf32> to vector<8x128xf32>
    %86 = arith.truncf %85 : vector<8x128xf32> to vector<8x128xbf16>
    %c3_73 = arith.constant 3 : index
    %c0_74 = arith.constant 0 : index
    %c0_75 = arith.constant 0 : index
    %87 = vector.load %arg6[%c3_73, %c0_74, %c0_75] : memref<5x128x128xbf16, #tpu.memory_space<vmem>>, vector<1x128x128xbf16>
    %88 = vector.shape_cast %87 : vector<1x128x128xbf16> to vector<128x128xbf16>
    %cst_76 = arith.constant dense<0.000000e+00> : vector<8x128xf32>
    %89 = tpu.matmul %86, %88, %cst_76 {dimension_numbers = #tpu.dot_dimension_numbers<[1], [0], [0], [1], [0, 0, 1, 1], [], []>} : vector<8x128xbf16>, vector<128x128xbf16>, vector<8x128xf32> -> vector<8x128xf32>
    %90 = arith.addf %83, %89 : vector<8x128xf32>
    %c0_77 = arith.constant 0 : index
    %c4 = arith.constant 4 : index
    %c0_78 = arith.constant 0 : index
    %91 = vector.load %arg15[%c0_77, %c4, %c0_78] : memref<8x8x128xf32, #tpu.memory_space<vmem>>, vector<8x1x128xf32>
    %92 = vector.shape_cast %91 : vector<8x1x128xf32> to vector<8x128xf32>
    %93 = arith.truncf %92 : vector<8x128xf32> to vector<8x128xbf16>
    %c4_79 = arith.constant 4 : index
    %c0_80 = arith.constant 0 : index
    %c0_81 = arith.constant 0 : index
    %94 = vector.load %arg6[%c4_79, %c0_80, %c0_81] : memref<5x128x128xbf16, #tpu.memory_space<vmem>>, vector<1x128x128xbf16>
    %95 = vector.shape_cast %94 : vector<1x128x128xbf16> to vector<128x128xbf16>
    %cst_82 = arith.constant dense<0.000000e+00> : vector<8x128xf32>
    %96 = tpu.matmul %93, %95, %cst_82 {dimension_numbers = #tpu.dot_dimension_numbers<[1], [0], [0], [1], [0, 0, 1, 1], [], []>} : vector<8x128xbf16>, vector<128x128xbf16>, vector<8x128xf32> -> vector<8x128xf32>
    %97 = arith.addf %90, %96 : vector<8x128xf32>
    %c0_83 = arith.constant 0 : index
    %c0_84 = arith.constant 0 : index
    %98 = vector.load %arg7[%c0_83, %c0_84] : memref<1x128xf32, #tpu.memory_space<vmem>>, vector<1x128xf32>
    %99 = vector.broadcast %98 : vector<1x128xf32> to vector<8x128xf32>
    %100 = arith.addf %97, %99 : vector<8x128xf32>
    %cst_85 = arith.constant 0.000000e+00 : f32
    %101 = vector.broadcast %cst_85 : f32 to vector<8x128xf32>
    %102 = arith.maximumf %100, %101 : vector<8x128xf32>
    %103 = arith.truncf %102 : vector<8x128xf32> to vector<8x128xbf16>
    %c0_86 = arith.constant 0 : index
    %c0_87 = arith.constant 0 : index
    %104 = vector.load %arg8[%c0_86, %c0_87] : memref<128x128xbf16, #tpu.memory_space<vmem>>, vector<128x128xbf16>
    %cst_88 = arith.constant dense<0.000000e+00> : vector<8x128xf32>
    %105 = tpu.matmul %103, %104, %cst_88 {dimension_numbers = #tpu.dot_dimension_numbers<[1], [0], [0], [1], [0, 0, 1, 1], [], []>} : vector<8x128xbf16>, vector<128x128xbf16>, vector<8x128xf32> -> vector<8x128xf32>
    %c0_89 = arith.constant 0 : index
    %c0_90 = arith.constant 0 : index
    %106 = vector.load %arg9[%c0_89, %c0_90] : memref<1x128xf32, #tpu.memory_space<vmem>>, vector<1x128xf32>
    %107 = vector.broadcast %106 : vector<1x128xf32> to vector<8x128xf32>
    %108 = arith.addf %105, %107 : vector<8x128xf32>
    %cst_91 = arith.constant 0.000000e+00 : f32
    %109 = vector.broadcast %cst_91 : f32 to vector<8x128xf32>
    %110 = arith.maximumf %108, %109 : vector<8x128xf32>
    %111 = arith.truncf %110 : vector<8x128xf32> to vector<8x128xbf16>
    %c0_92 = arith.constant 0 : index
    %c0_93 = arith.constant 0 : index
    %112 = vector.load %arg10[%c0_92, %c0_93] : memref<128x128xbf16, #tpu.memory_space<vmem>>, vector<128x128xbf16>
    %cst_94 = arith.constant dense<0.000000e+00> : vector<8x128xf32>
    %113 = tpu.matmul %111, %112, %cst_94 {dimension_numbers = #tpu.dot_dimension_numbers<[1], [0], [0], [1], [0, 0, 1, 1], [], []>} : vector<8x128xbf16>, vector<128x128xbf16>, vector<8x128xf32> -> vector<8x128xf32>
    %c0_95 = arith.constant 0 : index
    %c0_96 = arith.constant 0 : index
    %114 = vector.load %arg11[%c0_95, %c0_96] : memref<1x128xf32, #tpu.memory_space<vmem>>, vector<1x128xf32>
    %115 = vector.broadcast %114 : vector<1x128xf32> to vector<8x128xf32>
    %116 = arith.addf %113, %115 : vector<8x128xf32>
    %c0_97 = arith.constant 0 : index
    %c0_98 = arith.constant 0 : index
    %117 = vector.load %arg12[%c0_97, %c0_98] : memref<8x128xf32, #tpu.memory_space<vmem>>, vector<8x128xf32>
    tpu.vector_store %arg12[%c0_97, %c0_98], %116 {strides = array<i32>} : memref<8x128xf32, #tpu.memory_space<vmem>>, vector<8x128xf32>,
    return
  }
  func.func @transform_0(%arg0: i32) -> (i32, i32, i32) {
    %c0_i32 = arith.constant 0 : i32
    %c0_i32_0 = arith.constant 0 : i32
    %c0_i32_1 = arith.constant 0 : i32
    return %arg0, %c0_i32, %c0_i32_0 : i32, i32, i32
  }
  func.func @transform_1(%arg0: i32) -> (i32, i32) {
    %c0_i32 = arith.constant 0 : i32
    %c0_i32_0 = arith.constant 0 : i32
    %c0_i32_1 = arith.constant 0 : i32
    return %c0_i32, %c0_i32_0 : i32, i32
  }
  func.func @transform_2(%arg0: i32) -> (i32, i32) {
    %c0_i32 = arith.constant 0 : i32
    %c0_i32_0 = arith.constant 0 : i32
    %c0_i32_1 = arith.constant 0 : i32
    return %c0_i32, %c0_i32_0 : i32, i32
  }
  func.func @transform_3(%arg0: i32) -> (i32, i32) {
    %c0_i32 = arith.constant 0 : i32
    %c0_i32_0 = arith.constant 0 : i32
    %c0_i32_1 = arith.constant 0 : i32
    return %c0_i32, %c0_i32_0 : i32, i32
  }
  func.func @transform_4(%arg0: i32) -> (i32, i32) {
    %c0_i32 = arith.constant 0 : i32
    %c0_i32_0 = arith.constant 0 : i32
    %c0_i32_1 = arith.constant 0 : i32
    return %c0_i32, %c0_i32_0 : i32, i32
  }
  func.func @transform_5(%arg0: i32) -> (i32, i32, i32) {
    %c0_i32 = arith.constant 0 : i32
    %c0_i32_0 = arith.constant 0 : i32
    %c0_i32_1 = arith.constant 0 : i32
    %c0_i32_2 = arith.constant 0 : i32
    return %c0_i32, %c0_i32_0, %c0_i32_1 : i32, i32, i32
  }
  func.func @transform_6(%arg0: i32) -> (i32, i32) {
    %c0_i32 = arith.constant 0 : i32
    %c0_i32_0 = arith.constant 0 : i32
    %c0_i32_1 = arith.constant 0 : i32
    return %c0_i32, %c0_i32_0 : i32, i32
  }
  func.func @transform_7(%arg0: i32) -> (i32, i32) {
    %c0_i32 = arith.constant 0 : i32
    %c0_i32_0 = arith.constant 0 : i32
    %c0_i32_1 = arith.constant 0 : i32
    return %c0_i32, %c0_i32_0 : i32, i32
  }
  func.func @transform_8(%arg0: i32) -> (i32, i32) {
    %c0_i32 = arith.constant 0 : i32
    %c0_i32_0 = arith.constant 0 : i32
    %c0_i32_1 = arith.constant 0 : i32
    return %c0_i32, %c0_i32_0 : i32, i32
  }
  func.func @transform_9(%arg0: i32) -> (i32, i32) {
    %c0_i32 = arith.constant 0 : i32
    %c0_i32_0 = arith.constant 0 : i32
    %c0_i32_1 = arith.constant 0 : i32
    return %c0_i32, %c0_i32_0 : i32, i32
  }
  func.func @transform_10(%arg0: i32) -> (i32, i32) {
    %c0_i32 = arith.constant 0 : i32
    %c0_i32_0 = arith.constant 0 : i32
    %c0_i32_1 = arith.constant 0 : i32
    return %c0_i32, %c0_i32_0 : i32, i32
  }
  func.func @transform_11(%arg0: i32) -> (i32, i32) {
    %c0_i32 = arith.constant 0 : i32
    %c0_i32_0 = arith.constant 0 : i32
    return %arg0, %c0_i32 : i32, i32
  }
}

</mosaic_0001>

<bundles_post_ra>
// kernel: tile.23
= control target key start
LH: loop header
LB: loop body
LE: loop exit
PB: predicated region body
PF: predicated region fallthrough
CT: control target
= control target key end

     0   :  { %s28_s0 = inlined_call_operand.vmem [shape: f32[6], index: 0, kind: input, shape index: {}]   ;;  %s29_s1 = inlined_call_operand.vmem [shape: f32[14,6], index: 1, kind: output, shape index: {}]  }
   0x1   :  { %v4_v0 = vld [vmem:[%s28_s0] ss:$0 sm:$0xff] }
   0x2   :  { %5 = vst [vmem:[%s29_s1] sm:$0xff] %v4_v0  ;;  %8 = vst [vmem:[%s29_s1 + $0x8] sm:$0xff] %v4_v0 }

// kernel: tile.24
= control target key start
LH: loop header
LB: loop body
LE: loop exit
PB: predicated region body
PF: predicated region fallthrough
CT: control target
= control target key end

     0   :  { %s117_s10 = smov 78   ;;  %s118_s11 = smov 66   ;;  %vm3_vm0 = vcmask 48128   ;;  %vm9_vm1 = vcmask 687728   ;;  %vm15_vm2 = vcmask 638528   ;;  %vm21_vm3 = vcmask 589328   ;;  %s185_s0 = inlined_call_operand.vmem [shape: f32[14,6], index: 0, kind: input, shape index: {}]   ;;  %s186_s1 = inlined_call_operand.vmem [shape: f32[84], index: 1, kind: output, shape index: {}]  }
   0x1   :  { %v91_v0 = vld [vmem:[%s185_s0 + $0xd] sm:$0x1]   ;;  %v93_v1 = vld [vmem:[%s185_s0 + $0xb] sm:$0x1]   ;;  %v92_v2 = vld [vmem:[%s185_s0 + $0xc] sm:$0x1]  }
   0x2   :  { %7 = vrot.lane.b32.xlu0 %v91_v0, %s117_s10  ;;  %19 = vrot.lane.b32.xlu1 %v93_v1, %s118_s11  ;;  %v94_v3 = vld [vmem:[%s185_s0 + $0xa] sm:$0x1]   ;;  %s119_s16 = smov 72   ;;  %s120_s17 = smov 60   ;;  %v95_v4 = vld [vmem:[%s185_s0 + $0x9] sm:$0x1]  }
   0x3   :  { %v96_v5 = vld [vmem:[%s185_s0 + $0x8] sm:$0x1]   ;;  %v2_v6 = vld [vmem:[%s185_s0] sm:$0x1]   ;;  %s121_s24 = smov 54   ;;  %s122_s25 = smov 48  }
   0x4   :  { %4 = vst.msk [vmem:[#allocation0] sm:$0x1] %vm3_vm0, %v2_v6   ;;  %v97_v7 = vld [vmem:[%s185_s0 + $0x7] sm:$0x1]   ;;  %v98_v8 = vld [vmem:[%s185_s0 + $0x6] sm:$0x1]  }
   0x5   :  { %s123_s30 = smov 42   ;;  %s124_s2 = smov 36   ;;  %v99_v9 = vld [vmem:[%s185_s0 + $0x5] sm:$0x1]   ;;  %v100_v10 = vld [vmem:[%s185_s0 + $0x4] sm:$0x1]  }
   0x6   :  { %13 = vrot.lane.b32.xlu0 %v92_v2, %s119_s16  ;;  %25 = vrot.lane.b32.xlu1 %v94_v3, %s120_s17  ;;  %s125_s7 = smov 30   ;;  %s126_s8 = smov 24   ;;  %v101_v11 = vld [vmem:[%s185_s0 + $0x3] sm:$0x1]   ;;  %v102_v12 = vld [vmem:[%s185_s0 + $0x2] sm:$0x1]  }
   0x7   :  { %s127_s13 = smov 18   ;;  %s128_s14 = smov 12   ;;  %v103_v13 = vld [vmem:[%s185_s0 + $0x1] sm:$0x1]   ;;  %vm27_vm4 = vcmask 540128   ;;  %vm33_vm5 = vcmask 490928  }
   0x8   :  { %s129_s0 = smov 6   ;;  %vm39_vm6 = vcmask 441728   ;;  %vm45_vm7 = vcmask 392528   ;;  %vm51_vm8 = vcmask 343328   ;;  %vm57_vm9 = vcmask 294128  }
   0x9   :  { %vm63_vm10 = vcmask 244928   ;;  %vm69_vm11 = vcmask 195728   ;;  %vm75_vm12 = vcmask 146528   ;;  %vm81_vm13 = vcmask 97328  }
   0xa   :  { %31 = vrot.lane.b32.xlu0 %v95_v4, %s121_s24  ;;  %37 = vrot.lane.b32.xlu1 %v96_v5, %s122_s25 }
   0xe   :  { %43 = vrot.lane.b32.xlu0 %v97_v7, %s123_s30  ;;  %49 = vrot.lane.b32.xlu1 %v98_v8, %s124_s2 }
  0x12   :  { %55 = vrot.lane.b32.xlu0 %v99_v9, %s125_s7  ;;  %61 = vrot.lane.b32.xlu1 %v100_v10, %s126_s8 }
  0x16   :  { %67 = vrot.lane.b32.xlu0 %v101_v11, %s127_s13  ;;  %73 = vrot.lane.b32.xlu1 %v102_v12, %s128_s14 }
  0x1a   :  { %79 = vrot.lane.b32.xlu0 %v103_v13, %s129_s0 }
  0x74   :  { %v8_v14 = vpop.permute.xlu0 %7   ;;  %v20_v15 = vpop.permute.xlu1 %19  }
  0x75   :  { %10 = vst.msk [vmem:[#allocation0] sm:$0x1] %vm9_vm1, %v8_v14  }
  0x78   :  { %v14_v16 = vpop.permute.xlu0 %13   ;;  %v26_v17 = vpop.permute.xlu1 %25  }
  0x79   :  { %16 = vst.msk [vmem:[#allocation0] sm:$0x1] %vm15_vm2, %v14_v16  }
  0x7a   :  { %22 = vst.msk [vmem:[#allocation0] sm:$0x1] %vm21_vm3, %v20_v15  }
  0x7b   :  { %28 = vst.msk [vmem:[#allocation0] sm:$0x1] %vm27_vm4, %v26_v17  }
  0x7c   :  { %v32_v18 = vpop.permute.xlu0 %31   ;;  %v38_v19 = vpop.permute.xlu1 %37  }
  0x7d   :  { %34 = vst.msk [vmem:[#allocation0] sm:$0x1] %vm33_vm5, %v32_v18  }
  0x7e   :  { %40 = vst.msk [vmem:[#allocation0] sm:$0x1] %vm39_vm6, %v38_v19  }
  0x80   :  { %v44_v20 = vpop.permute.xlu0 %43   ;;  %v50_v21 = vpop.permute.xlu1 %49  }
  0x81   :  { %46 = vst.msk [vmem:[#allocation0] sm:$0x1] %vm45_vm7, %v44_v20  }
  0x82   :  { %52 = vst.msk [vmem:[#allocation0] sm:$0x1] %vm51_vm8, %v50_v21  }
  0x84   :  { %v56_v22 = vpop.permute.xlu0 %55   ;;  %v62_v23 = vpop.permute.xlu1 %61  }
  0x85   :  { %58 = vst.msk [vmem:[#allocation0] sm:$0x1] %vm57_vm9, %v56_v22  }
  0x86   :  { %64 = vst.msk [vmem:[#allocation0] sm:$0x1] %vm63_vm10, %v62_v23  }
  0x88   :  { %v68_v24 = vpop.permute.xlu0 %67   ;;  %v74_v25 = vpop.permute.xlu1 %73  }
  0x89   :  { %70 = vst.msk [vmem:[#allocation0] sm:$0x1] %vm69_vm11, %v68_v24  }
  0x8a   :  { %76 = vst.msk [vmem:[#allocation0] sm:$0x1] %vm75_vm12, %v74_v25  }
  0x8c   :  { %v80_v26 = vpop.permute.xlu0 %79  }
  0x8d   :  { %82 = vst.msk [vmem:[#allocation0] sm:$0x1] %vm81_vm13, %v80_v26  }
  0x94   :  { %v87_v27 = vld [vmem:[#allocation0] sm:$0x1] }
  0x95   :  { %90 = vst [vmem:[%s186_s1] sm:$0x1] %v87_v27 }

// kernel: tile.28
= control target key start
LH: loop header
LB: loop body
LE: loop exit
PB: predicated region body
PF: predicated region fallthrough
CT: control target
= control target key end

     0   :  { %s22_s0 = inlined_call_operand.vmem [shape: f32[128], index: 0, kind: input, shape index: {}]   ;;  %s23_s1 = inlined_call_operand.vmem [shape: f32[8,128], index: 1, kind: output, shape index: {}]  }
   0x1   :  { %v4_v0 = vld [vmem:[%s22_s0] ss:$0 sm:$0xff] }
   0x2   :  { %5 = vst [vmem:[%s23_s1] sm:$0xff] %v4_v0 }

// kernel: tile.33
= control target key start
LH: loop header
LB: loop body
LE: loop exit
PB: predicated region body
PF: predicated region fallthrough
CT: control target
= control target key end

     0   :  { %s22_s0 = inlined_call_operand.vmem [shape: f32[16], index: 0, kind: input, shape index: {}]   ;;  %s23_s1 = inlined_call_operand.vmem [shape: f32[5,16], index: 1, kind: output, shape index: {}]  }
   0x1   :  { %v4_v0 = vld [vmem:[%s22_s0] ss:$0 sm:$0xff] }
   0x2   :  { %5 = vst [vmem:[%s23_s1] sm:$0xff] %v4_v0 }

// kernel: tile.34
= control target key start
LH: loop header
LB: loop body
LE: loop exit
PB: predicated region body
PF: predicated region fallthrough
CT: control target
= control target key end

     0   :  { %s45_s10 = smov 64   ;;  %s46_s11 = smov 32   ;;  %vm3_vm0 = vcmask 130048   ;;  %vm9_vm1 = vcmask 654848   ;;  %vm15_vm2 = vcmask 523648   ;;  %vm21_vm3 = vcmask 392448   ;;  %s77_s0 = inlined_call_operand.vmem [shape: f32[5,16], index: 0, kind: input, shape index: {}]   ;;  %s78_s1 = inlined_call_operand.vmem [shape: f32[80], index: 1, kind: output, shape index: {}]  }
   0x1   :  { %v37_v0 = vld [vmem:[%s77_s0 + $0x4] sm:$0x1]   ;;  %v39_v1 = vld [vmem:[%s77_s0 + $0x2] sm:$0x1]   ;;  %v38_v2 = vld [vmem:[%s77_s0 + $0x3] sm:$0x1]  }
   0x2   :  { %7 = vrot.lane.b32.xlu0 %v37_v0, %s45_s10  ;;  %19 = vrot.lane.b32.xlu1 %v39_v1, %s46_s11  ;;  %v40_v3 = vld [vmem:[%s77_s0 + $0x1] sm:$0x1]   ;;  %v2_v4 = vld [vmem:[%s77_s0] sm:$0x1]   ;;  %s47_s0 = smov 48   ;;  %s48_s18 = smov 16  }
   0x3   :  { %4 = vst.msk [vmem:[#allocation0] sm:$0x1] %vm3_vm0, %v2_v4   ;;  %vm27_vm4 = vcmask 261248  }
   0x6   :  { %13 = vrot.lane.b32.xlu0 %v38_v2, %s47_s0  ;;  %25 = vrot.lane.b32.xlu1 %v40_v3, %s48_s18 }
  0x74   :  { %v8_v5 = vpop.permute.xlu0 %7   ;;  %v20_v6 = vpop.permute.xlu1 %19  }
  0x75   :  { %10 = vst.msk [vmem:[#allocation0] sm:$0x1] %vm9_vm1, %v8_v5  }
  0x78   :  { %v14_v7 = vpop.permute.xlu0 %13   ;;  %v26_v8 = vpop.permute.xlu1 %25  }
  0x79   :  { %16 = vst.msk [vmem:[#allocation0] sm:$0x1] %vm15_vm2, %v14_v7  }
  0x7a   :  { %22 = vst.msk [vmem:[#allocation0] sm:$0x1] %vm21_vm3, %v20_v6  }
  0x7b   :  { %28 = vst.msk [vmem:[#allocation0] sm:$0x1] %vm27_vm4, %v26_v8  }
  0x82   :  { %v33_v9 = vld [vmem:[#allocation0] sm:$0x1] }
  0x83   :  { %36 = vst [vmem:[%s78_s1] sm:$0x1] %v33_v9 }

// kernel: tile.38
= control target key start
LH: loop header
LB: loop body
LE: loop exit
PB: predicated region body
PF: predicated region fallthrough
CT: control target
= control target key end

     0   :  { %s22_s0 = inlined_call_operand.vmem [shape: f32[128], index: 0, kind: input, shape index: {}]   ;;  %s23_s1 = inlined_call_operand.vmem [shape: f32[2,128], index: 1, kind: output, shape index: {}]  }
   0x1   :  { %v4_v0 = vld [vmem:[%s22_s0] ss:$0 sm:$0xff] }
   0x2   :  { %5 = vst [vmem:[%s23_s1] sm:$0x3] %v4_v0 }

// kernel: lenet5_forward.1
= control target key start
LH: loop header
LB: loop body
LE: loop exit
PB: predicated region body
PF: predicated region fallthrough
CT: control target
= control target key end

     0   :  { %vm4298_vm0 = vmmov 0   ;;  %vm2577_vm1 = vcmask 1041409   ;;  %vm2580_vm2 = vcmask 1042434   ;;  %vm2583_vm3 = vcmask 1043459   ;;  %s6050_s1 = inlined_call_operand.vmem [shape: bf16[256,1024], index: 1, kind: input, shape index: {}]   ;;  %s6051_s0 = inlined_call_operand.vmem [shape: bf16[8,8,256], index: 0, kind: input, shape index: {}]   ;;  %s6052_s3 = inlined_call_operand.vmem [shape: bf16[640,256], index: 3, kind: input, shape index: {}]   ;;  %s6053_s2 = inlined_call_operand.vmem [shape: f32[1,1024], index: 2, kind: input, shape index: {}]   ;;  %s6054_s4 = inlined_call_operand.vmem [shape: f32[1,256], index: 4, kind: input, shape index: {}]   ;;  %s6055_s5 = inlined_call_operand.vmem [shape: bf16[5,128,128], index: 5, kind: input, shape index: {}]   ;;  %s6056_s7 = inlined_call_operand.vmem [shape: bf16[128,128], index: 7, kind: input, shape index: {}]   ;;  %s6057_s9 = inlined_call_operand.vmem [shape: bf16[128,128], index: 9, kind: input, shape index: {}]   ;;  %s6058_s6 = inlined_call_operand.vmem [shape: f32[1,128], index: 6, kind: input, shape index: {}]   ;;  %s6059_s8 = inlined_call_operand.vmem [shape: f32[1,128], index: 8, kind: input, shape index: {}]   ;;  %s6060_s10 = inlined_call_operand.vmem [shape: f32[1,128], index: 10, kind: input, shape index: {}]   ;;  %s6061_s11 = inlined_call_operand.vmem [shape: f32[8,128], index: 11, kind: output, shape index: {}]  }
   0x1   :  { %v119_v0 = vld [vmem:[%s6050_s1 + $0x1c0] sm:$0xff]  ;;  %v120_v2 = vld [vmem:[%s6050_s1 + $0x1c8] sm:$0xff]  ;;  %vm2586_vm4 = vcmask 1044484   ;;  %vm2589_vm5 = vcmask 1045509   ;;  %vm2592_vm6 = vcmask 1046534   ;;  %vm2595_vm7 = vcmask 1047559  }
   0x2   :  { %v123_v1 = vld [vmem:[%s6050_s1 + $0x1e0] sm:$0xff]  ;;  %v124_v4 = vld [vmem:[%s6050_s1 + $0x1e8] sm:$0xff] }
   0x3   :  { %v3573_v3 = vcombine.high %v119_v0, %v123_v1  ;;  %v3572_v5 = vcombine.low %v119_v0, %v123_v1  ;;  %v111_v6 = vld [vmem:[%s6050_s1 + $0x180] sm:$0xff]  ;;  %v3575_v8 = vcombine.high %v120_v2, %v124_v4  ;;  %v3574_v9 = vcombine.low %v120_v2, %v124_v4  ;;  %v112_v11 = vld [vmem:[%s6050_s1 + $0x188] sm:$0xff] }
   0x4   :  { %v115_v7 = vld [vmem:[%s6050_s1 + $0x1a0] sm:$0xff]  ;;  %v116_v12 = vld [vmem:[%s6050_s1 + $0x1a8] sm:$0xff] }
   0x5   :  { %v3565_v10 = vcombine.high %v111_v6, %v115_v7  ;;  %v103_v13 = vld [vmem:[%s6050_s1 + $0x140] sm:$0xff]  ;;  %913 = vmatprep.subr.bf16.mxu0 %v3573_v3  ;;  %v3567_v14 = vcombine.high %v112_v11, %v116_v12  ;;  %v104_v16 = vld [vmem:[%s6050_s1 + $0x148] sm:$0xff]  ;;  %986 = vmatprep.subr.bf16.mxu1 %v3575_v8  ;;  %v3564_v18 = vcombine.low %v111_v6, %v115_v7 }
   0x6   :  { %v107_v15 = vld [vmem:[%s6050_s1 + $0x160] sm:$0xff]  ;;  %v108_v17 = vld [vmem:[%s6050_s1 + $0x168] sm:$0xff]  ;;  %914 = vmatpush1.bf16.msra.mxu0 %v3572_v5  ;;  %987 = vmatpush1.bf16.msra.mxu1 %v3574_v9  ;;  %v3566_v19 = vcombine.low %v112_v11, %v116_v12 }
   0x7   :  { %915 = vmatprep.subr.bf16.mxu0 %v3565_v10  ;;  %v3557_v20 = vcombine.high %v103_v13, %v107_v15  ;;  %988 = vmatprep.subr.bf16.mxu1 %v3567_v14  ;;  %v3559_v21 = vcombine.high %v104_v16, %v108_v17  ;;  %v95_v22 = vld [vmem:[%s6050_s1 + $0x100] sm:$0xff]  ;;  %v96_v24 = vld [vmem:[%s6050_s1 + $0x108] sm:$0xff]  ;;  %v3556_v26 = vcombine.low %v103_v13, %v107_v15 }
   0x8   :  { %v99_v23 = vld [vmem:[%s6050_s1 + $0x120] sm:$0xff]  ;;  %v100_v25 = vld [vmem:[%s6050_s1 + $0x128] sm:$0xff]  ;;  %v3558_v27 = vcombine.low %v104_v16, %v108_v17 }
   0x9   :  { %v3549_v28 = vcombine.high %v95_v22, %v99_v23  ;;  %v3551_v29 = vcombine.high %v96_v24, %v100_v25  ;;  %v87_v30 = vld [vmem:[%s6050_s1 + $0xc0] sm:$0xff]  ;;  %v88_v32 = vld [vmem:[%s6050_s1 + $0xc8] sm:$0xff]  ;;  %v3548_v34 = vcombine.low %v95_v22, %v99_v23  ;;  %v3550_v35 = vcombine.low %v96_v24, %v100_v25 }
   0xa   :  { %916 = vmatpush1.bf16.msra.mxu0 %v3564_v18  ;;  %989 = vmatpush1.bf16.msra.mxu1 %v3566_v19  ;;  %v91_v31 = vld [vmem:[%s6050_s1 + $0xe0] sm:$0xff]  ;;  %v92_v33 = vld [vmem:[%s6050_s1 + $0xe8] sm:$0xff] }
   0xb   :  { %917 = vmatprep.subr.bf16.mxu0 %v3557_v20  ;;  %990 = vmatprep.subr.bf16.mxu1 %v3559_v21  ;;  %v3541_v36 = vcombine.high %v87_v30, %v91_v31  ;;  %v3543_v37 = vcombine.high %v88_v32, %v92_v33  ;;  %v79_v38 = vld [vmem:[%s6050_s1 + $0x80] sm:$0xff]  ;;  %v80_v40 = vld [vmem:[%s6050_s1 + $0x88] sm:$0xff]  ;;  %v3540_v42 = vcombine.low %v87_v30, %v91_v31 }
   0xc   :  { %v83_v39 = vld [vmem:[%s6050_s1 + $0xa0] sm:$0xff]  ;;  %v84_v41 = vld [vmem:[%s6050_s1 + $0xa8] sm:$0xff]  ;;  %v3542_v43 = vcombine.low %v88_v32, %v92_v33 }
   0xd   :  { %v3533_v44 = vcombine.high %v79_v38, %v83_v39  ;;  %v3535_v45 = vcombine.high %v80_v40, %v84_v41  ;;  %v71_v46 = vld [vmem:[%s6050_s1 + $0x40] sm:$0xff]  ;;  %v72_v48 = vld [vmem:[%s6050_s1 + $0x48] sm:$0xff]  ;;  %v3532_v50 = vcombine.low %v79_v38, %v83_v39  ;;  %v3534_v51 = vcombine.low %v80_v40, %v84_v41 }
   0xe   :  { %918 = vmatpush1.bf16.msra.mxu0 %v3556_v26  ;;  %991 = vmatpush1.bf16.msra.mxu1 %v3558_v27  ;;  %v75_v47 = vld [vmem:[%s6050_s1 + $0x60] sm:$0xff]  ;;  %v76_v49 = vld [vmem:[%s6050_s1 + $0x68] sm:$0xff] }
   0xf   :  { %919 = vmatprep.subr.bf16.mxu0 %v3549_v28  ;;  %992 = vmatprep.subr.bf16.mxu1 %v3551_v29  ;;  %v3525_v52 = vcombine.high %v71_v46, %v75_v47  ;;  %v3527_v53 = vcombine.high %v72_v48, %v76_v49  ;;  %v63_v54 = vld [vmem:[%s6050_s1] sm:$0xff]  ;;  %v64_v57 = vld [vmem:[%s6050_s1 + $0x8] sm:$0xff]  ;;  %v3524_v59 = vcombine.low %v71_v46, %v75_v47 }
  0x10   :  { %v67_v55 = vld [vmem:[%s6050_s1 + $0x20] sm:$0xff]  ;;  %v68_v58 = vld [vmem:[%s6050_s1 + $0x28] sm:$0xff]  ;;  %v3526_v60 = vcombine.low %v72_v48, %v76_v49 }
  0x11   :  { %v4452_v56 = vld [vmem:[%s6051_s0 + $0x4] ss:$8 sps:$4 sm:$0xff]   ;;  %v3517_v61 = vcombine.high %v63_v54, %v67_v55  ;;  %v3519_v62 = vcombine.high %v64_v57, %v68_v58  ;;  %v3516_v3 = vcombine.low %v63_v54, %v67_v55  ;;  %v3518_v4 = vcombine.low %v64_v57, %v68_v58 }
  0x12   :  { %920 = vmatpush1.bf16.msra.mxu0 %v3548_v34  ;;  %993 = vmatpush1.bf16.msra.mxu1 %v3550_v35  ;;  %v183_v63 = vld [vmem:[%s6050_s1 + $0x3c0] sm:$0xff]  ;;  %v184_v1 = vld [vmem:[%s6050_s1 + $0x3c8] sm:$0xff] }
  0x13   :  { %921 = vmatprep.subr.bf16.mxu0 %v3541_v36  ;;  %994 = vmatprep.subr.bf16.mxu1 %v3543_v37  ;;  %v187_v0 = vld [vmem:[%s6050_s1 + $0x3e0] sm:$0xff]  ;;  %v188_v2 = vld [vmem:[%s6050_s1 + $0x3e8] sm:$0xff] }
  0x14   :  { %945 = vmatprep.mubr.bf16.mxu0 %v4452_v56  ;;  %1018 = vmatprep.mubr.bf16.mxu1 %v4452_v56  ;;  %v3637_v5 = vcombine.high %v183_v63, %v187_v0  ;;  %v3639_v6 = vcombine.high %v184_v1, %v188_v2  ;;  %v175_v7 = vld [vmem:[%s6050_s1 + $0x380] sm:$0xff]  ;;  %v176_v9 = vld [vmem:[%s6050_s1 + $0x388] sm:$0xff]  ;;  %v3636_v11 = vcombine.low %v183_v63, %v187_v0  ;;  %v121_v0 = vld [vmem:[%s6050_s1 + $0x1d0] sm:$0xff] }
  0x15   :  { %v179_v8 = vld [vmem:[%s6050_s1 + $0x3a0] sm:$0xff]  ;;  %v180_v10 = vld [vmem:[%s6050_s1 + $0x3a8] sm:$0xff]  ;;  %v3638_v12 = vcombine.low %v184_v1, %v188_v2  ;;  %v125_v1 = vld [vmem:[%s6050_s1 + $0x1f0] sm:$0xff] }
  0x16   :  { %922 = vmatpush1.bf16.msra.mxu0 %v3540_v42  ;;  %995 = vmatpush1.bf16.msra.mxu1 %v3542_v43  ;;  %v3629_v13 = vcombine.high %v175_v7, %v179_v8  ;;  %v3631_v14 = vcombine.high %v176_v9, %v180_v10  ;;  %v167_v15 = vld [vmem:[%s6050_s1 + $0x340] sm:$0xff]  ;;  %v168_v17 = vld [vmem:[%s6050_s1 + $0x348] sm:$0xff]  ;;  %v3628_v19 = vcombine.low %v175_v7, %v179_v8  ;;  %v122_v2 = vld [vmem:[%s6050_s1 + $0x1d8] sm:$0xff] }
  0x17   :  { %923 = vmatprep.subr.bf16.mxu0 %v3533_v44  ;;  %996 = vmatprep.subr.bf16.mxu1 %v3535_v45  ;;  %v171_v16 = vld [vmem:[%s6050_s1 + $0x360] sm:$0xff]  ;;  %v172_v18 = vld [vmem:[%s6050_s1 + $0x368] sm:$0xff]  ;;  %v3630_v20 = vcombine.low %v176_v9, %v180_v10  ;;  %v113_v8 = vld [vmem:[%s6050_s1 + $0x190] sm:$0xff] }
  0x18   :  { %v3621_v21 = vcombine.high %v167_v15, %v171_v16  ;;  %v3623_v22 = vcombine.high %v168_v17, %v172_v18  ;;  %v159_v23 = vld [vmem:[%s6050_s1 + $0x300] sm:$0xff]  ;;  %v160_v25 = vld [vmem:[%s6050_s1 + $0x308] sm:$0xff]  ;;  %v3620_v27 = vcombine.low %v167_v15, %v171_v16  ;;  %v3622_v28 = vcombine.low %v168_v17, %v172_v18  ;;  %v117_v9 = vld [vmem:[%s6050_s1 + $0x1b0] sm:$0xff] }
  0x19   :  { %v163_v24 = vld [vmem:[%s6050_s1 + $0x320] sm:$0xff]  ;;  %v164_v26 = vld [vmem:[%s6050_s1 + $0x328] sm:$0xff]  ;;  %v3569_v15 = vcombine.high %v113_v8, %v117_v9  ;;  %v105_v17 = vld [vmem:[%s6050_s1 + $0x150] sm:$0xff] }
  0x1a   :  { %924 = vmatpush1.bf16.msra.mxu0 %v3532_v50  ;;  %997 = vmatpush1.bf16.msra.mxu1 %v3534_v51  ;;  %v3613_v29 = vcombine.high %v159_v23, %v163_v24  ;;  %v3615_v30 = vcombine.high %v160_v25, %v164_v26  ;;  %v151_v31 = vld [vmem:[%s6050_s1 + $0x2c0] sm:$0xff]  ;;  %v152_v33 = vld [vmem:[%s6050_s1 + $0x2c8] sm:$0xff]  ;;  %v3612_v35 = vcombine.low %v159_v23, %v163_v24  ;;  %v109_v18 = vld [vmem:[%s6050_s1 + $0x170] sm:$0xff] }
  0x1b   :  { %925 = vmatprep.subr.bf16.mxu0 %v3525_v52  ;;  %998 = vmatprep.subr.bf16.mxu1 %v3527_v53  ;;  %v155_v32 = vld [vmem:[%s6050_s1 + $0x2e0] sm:$0xff]  ;;  %v156_v34 = vld [vmem:[%s6050_s1 + $0x2e8] sm:$0xff]  ;;  %v3614_v36 = vcombine.low %v160_v25, %v164_v26  ;;  %v3561_v24 = vcombine.high %v105_v17, %v109_v18  ;;  %v97_v26 = vld [vmem:[%s6050_s1 + $0x110] sm:$0xff] }
  0x1c   :  { %v3605_v37 = vcombine.high %v151_v31, %v155_v32  ;;  %v3607_v38 = vcombine.high %v152_v33, %v156_v34  ;;  %v143_v39 = vld [vmem:[%s6050_s1 + $0x280] sm:$0xff]  ;;  %v144_v41 = vld [vmem:[%s6050_s1 + $0x288] sm:$0xff]  ;;  %v3604_v43 = vcombine.low %v151_v31, %v155_v32  ;;  %v3606_v44 = vcombine.low %v152_v33, %v156_v34 }
  0x1d   :  { %v147_v40 = vld [vmem:[%s6050_s1 + $0x2a0] sm:$0xff]  ;;  %v148_v42 = vld [vmem:[%s6050_s1 + $0x2a8] sm:$0xff]  ;;  %v3560_v31 = vcombine.low %v105_v17, %v109_v18  ;;  %v177_v17 = vld [vmem:[%s6050_s1 + $0x390] sm:$0xff] }
  0x1e   :  { %926 = vmatpush1.bf16.msra.mxu0 %v3524_v59  ;;  %999 = vmatpush1.bf16.msra.mxu1 %v3526_v60  ;;  %v3597_v45 = vcombine.high %v143_v39, %v147_v40  ;;  %v3599_v46 = vcombine.high %v144_v41, %v148_v42  ;;  %v135_v47 = vld [vmem:[%s6050_s1 + $0x240] sm:$0xff]  ;;  %v136_v49 = vld [vmem:[%s6050_s1 + $0x248] sm:$0xff]  ;;  %v3596_v51 = vcombine.low %v143_v39, %v147_v40  ;;  %v94_v39 = vld [vmem:[%s6050_s1 + $0xf8] sm:$0xff] }
  0x1f   :  { %927 = vmatprep.subr.bf16.mxu0 %v3517_v61  ;;  %1000 = vmatprep.subr.bf16.mxu1 %v3519_v62  ;;  %v139_v48 = vld [vmem:[%s6050_s1 + $0x260] sm:$0xff]  ;;  %v140_v50 = vld [vmem:[%s6050_s1 + $0x268] sm:$0xff]  ;;  %v3598_v52 = vcombine.low %v144_v41, %v148_v42  ;;  %v181_v18 = vld [vmem:[%s6050_s1 + $0x3b0] sm:$0xff] }
  0x20   :  { %v3589_v53 = vcombine.high %v135_v47, %v139_v48  ;;  %v3591_v54 = vcombine.high %v136_v49, %v140_v50  ;;  %v127_v55 = vld [vmem:[%s6050_s1 + $0x200] sm:$0xff]  ;;  %v128_v58 = vld [vmem:[%s6050_s1 + $0x208] sm:$0xff]  ;;  %v3588_v60 = vcombine.low %v135_v47, %v139_v48  ;;  %v3590_v61 = vcombine.low %v136_v49, %v140_v50  ;;  %v86_v47 = vld [vmem:[%s6050_s1 + $0xb8] sm:$0xff] }
  0x21   :  { %v131_v57 = vld [vmem:[%s6050_s1 + $0x220] sm:$0xff]  ;;  %v132_v59 = vld [vmem:[%s6050_s1 + $0x228] sm:$0xff] }
  0x22   :  { %928 = vmatpush1.bf16.msra.mxu0 %v3516_v3  ;;  %1001 = vmatpush1.bf16.msra.mxu1 %v3518_v4  ;;  %v3581_v62 = vcombine.high %v127_v55, %v131_v57  ;;  %v3583_v63 = vcombine.high %v128_v58, %v132_v59  ;;  %v126_v3 = vld [vmem:[%s6050_s1 + $0x1f8] sm:$0xff]  ;;  %v3580_v4 = vcombine.low %v127_v55, %v131_v57  ;;  %v4579_v10 = vld [vmem:[%s6051_s0] ss:$8 sps:$4 sm:$0xff]  }
  0x23   :  { %929 = vmatprep.subr.bf16.mxu0 %v3637_v5  ;;  %1002 = vmatprep.subr.bf16.mxu1 %v3639_v6  ;;  %v3582_v5 = vcombine.low %v128_v58, %v132_v59  ;;  %v3577_v6 = vcombine.high %v121_v0, %v125_v1  ;;  %v3579_v7 = vcombine.high %v122_v2, %v126_v3  ;;  %v4661_v48 = vld [vmem:[%s6051_s0 + $0x20] ss:$8 sps:$4 sm:$0xff]   ;;  %v4672_v55 = vld [vmem:[%s6051_s0 + $0x34] ss:$8 sps:$4 sm:$0xff]  }
  0x24   :  { %v74_v57 = vld [vmem:[%s6050_s1 + $0x58] sm:$0xff] }
  0x25   :  { %v78_v58 = vld [vmem:[%s6050_s1 + $0x78] sm:$0xff] }
  0x26   :  { %930 = vmatpush2.bf16.msra.mxu0 %v3636_v11  ;;  %1003 = vmatpush2.bf16.msra.mxu1 %v3638_v12  ;;  %v114_v11 = vld [vmem:[%s6050_s1 + $0x198] sm:$0xff] }
  0x27   :  { %931 = vmatprep.subr.bf16.mxu0 %v3629_v13  ;;  %1004 = vmatprep.subr.bf16.mxu1 %v3631_v14  ;;  %v118_v12 = vld [vmem:[%s6050_s1 + $0x1b8] sm:$0xff]  ;;  %v3576_v13 = vcombine.low %v121_v0, %v125_v1  ;;  %v3578_v14 = vcombine.low %v122_v2, %v126_v3  ;;  %v69_v0 = vld [vmem:[%s6050_s1 + $0x30] sm:$0xff] }
  0x28   :  { %v3571_v16 = vcombine.high %v114_v11, %v118_v12  ;;  %v3570_v23 = vcombine.low %v114_v11, %v118_v12  ;;  %v66_v1 = vld [vmem:[%s6050_s1 + $0x18] sm:$0xff] }
  0x29   :  { %v70_v2 = vld [vmem:[%s6050_s1 + $0x38] sm:$0xff] }
  0x2a   :  { %932 = vmatpush2.bf16.msra.mxu0 %v3628_v19  ;;  %1005 = vmatpush2.bf16.msra.mxu1 %v3630_v20  ;;  %v4596_v19 = vld [vmem:[%s6051_s0 + $0x14] ss:$8 sps:$4 sm:$0xff]   ;;  %v4699_v3 = vld [vmem:[%s6051_s0 + $0x30] ss:$8 sps:$4 sm:$0xff]  }
  0x2b   :  { %933 = vmatprep.subr.bf16.mxu0 %v3621_v21  ;;  %1006 = vmatprep.subr.bf16.mxu1 %v3623_v22  ;;  %v106_v20 = vld [vmem:[%s6050_s1 + $0x158] sm:$0xff]  ;;  %v3568_v22 = vcombine.low %v113_v8, %v117_v9  ;;  %v185_v8 = vld [vmem:[%s6050_s1 + $0x3d0] sm:$0xff] }
  0x2c   :  { %v110_v21 = vld [vmem:[%s6050_s1 + $0x178] sm:$0xff]  ;;  %v189_v9 = vld [vmem:[%s6050_s1 + $0x3f0] sm:$0xff] }
  0x2d   :  { %v3563_v25 = vcombine.high %v106_v20, %v110_v21  ;;  %v3562_v32 = vcombine.low %v106_v20, %v110_v21  ;;  %v186_v11 = vld [vmem:[%s6050_s1 + $0x3d8] sm:$0xff] }
  0x2e   :  { %934 = vmatpush2.bf16.msra.mxu0 %v3620_v27  ;;  %1007 = vmatpush2.bf16.msra.mxu1 %v3622_v28  ;;  %v101_v27 = vld [vmem:[%s6050_s1 + $0x130] sm:$0xff]  ;;  %v98_v28 = vld [vmem:[%s6050_s1 + $0x118] sm:$0xff] }
  0x2f   :  { %935 = vmatprep.subr.bf16.mxu0 %v3613_v29  ;;  %1008 = vmatprep.subr.bf16.mxu1 %v3615_v30  ;;  %v102_v29 = vld [vmem:[%s6050_s1 + $0x138] sm:$0xff]  ;;  %v3553_v33 = vcombine.high %v97_v26, %v101_v27  ;;  %v3552_v40 = vcombine.low %v97_v26, %v101_v27  ;;  %v169_v26 = vld [vmem:[%s6050_s1 + $0x350] sm:$0xff] }
  0x30   :  { %v4623_v30 = vld [vmem:[%s6051_s0 + $0x10] ss:$8 sps:$4 sm:$0xff]   ;;  %v3555_v34 = vcombine.high %v98_v28, %v102_v29  ;;  %v3554_v41 = vcombine.low %v98_v28, %v102_v29  ;;  %v3632_v29 = vcombine.low %v177_v17, %v181_v18 }
  0x31   :  { %v190_v12 = vld [vmem:[%s6050_s1 + $0x3f8] sm:$0xff]  ;;  %v173_v27 = vld [vmem:[%s6050_s1 + $0x370] sm:$0xff] }
  0x32   :  { %936 = vmatpush2.bf16.msra.mxu0 %v3612_v35  ;;  %1009 = vmatpush2.bf16.msra.mxu1 %v3614_v36  ;;  %v89_v35 = vld [vmem:[%s6050_s1 + $0xd0] sm:$0xff]  ;;  %v178_v20 = vld [vmem:[%s6050_s1 + $0x398] sm:$0xff] }
  0x33   :  { %937 = vmatprep.subr.bf16.mxu0 %v3605_v37  ;;  %1010 = vmatprep.subr.bf16.mxu1 %v3607_v38  ;;  %v93_v36 = vld [vmem:[%s6050_s1 + $0xf0] sm:$0xff]  ;;  %v4634_v37 = vld [vmem:[%s6051_s0 + $0x24] ss:$8 sps:$4 sm:$0xff]   ;;  %v90_v38 = vld [vmem:[%s6050_s1 + $0xd8] sm:$0xff] }
  0x34   :  { %v3545_v42 = vcombine.high %v89_v35, %v93_v36  ;;  %v3544_v49 = vcombine.low %v89_v35, %v93_v36  ;;  %v3546_v50 = vcombine.low %v90_v38, %v94_v39  ;;  %v182_v21 = vld [vmem:[%s6050_s1 + $0x3b8] sm:$0xff]  ;;  %v165_v35 = vld [vmem:[%s6050_s1 + $0x330] sm:$0xff] }
  0x35   :  { %v174_v28 = vld [vmem:[%s6050_s1 + $0x378] sm:$0xff] }
  0x36   :  { %938 = vmatpush2.bf16.msra.mxu0 %v3604_v43  ;;  %1011 = vmatpush2.bf16.msra.mxu1 %v3606_v44  ;;  %v3547_v43 = vcombine.high %v90_v38, %v94_v39  ;;  %v81_v44 = vld [vmem:[%s6050_s1 + $0x90] sm:$0xff]  ;;  %v162_v36 = vld [vmem:[%s6050_s1 + $0x318] sm:$0xff]  ;;  %v3624_v39 = vcombine.low %v169_v26, %v173_v27 }
  0x37   :  { %939 = vmatprep.subr.bf16.mxu0 %v3597_v45  ;;  %1012 = vmatprep.subr.bf16.mxu1 %v3599_v46  ;;  %v85_v45 = vld [vmem:[%s6050_s1 + $0xb0] sm:$0xff]  ;;  %v82_v46 = vld [vmem:[%s6050_s1 + $0x98] sm:$0xff] }
  0x38   :  { %v3536_v59 = vcombine.low %v81_v44, %v85_v45  ;;  %v166_v38 = vld [vmem:[%s6050_s1 + $0x338] sm:$0xff] }
  0x3a   :  { %940 = vmatpush2.bf16.msra.mxu0 %v3596_v51  ;;  %1013 = vmatpush2.bf16.msra.mxu1 %v3598_v52  ;;  %v3537_v51 = vcombine.high %v81_v44, %v85_v45  ;;  %v3539_v52 = vcombine.high %v82_v46, %v86_v47  ;;  %v157_v44 = vld [vmem:[%s6050_s1 + $0x2f0] sm:$0xff]  ;;  %v154_v45 = vld [vmem:[%s6050_s1 + $0x2d8] sm:$0xff] }
  0x3b   :  { %941 = vmatprep.subr.bf16.mxu0 %v3589_v53  ;;  %1014 = vmatprep.subr.bf16.mxu1 %v3591_v54  ;;  %v73_v53 = vld [vmem:[%s6050_s1 + $0x50] sm:$0xff] }
  0x3c   :  { %v77_v54 = vld [vmem:[%s6050_s1 + $0x70] sm:$0xff] }
  0x3e   :  { %942 = vmatpush2.bf16.msra.mxu0 %v3588_v60  ;;  %1015 = vmatpush2.bf16.msra.mxu1 %v3590_v61  ;;  %v3538_v60 = vcombine.low %v82_v46, %v86_v47  ;;  %v3529_v61 = vcombine.high %v73_v53, %v77_v54  ;;  %v158_v46 = vld [vmem:[%s6050_s1 + $0x2f8] sm:$0xff] }
  0x3f   :  { %943 = vmatprep.subr.bf16.mxu0 %v3581_v62  ;;  %1016 = vmatprep.subr.bf16.mxu1 %v3583_v63  ;;  %v3531_v62 = vcombine.high %v74_v57, %v78_v58  ;;  %v65_v63 = vld [vmem:[%s6050_s1 + $0x10] sm:$0xff] }
  0x42   :  { %944 = vmatpush2.bf16.msra.mxu0 %v3580_v4  ;;  %1017 = vmatpush2.bf16.msra.mxu1 %v3582_v5  ;;  %v3528_v4 = vcombine.low %v73_v53, %v77_v54  ;;  %v3530_v5 = vcombine.low %v74_v57, %v78_v58  ;;  %v149_v53 = vld [vmem:[%s6050_s1 + $0x2b0] sm:$0xff]  ;;  %v146_v54 = vld [vmem:[%s6050_s1 + $0x298] sm:$0xff] }
  0x43   :  { %1059 = vmatprep.subr.bf16.mxu0 %v3577_v6  ;;  %1132 = vmatprep.subr.bf16.mxu1 %v3579_v7  ;;  %v3521_v6 = vcombine.high %v65_v63, %v69_v0  ;;  %v3523_v7 = vcombine.high %v66_v1, %v70_v2  ;;  %v150_v57 = vld [vmem:[%s6050_s1 + $0x2b8] sm:$0xff] }
  0x45   :  { %946 = vmatmul.mubr.bf16.vlgmr.msra.gmra.mxu0 %v4579_v10  ;;  %1019 = vmatmul.mubr.bf16.vlgmr.msra.gmra.mxu1 %v4579_v10 }
  0x46   :  { %1060 = vmatpush1.bf16.msra.mxu0 %v3576_v13  ;;  %1133 = vmatpush1.bf16.msra.mxu1 %v3578_v14  ;;  %v3520_v13 = vcombine.low %v65_v63, %v69_v0  ;;  %v3522_v14 = vcombine.low %v66_v1, %v70_v2  ;;  %v141_v63 = vld [vmem:[%s6050_s1 + $0x270] sm:$0xff]  ;;  %v138_v0 = vld [vmem:[%s6050_s1 + $0x258] sm:$0xff] }
  0x47   :  { %1061 = vmatprep.subr.bf16.mxu0 %v3569_v15  ;;  %1134 = vmatprep.subr.bf16.mxu1 %v3571_v16  ;;  %v3641_v15 = vcombine.high %v185_v8, %v189_v9  ;;  %v3643_v16 = vcombine.high %v186_v11, %v190_v12  ;;  %v142_v1 = vld [vmem:[%s6050_s1 + $0x278] sm:$0xff] }
  0x48   :  { %955 = vmatprep.mubr.bf16.mxu0 %v4596_v19  ;;  %1028 = vmatprep.mubr.bf16.mxu1 %v4596_v19 }
  0x4a   :  { %1062 = vmatpush1.bf16.msra.mxu0 %v3568_v22  ;;  %1135 = vmatpush1.bf16.msra.mxu1 %v3570_v23  ;;  %v3640_v22 = vcombine.low %v185_v8, %v189_v9  ;;  %v3642_v23 = vcombine.low %v186_v11, %v190_v12  ;;  %v133_v8 = vld [vmem:[%s6050_s1 + $0x230] sm:$0xff]  ;;  %v130_v9 = vld [vmem:[%s6050_s1 + $0x218] sm:$0xff] }
  0x4b   :  { %1063 = vmatprep.subr.bf16.mxu0 %v3561_v24  ;;  %1136 = vmatprep.subr.bf16.mxu1 %v3563_v25  ;;  %v3633_v24 = vcombine.high %v177_v17, %v181_v18  ;;  %v3635_v25 = vcombine.high %v178_v20, %v182_v21  ;;  %v134_v11 = vld [vmem:[%s6050_s1 + $0x238] sm:$0xff]  ;;  %v6062_v18 = vmov 0.0  }
  0x4c   :  { %v3586_v17 = vcombine.low %v130_v9, %v134_v11  ;;  %47 = vst [vmem:[#allocation3 + $0x8] sm:$0x3] %v6062_v18  ;;  %48 = vst [vmem:[#allocation3 + $0x18] sm:$0x3] %v6062_v18 }
  0x4d   :  { %956 = vmatmul.mubr.bf16.gmra.mxu0 %v4623_v30  ;;  %1029 = vmatmul.mubr.bf16.gmra.mxu1 %v4623_v30  ;;  %39 = vst [vmem:[#allocation2 + $0x8] sm:$0x3] %v6062_v18  ;;  %40 = vst [vmem:[#allocation2 + $0x18] sm:$0x3] %v6062_v18 }
  0x4e   :  { %1064 = vmatpush1.bf16.msra.mxu0 %v3560_v31  ;;  %1137 = vmatpush1.bf16.msra.mxu1 %v3562_v32  ;;  %v3634_v31 = vcombine.low %v178_v20, %v182_v21  ;;  %v3625_v32 = vcombine.high %v169_v26, %v173_v27  ;;  %41 = vst [vmem:[#allocation2 + $0x28] sm:$0x3] %v6062_v18  ;;  %42 = vst [vmem:[#allocation2 + $0x38] sm:$0x3] %v6062_v18  ;;  %v4124_v20 = vld [vmem:[%s6052_s3 + $0x164] ss:$8 sps:$4 sm:$0xff]  }
  0x4f   :  { %1065 = vmatprep.subr.bf16.mxu0 %v3553_v33  ;;  %1138 = vmatprep.subr.bf16.mxu1 %v3555_v34  ;;  %v161_v34 = vld [vmem:[%s6050_s1 + $0x310] sm:$0xff]  ;;  %43 = vst [vmem:[#allocation2 + $0x48] sm:$0x3] %v6062_v18  ;;  %44 = vst [vmem:[#allocation2 + $0x58] sm:$0x3] %v6062_v18 }
  0x50   :  { %965 = vmatprep.mubr.bf16.mxu0 %v4634_v37  ;;  %1038 = vmatprep.mubr.bf16.mxu1 %v4634_v37  ;;  %v3616_v47 = vcombine.low %v161_v34, %v165_v35  ;;  %45 = vst [vmem:[#allocation2 + $0x68] sm:$0x3] %v6062_v18  ;;  %46 = vst [vmem:[#allocation2 + $0x78] sm:$0x3] %v6062_v18  ;;  %v4122_v21 = vld [vmem:[%s6052_s3 + $0x160] ss:$8 sps:$4 sm:$0xff]  }
  0x51   :  { %49 = vst [vmem:[#allocation3 + $0x28] sm:$0x3] %v6062_v18  ;;  %50 = vst [vmem:[#allocation3 + $0x38] sm:$0x3] %v6062_v18  ;;  %v4887_v26 = vld [vmem:[%s6052_s3 + $0x44] ss:$8 sps:$4 sm:$0xff]  }
  0x52   :  { %1066 = vmatpush1.bf16.msra.mxu0 %v3552_v40  ;;  %1139 = vmatpush1.bf16.msra.mxu1 %v3554_v41  ;;  %v3617_v41 = vcombine.high %v161_v34, %v165_v35  ;;  %51 = vst [vmem:[#allocation3 + $0x48] sm:$0x3] %v6062_v18  ;;  %52 = vst [vmem:[#allocation3 + $0x58] sm:$0x3] %v6062_v18  ;;  %v4896_v27 = vld [vmem:[%s6052_s3 + $0x40] ss:$8 sps:$4 sm:$0xff]   ;;  %v193_v35 = vlaneseq }
  0x53   :  { %1067 = vmatprep.subr.bf16.mxu0 %v3545_v42  ;;  %1140 = vmatprep.subr.bf16.mxu1 %v3547_v43  ;;  %v3619_v42 = vcombine.high %v162_v36, %v166_v38  ;;  %v153_v43 = vld [vmem:[%s6050_s1 + $0x2d0] sm:$0xff]  ;;  %53 = vst [vmem:[#allocation3 + $0x68] sm:$0x3] %v6062_v18  ;;  %54 = vst [vmem:[#allocation3 + $0x78] sm:$0x3] %v6062_v18 }
  0x54   :  { %v3608_v58 = vcombine.low %v153_v43, %v157_v44  ;;  %v4935_v34 = vld [vmem:[%s6052_s3 + $0x124] ss:$8 sps:$4 sm:$0xff]   ;;  %v5219_v18 = vld [vmem:[%s6052_s3 + $0x180] ss:$8 sps:$4 sm:$0xff]  }
  0x55   :  { %966 = vmatmul.mubr.bf16.gmra.mxu0 %v4661_v48  ;;  %1039 = vmatmul.mubr.bf16.gmra.mxu1 %v4661_v48  ;;  %6120 = vst [vmem:[#allocation29_spill] sm:$0xff] %v5219_v18 }
  0x56   :  { %1068 = vmatpush1.bf16.msra.mxu0 %v3544_v49  ;;  %1141 = vmatpush1.bf16.msra.mxu1 %v3546_v50  ;;  %v3618_v49 = vcombine.low %v162_v36, %v166_v38  ;;  %v3609_v50 = vcombine.high %v153_v43, %v157_v44  ;;  %v4941_v36 = vld [vmem:[%s6052_s3 + $0x20] ss:$8 sps:$4 sm:$0xff]   ;;  %v4973_v43 = vld [vmem:[%s6052_s3 + $0x10] ss:$8 sps:$4 sm:$0xff]  }
  0x57   :  { %1069 = vmatprep.subr.bf16.mxu0 %v3537_v51  ;;  %1142 = vmatprep.subr.bf16.mxu1 %v3539_v52  ;;  %v3611_v51 = vcombine.high %v154_v45, %v158_v46  ;;  %v145_v52 = vld [vmem:[%s6050_s1 + $0x290] sm:$0xff]  ;;  %v4946_v38 = vld [vmem:[%s6052_s3 + $0x120] ss:$8 sps:$4 sm:$0xff]  }
  0x58   :  { %975 = vmatprep.mubr.bf16.mxu0 %v4672_v55  ;;  %1048 = vmatprep.mubr.bf16.mxu1 %v4672_v55  ;;  %v3600_v2 = vcombine.low %v145_v52, %v149_v53  ;;  %v4978_v44 = vld [vmem:[%s6052_s3 + $0x110] ss:$8 sps:$4 sm:$0xff]  }
  0x5a   :  { %1070 = vmatpush1.bf16.msra.mxu0 %v3536_v59  ;;  %1143 = vmatpush1.bf16.msra.mxu1 %v3538_v60  ;;  %v3610_v59 = vcombine.low %v154_v45, %v158_v46  ;;  %v3601_v60 = vcombine.high %v145_v52, %v149_v53  ;;  %v4985_v45 = vld [vmem:[%s6052_s3 + $0x4] ss:$8 sps:$4 sm:$0xff]   ;;  %v5016_v53 = vld [vmem:[%s6052_s3 + $0x1f4] ss:$8 sps:$4 sm:$0xff]  }
  0x5b   :  { %1071 = vmatprep.subr.bf16.mxu0 %v3529_v61  ;;  %1144 = vmatprep.subr.bf16.mxu1 %v3531_v62  ;;  %v3603_v61 = vcombine.high %v146_v54, %v150_v57  ;;  %v137_v62 = vld [vmem:[%s6050_s1 + $0x250] sm:$0xff]  ;;  %v4990_v46 = vld [vmem:[%s6052_s3 + $0x104] ss:$8 sps:$4 sm:$0xff]   ;;  %6099 = vst [vmem:[#allocation8_spill] sm:$0xff] %v5016_v53 }
  0x5c   :  { %v3592_v12 = vcombine.low %v137_v62, %v141_v63  ;;  %6097 = vst [vmem:[#allocation6_spill] sm:$0xff] %v4990_v46 }
  0x5d   :  { %976 = vmatmul.mubr.bf16.gmra.mxu0 %v4699_v3  ;;  %1049 = vmatmul.mubr.bf16.gmra.mxu1 %v4699_v3 }
  0x5e   :  { %1072 = vmatpush1.bf16.msra.mxu0 %v3528_v4  ;;  %1145 = vmatpush1.bf16.msra.mxu1 %v3530_v5  ;;  %v3602_v4 = vcombine.low %v146_v54, %v150_v57  ;;  %v3593_v5 = vcombine.high %v137_v62, %v141_v63  ;;  %v5024_v54 = vld [vmem:[%s6052_s3 + $0xf0] ss:$8 sps:$4 sm:$0xff]   ;;  %v5062_v62 = vld [vmem:[%s6052_s3 + $0xd4] ss:$8 sps:$4 sm:$0xff]  }
  0x5f   :  { %1073 = vmatprep.subr.bf16.mxu0 %v3521_v6  ;;  %1146 = vmatprep.subr.bf16.mxu1 %v3523_v7  ;;  %v3595_v6 = vcombine.high %v138_v0, %v142_v1  ;;  %v129_v7 = vld [vmem:[%s6050_s1 + $0x210] sm:$0xff] }
  0x60   :  { %1091 = vmatprep.mubr.bf16.mxu0 %v4452_v56  ;;  %1164 = vmatprep.mubr.bf16.mxu1 %v4452_v56  ;;  %v170_v56 = vld [vmem:[%s6050_s1 + $0x358] sm:$0xff] }
  0x61   :  { %v3627_v33 = vcombine.high %v170_v56, %v174_v28  ;;  %v3626_v40 = vcombine.low %v170_v56, %v174_v28  ;;  %v4902_v56 = vld [vmem:[%s6052_s3 + $0x140] ss:$8 sps:$4 sm:$0xff]   ;;  %v4907_v28 = vld [vmem:[%s6052_s3 + $0x34] ss:$8 sps:$4 sm:$0xff]   ;;  %v5029_v57 = vld [vmem:[%s6052_s3 + $0x1f0] ss:$8 sps:$4 sm:$0xff]  }
  0x62   :  { %1074 = vmatpush1.bf16.msra.mxu0 %v3520_v13  ;;  %1147 = vmatpush1.bf16.msra.mxu1 %v3522_v14  ;;  %v3594_v13 = vcombine.low %v138_v0, %v142_v1  ;;  %v3585_v14 = vcombine.high %v129_v7, %v133_v8  ;;  %6100 = vst [vmem:[#allocation9_spill] sm:$0xff] %v5029_v57  ;;  %v5068_v63 = vld [vmem:[%s6052_s3 + $0xd0] ss:$8 sps:$4 sm:$0xff]   ;;  %v5075_v0 = vld [vmem:[%s6052_s3 + $0xc4] ss:$8 sps:$4 sm:$0xff]  }
  0x63   :  { %1075 = vmatprep.subr.bf16.mxu0 %v3641_v15  ;;  %1148 = vmatprep.subr.bf16.mxu1 %v3643_v16  ;;  %v3587_v15 = vcombine.high %v130_v9, %v134_v11  ;;  %v3584_v16 = vcombine.low %v129_v7, %v133_v8  ;;  %v5081_v1 = vld [vmem:[%s6052_s3 + $0xc0] ss:$8 sps:$4 sm:$0xff]   ;;  %v5098_v8 = vld [vmem:[%s6052_s3 + $0xb4] ss:$8 sps:$4 sm:$0xff]   ;;  %v5103_v9 = vld [vmem:[%s6052_s3 + $0x1d0] ss:$8 sps:$4 sm:$0xff]  }
  0x64   :  { %6104 = vst [vmem:[#allocation13_spill] sm:$0xff] %v5103_v9  ;;  %v5109_v11 = vld [vmem:[%s6052_s3 + $0xb0] ss:$8 sps:$4 sm:$0xff]  }
  0x66   :  { %1076 = vmatpush2.bf16.msra.mxu0 %v3640_v22  ;;  %1149 = vmatpush2.bf16.msra.mxu1 %v3642_v23  ;;  %v4867_v22 = vld [vmem:[%s6052_s3 + $0x54] ss:$8 sps:$4 sm:$0xff]  }
  0x67   :  { %1077 = vmatprep.subr.bf16.mxu0 %v3633_v24  ;;  %1150 = vmatprep.subr.bf16.mxu1 %v3635_v25  ;;  %v4130_v23 = vld [vmem:[%s6052_s3 + $0x154] ss:$8 sps:$4 sm:$0xff]   ;;  %v4878_v24 = vld [vmem:[%s6052_s3 + $0x50] ss:$8 sps:$4 sm:$0xff]  }
  0x68   :  { %v4128_v25 = vld [vmem:[%s6052_s3 + $0x150] ss:$8 sps:$4 sm:$0xff]  }
  0x6a   :  { %1078 = vmatpush2.bf16.msra.mxu0 %v3632_v29  ;;  %1151 = vmatpush2.bf16.msra.mxu1 %v3634_v31  ;;  %v4912_v29 = vld [vmem:[%s6052_s3 + $0x134] ss:$8 sps:$4 sm:$0xff]   ;;  %v4917_v31 = vld [vmem:[%s6052_s3 + $0x30] ss:$8 sps:$4 sm:$0xff]  }
  0x6b   :  { %1079 = vmatprep.subr.bf16.mxu0 %v3625_v32  ;;  %1152 = vmatprep.subr.bf16.mxu1 %v3627_v33  ;;  %v4923_v32 = vld [vmem:[%s6052_s3 + $0x130] ss:$8 sps:$4 sm:$0xff]   ;;  %v4930_v33 = vld [vmem:[%s6052_s3 + $0x24] ss:$8 sps:$4 sm:$0xff]  }
  0x6e   :  { %1080 = vmatpush2.bf16.msra.mxu0 %v3624_v39  ;;  %1153 = vmatpush2.bf16.msra.mxu1 %v3626_v40  ;;  %v4951_v39 = vld [vmem:[%s6052_s3 + $0x14] ss:$8 sps:$4 sm:$0xff]  }
  0x6f   :  { %1081 = vmatprep.subr.bf16.mxu0 %v3617_v41  ;;  %1154 = vmatprep.subr.bf16.mxu1 %v3619_v42  ;;  %v4957_v40 = vld [vmem:[%s6052_s3 + $0x114] ss:$8 sps:$4 sm:$0xff]   ;;  %v4962_v41 = vshrl.u32 %v193_v35, 7  ;;  %v4967_v42 = vld [vmem:[%s6053_s2] sm:$0xff] }
  0x70   :  { %v5187_v35 = vld [vmem:[%s6052_s3 + $0x80] ss:$8 sps:$4 sm:$0xff]  }
  0x71   :  { %6096 = vst [vmem:[#allocation5_spill] sm:$0xff] %v4962_v41  ;;  %v223_v7 = vsub.s32 7, %v4962_v41  ;;  %6115 = vst [vmem:[#allocation24_spill] sm:$0xff] %v5187_v35 }
  0x72   :  { %1082 = vmatpush2.bf16.msra.mxu0 %v3616_v47  ;;  %1155 = vmatpush2.bf16.msra.mxu1 %v3618_v49  ;;  %v211_v47 = vsub.s32 4, %v4962_v41  ;;  %v4997_v49 = vld [vmem:[%s6052_s3] ss:$8 sps:$4 sm:$0xff]  }
  0x73   :  { %1083 = vmatprep.subr.bf16.mxu0 %v3609_v50  ;;  %1156 = vmatprep.subr.bf16.mxu1 %v3611_v51  ;;  %v5002_v50 = vld [vmem:[%s6052_s3 + $0x100] ss:$8 sps:$4 sm:$0xff]   ;;  %v5007_v51 = vld [vmem:[%s6052_s3 + $0xf4] ss:$8 sps:$4 sm:$0xff]  }
  0x74   :  { %6098 = vst [vmem:[#allocation7_spill] sm:$0xff] %v5002_v50  ;;  %v5010_v52 = vrot.slane %v4967_v42, %v211_v47  ;;  %v5195_v47 = vld [vmem:[%s6052_s3 + $0x194] ss:$8 sps:$4 sm:$0xff]  }
  0x75   :  { %6116 = vst [vmem:[#allocation25_spill] sm:$0xff] %v5195_v47 }
  0x76   :  { %1084 = vmatpush2.bf16.msra.mxu0 %v3608_v58  ;;  %1157 = vmatpush2.bf16.msra.mxu1 %v3610_v59  ;;  %v5034_v58 = vld [vmem:[%s6052_s3 + $0xe4] ss:$8 sps:$4 sm:$0xff]  }
  0x77   :  { %1085 = vmatprep.subr.bf16.mxu0 %v3601_v60  ;;  %1158 = vmatprep.subr.bf16.mxu1 %v3603_v61  ;;  %v5040_v59 = vld [vmem:[%s6052_s3 + $0x1e4] ss:$8 sps:$4 sm:$0xff]   ;;  %v5048_v60 = vld [vmem:[%s6052_s3 + $0xe0] ss:$8 sps:$4 sm:$0xff]  }
  0x78   :  { %6101 = vst [vmem:[#allocation10_spill] sm:$0xff] %v5040_v59  ;;  %v5053_v61 = vld [vmem:[%s6052_s3 + $0x1e0] ss:$8 sps:$4 sm:$0xff]  }
  0x79   :  { %6102 = vst [vmem:[#allocation11_spill] sm:$0xff] %v5053_v61 }
  0x7a   :  { %1086 = vmatpush2.bf16.msra.mxu0 %v3600_v2  ;;  %1159 = vmatpush2.bf16.msra.mxu1 %v3602_v4  ;;  %v219_v2 = vsub.s32 6, %v4962_v41 }
  0x7b   :  { %1087 = vmatprep.subr.bf16.mxu0 %v3593_v5  ;;  %1160 = vmatprep.subr.bf16.mxu1 %v3595_v6  ;;  %v5091_v5 = vld [vmem:[%s6052_s3 + $0x1d4] ss:$8 sps:$4 sm:$0xff]   ;;  %v215_v6 = vsub.s32 5, %v4962_v41 }
  0x7c   :  { %v5086_v4 = vrot.slane %v4967_v42, %v219_v2  ;;  %6103 = vst [vmem:[#allocation12_spill] sm:$0xff] %v5091_v5  ;;  %v5200_v2 = vld [vmem:[%s6052_s3 + $0x274] ss:$8 sps:$4 sm:$0xff]  }
  0x7d   :  { %6117 = vst [vmem:[#allocation26_spill] sm:$0xff] %v5200_v2 }
  0x7e   :  { %1088 = vmatpush2.bf16.msra.mxu0 %v3592_v12  ;;  %1161 = vmatpush2.bf16.msra.mxu1 %v3594_v13  ;;  %v5113_v12 = vrot.slane %v4967_v42, %v215_v6  ;;  %v5116_v13 = vrot.slane %v4967_v42, %v223_v7  ;;  %v5205_v6 = vld [vmem:[%s6052_s3 + $0x190] ss:$8 sps:$4 sm:$0xff]   ;;  %v5214_v7 = vld [vmem:[%s6052_s3 + $0x184] ss:$8 sps:$4 sm:$0xff]  }
  0x7f   :  { %1089 = vmatprep.subr.bf16.mxu0 %v3585_v14  ;;  %1162 = vmatprep.subr.bf16.mxu1 %v3587_v15  ;;  %v5123_v14 = vld [vmem:[%s6052_s3 + $0x1c4] ss:$8 sps:$4 sm:$0xff]   ;;  %6118 = vst [vmem:[#allocation27_spill] sm:$0xff] %v5205_v6  ;;  %6119 = vst [vmem:[#allocation28_spill] sm:$0xff] %v5214_v7 }
  0x80   :  { %6105 = vst [vmem:[#allocation14_spill] sm:$0xff] %v5123_v14  ;;  %v5128_v15 = vld [vmem:[%s6052_s3 + $0xa4] ss:$8 sps:$4 sm:$0xff]  }
  0x82   :  { %1090 = vmatpush2.bf16.msra.mxu0 %v3584_v16  ;;  %1163 = vmatpush2.bf16.msra.mxu1 %v3586_v17  ;;  %v5133_v16 = vld [vmem:[%s6052_s3 + $0x1c0] ss:$8 sps:$4 sm:$0xff]  }
  0x83   :  { %6106 = vst [vmem:[#allocation15_spill] sm:$0xff] %v5133_v16  ;;  %v5139_v17 = vld [vmem:[%s6052_s3 + $0xa0] ss:$8 sps:$4 sm:$0xff]  }
  0x84   :  { %6107 = vst [vmem:[#allocation16_spill] sm:$0xff] %v5139_v17 }
  0x85   :  { %1092 = vmatmul.mubr.bf16.vlgmr.msra.gmra.mxu0 %v4579_v10  ;;  %1165 = vmatmul.mubr.bf16.vlgmr.msra.gmra.mxu1 %v4579_v10  ;;  %v4829_v10 = vld [vmem:[%s6052_s3 + $0x70] ss:$8 sps:$4 sm:$0xff]  }
  0x86   :  { %1101 = vmatprep.mubr.bf16.mxu0 %v4596_v19  ;;  %1174 = vmatprep.mubr.bf16.mxu1 %v4596_v19  ;;  %v4836_v19 = vld [vmem:[%s6052_s3 + $0x74] ss:$8 sps:$4 sm:$0xff]  }
  0x87   :  { %2009 = vmatprep.subr.bf16.mxu0 %v4836_v19 }
  0x88   :  { %2010 = vmatpush1.bf16.msra.mxu0 %v4829_v10 }
  0x8d   :  { %1102 = vmatmul.mubr.bf16.gmra.mxu0 %v4623_v30  ;;  %1175 = vmatmul.mubr.bf16.gmra.mxu1 %v4623_v30  ;;  %v4116_v30 = vld [vmem:[%s6052_s3 + $0x170] ss:$8 sps:$4 sm:$0xff]  }
  0x8e   :  { %1111 = vmatprep.mubr.bf16.mxu0 %v4634_v37  ;;  %1184 = vmatprep.mubr.bf16.mxu1 %v4634_v37  ;;  %v4118_v37 = vld [vmem:[%s6052_s3 + $0x174] ss:$8 sps:$4 sm:$0xff]  }
  0x8f   :  { %2082 = vmatprep.subr.bf16.mxu1 %v4118_v37  ;;  %v5152_v37 = vld [vmem:[%s6052_s3 + $0x94] ss:$8 sps:$4 sm:$0xff]  }
  0x90   :  { %2083 = vmatpush1.bf16.msra.mxu1 %v4116_v30  ;;  %v5147_v30 = vld [vmem:[%s6052_s3 + $0x1b4] ss:$8 sps:$4 sm:$0xff]   ;;  %6109 = vst [vmem:[#allocation18_spill] sm:$0xff] %v5152_v37 }
  0x91   :  { %2084 = vmatprep.subr.bf16.mxu1 %v4124_v20  ;;  %6108 = vst [vmem:[#allocation17_spill] sm:$0xff] %v5147_v30  ;;  %v5157_v20 = vld [vmem:[%s6052_s3 + $0x1b0] ss:$8 sps:$4 sm:$0xff]  }
  0x92   :  { %6110 = vst [vmem:[#allocation19_spill] sm:$0xff] %v5157_v20 }
  0x94   :  { %2085 = vmatpush1.bf16.msra.mxu1 %v4122_v21  ;;  %v5163_v21 = vld [vmem:[%s6052_s3 + $0x90] ss:$8 sps:$4 sm:$0xff]  }
  0x95   :  { %1112 = vmatmul.mubr.bf16.gmra.mxu0 %v4661_v48  ;;  %1185 = vmatmul.mubr.bf16.gmra.mxu1 %v4661_v48  ;;  %v4849_v48 = vld [vmem:[%s6052_s3 + $0x64] ss:$8 sps:$4 sm:$0xff]   ;;  %6111 = vst [vmem:[#allocation20_spill] sm:$0xff] %v5163_v21 }
  0x96   :  { %1121 = vmatprep.mubr.bf16.mxu0 %v4672_v55  ;;  %1194 = vmatprep.mubr.bf16.mxu1 %v4672_v55  ;;  %v4855_v55 = vld [vmem:[%s6052_s3 + $0x60] ss:$8 sps:$4 sm:$0xff]  }
  0x97   :  { %2011 = vmatprep.subr.bf16.mxu0 %v4849_v48  ;;  %2086 = vmatprep.subr.bf16.mxu1 %v4130_v23  ;;  %v5171_v23 = vld [vmem:[%s6052_s3 + $0x1a4] ss:$8 sps:$4 sm:$0xff]  }
  0x98   :  { %2012 = vmatpush1.bf16.msra.mxu0 %v4855_v55  ;;  %2087 = vmatpush1.bf16.msra.mxu1 %v4128_v25  ;;  %6112 = vst [vmem:[#allocation21_spill] sm:$0xff] %v5171_v23  ;;  %v5176_v25 = vld [vmem:[%s6052_s3 + $0x84] ss:$8 sps:$4 sm:$0xff]  }
  0x99   :  { %2013 = vmatprep.subr.bf16.mxu0 %v4867_v22  ;;  %6113 = vst [vmem:[#allocation22_spill] sm:$0xff] %v5176_v25 }
  0x9c   :  { %2014 = vmatpush1.bf16.msra.mxu0 %v4878_v24 }
  0x9d   :  { %1122 = vmatmul.mubr.bf16.gmra.mxu0 %v4699_v3  ;;  %1195 = vmatmul.mubr.bf16.gmra.mxu1 %v4699_v3  ;;  %v4136_v3 = vld [vmem:[%s6052_s3 + $0x144] ss:$8 sps:$4 sm:$0xff]  }
  0x9e   :  { %2015 = vmatprep.subr.bf16.mxu0 %v4887_v26  ;;  %2088 = vmatprep.subr.bf16.mxu1 %v4136_v3  ;;  %v5181_v3 = vld [vmem:[%s6052_s3 + $0x1a0] ss:$8 sps:$4 sm:$0xff]  }
  0x9f   :  { %2089 = vmatpush1.bf16.msra.mxu1 %v4902_v56  ;;  %6114 = vst [vmem:[#allocation23_spill] sm:$0xff] %v5181_v3 }
  0xa0   :  { %2016 = vmatpush1.bf16.msra.mxu0 %v4896_v27  ;;  %2090 = vmatprep.subr.bf16.mxu1 %v4912_v29 }
  0xa1   :  { %2017 = vmatprep.subr.bf16.mxu0 %v4907_v28 }
  0xa3   :  { %2091 = vmatpush1.bf16.msra.mxu1 %v4923_v32 }
  0xa4   :  { %2018 = vmatpush1.bf16.msra.mxu0 %v4917_v31  ;;  %2092 = vmatprep.subr.bf16.mxu1 %v4935_v34 }
  0xa5   :  { %2019 = vmatprep.subr.bf16.mxu0 %v4930_v33 }
  0xa7   :  { %2093 = vmatpush1.bf16.msra.mxu1 %v4946_v38 }
  0xa8   :  { %2020 = vmatpush1.bf16.msra.mxu0 %v4941_v36  ;;  %2094 = vmatprep.subr.bf16.mxu1 %v4957_v40 }
  0xa9   :  { %2021 = vmatprep.subr.bf16.mxu0 %v4951_v39 }
  0xab   :  { %2095 = vmatpush1.bf16.msra.mxu1 %v4978_v44 }
  0xac   :  { %2022 = vmatpush1.bf16.msra.mxu0 %v4973_v43  ;;  %2096 = vmatprep.subr.bf16.mxu1 %v4990_v46 }
  0xad   :  { %2023 = vmatprep.subr.bf16.mxu0 %v4985_v45 }
  0xaf   :  { %2097 = vmatpush1.bf16.msra.mxu1 %v5002_v50 }
  0xb0   :  { %2024 = vmatpush1.bf16.msra.mxu0 %v4997_v49  ;;  %2098 = vmatprep.subr.bf16.mxu1 %v5016_v53 }
  0xb1   :  { %2025 = vmatprep.subr.bf16.mxu0 %v5007_v51 }
  0xb3   :  { %2099 = vmatpush2.bf16.msra.mxu1 %v5029_v57 }
  0xb4   :  { %2026 = vmatpush2.bf16.msra.mxu0 %v5024_v54  ;;  %2100 = vmatprep.subr.bf16.mxu1 %v5040_v59 }
  0xb5   :  { %2027 = vmatprep.subr.bf16.mxu0 %v5034_v58 }
  0xb7   :  { %2101 = vmatpush2.bf16.msra.mxu1 %v5053_v61 }
  0xb8   :  { %2028 = vmatpush2.bf16.msra.mxu0 %v5048_v60  ;;  %2102 = vmatprep.subr.bf16.mxu1 %v5091_v5 }
  0xb9   :  { %2029 = vmatprep.subr.bf16.mxu0 %v5062_v62 }
  0xbb   :  { %2103 = vmatpush2.bf16.msra.mxu1 %v5103_v9 }
  0xbc   :  { %2030 = vmatpush2.bf16.msra.mxu0 %v5068_v63  ;;  %2104 = vmatprep.subr.bf16.mxu1 %v5123_v14 }
  0xbd   :  { %2031 = vmatprep.subr.bf16.mxu0 %v5075_v0 }
  0xbf   :  { %2105 = vmatpush2.bf16.msra.mxu1 %v5133_v16 }
  0xc0   :  { %2032 = vmatpush2.bf16.msra.mxu0 %v5081_v1  ;;  %2106 = vmatprep.subr.bf16.mxu1 %v5147_v30 }
  0xc1   :  { %2033 = vmatprep.subr.bf16.mxu0 %v5098_v8 }
  0xc3   :  { %2107 = vmatpush2.bf16.msra.mxu1 %v5157_v20 }
  0xc4   :  { %2034 = vmatpush2.bf16.msra.mxu0 %v5109_v11  ;;  %2108 = vmatprep.subr.bf16.mxu1 %v5171_v23  ;;  %v207_v23 = vsub.s32 3, %v4962_v41 }
  0xc5   :  { %2035 = vmatprep.subr.bf16.mxu0 %v5128_v15 }
  0xc7   :  { %2109 = vmatpush2.bf16.msra.mxu1 %v5181_v3  ;;  %v6082_v3 = vsub.s32 1, %v4962_v41 }
  0xc8   :  { %2036 = vmatpush2.bf16.msra.mxu0 %v5139_v17  ;;  %2110 = vmatprep.subr.bf16.mxu1 %v5195_v47  ;;  %v6076_v47 = vsub.s32 0, %v4962_v41 }
  0xc9   :  { %2037 = vmatprep.subr.bf16.mxu0 %v5152_v37 }
  0xca   :  { %v5231_v20 = vrot.slane %v4967_v42, %v6076_v47 }
  0xcb   :  { %2111 = vmatpush2.bf16.msra.mxu1 %v5205_v6  ;;  %v203_v6 = vsub.s32 2, %v4962_v41 }
  0xcc   :  { %2038 = vmatpush2.bf16.msra.mxu0 %v5163_v21  ;;  %2112 = vmatprep.subr.bf16.mxu1 %v5214_v7  ;;  %v5242_v7 = vrot.slane %v4967_v42, %v207_v23 }
  0xcd   :  { %2039 = vmatprep.subr.bf16.mxu0 %v5176_v25  ;;  %v5234_v30 = vrot.slane %v4967_v42, %v203_v6 }
  0xcf   :  { %2113 = vmatpush2.bf16.msra.mxu1 %v5219_v18 }
  0xd0   :  { %2040 = vmatpush2.bf16.msra.mxu0 %v5187_v35  ;;  %2236 = vmatprep.subr.bf16.mxu1 %v4836_v19  ;;  %v5239_v19 = vrot.slane %v4967_v42, %v6082_v3 }
  0xd1   :  { %2155 = vmatprep.subr.bf16.mxu0 %v5200_v2 }
 0x105   :  { %v947_v18 = vpop.f32.mrf.mxu0  ;;  %v1020_v14 = vpop.f32.mrf.mxu1 }
 0x106   :  { %v948_v16 = vadd.f32 %v947_v18, %v5231_v20  ;;  %v1021_v9 = vadd.f32 %v1020_v14, %v5234_v30 }
 0x107   :  { %v949_v5 = vpop.f32.mrf.mxu0  ;;  %v1022_v61 = vpop.f32.mrf.mxu1 }
 0x108   :  { %v950_v47 = vadd.f32 %v949_v5, %v5239_v19  ;;  %v1205_v6 = vmax.f32 %v948_v16, %v1021_v9  ;;  %v1023_v2 = vadd.f32 %v1022_v61, %v5242_v7 }
 0x109   :  { %v951_v41 = vpop.f32.mrf.mxu0  ;;  %v1024_v35 = vpop.f32.mrf.mxu1 }
 0x10a   :  { %v1206_v3 = vmax.f32 %v950_v47, %v1023_v2  ;;  %v952_v59 = vadd.f32 %v951_v41, %v5231_v20  ;;  %v1025_v42 = vadd.f32 %v1024_v35, %v5234_v30 }
 0x10b   :  { %v953_v23 = vpop.f32.mrf.mxu0  ;;  %v1026_v57 = vpop.f32.mrf.mxu1 }
 0x10c   :  { %v954_v18 = vadd.f32 %v953_v23, %v5239_v19  ;;  %v1237_v25 = vmax.f32 %v1205_v6, %v1206_v3  ;;  %v1027_v14 = vadd.f32 %v1026_v57, %v5242_v7  ;;  %v1207_v61 = vmax.f32 %v952_v59, %v1025_v42 }
 0x10d   :  { %v957_v21 = vpop.f32.mrf.mxu0  ;;  %v1030_v9 = vpop.f32.mrf.mxu1 }
 0x10e   :  { %v958_v5 = vadd.f32 %v957_v21, %v5231_v20  ;;  %v1245_v16 = vmax.f32 %v1237_v25, 0.0  ;;  %v1208_v53 = vmax.f32 %v954_v18, %v1027_v14  ;;  %v1031_v47 = vadd.f32 %v1030_v9, %v5234_v30 }
 0x10f   :  { %v959_v2 = vpop.f32.mrf.mxu0  ;;  %v1032_v35 = vpop.f32.mrf.mxu1 }
 0x110   :  { %v960_v41 = vadd.f32 %v959_v2, %v5239_v19  ;;  %1269 = vst [vmem:[#allocation2] sm:$0xff] %v1245_v16  ;;  %v1238_v50 = vmax.f32 %v1207_v61, %v1208_v53  ;;  %v1209_v23 = vmax.f32 %v958_v5, %v1031_v47  ;;  %v1033_v3 = vadd.f32 %v1032_v35, %v5242_v7 }
 0x111   :  { %v961_v6 = vpop.f32.mrf.mxu0  ;;  %v1034_v37 = vpop.f32.mrf.mxu1 }
 0x112   :  { %v962_v57 = vadd.f32 %v961_v6, %v5231_v20  ;;  %v1246_v21 = vmax.f32 %v1238_v50, 0.0  ;;  %v1210_v17 = vmax.f32 %v960_v41, %v1033_v3  ;;  %v1035_v59 = vadd.f32 %v1034_v37, %v5234_v30 }
 0x113   :  { %v963_v25 = vpop.f32.mrf.mxu0  ;;  %v1036_v18 = vpop.f32.mrf.mxu1 }
 0x114   :  { %v964_v42 = vadd.f32 %v963_v25, %v5239_v19  ;;  %1270 = vst [vmem:[#allocation2 + $0x10] sm:$0xff] %v1246_v21  ;;  %v1239_v14 = vmax.f32 %v1209_v23, %v1210_v17  ;;  %v1211_v9 = vmax.f32 %v962_v57, %v1035_v59  ;;  %v1037_v53 = vadd.f32 %v1036_v18, %v5242_v7 }
 0x115   :  { %v967_v5 = vpop.f32.mrf.mxu0  ;;  %v5260_v61 = vpack.c.bf16 %v1246_v21, %v1245_v16  ;;  %v1040_v2 = vpop.f32.mrf.mxu1 }
 0x116   :  { %v968_v47 = vadd.f32 %v967_v5, %v5231_v20  ;;  %v1247_v35 = vmax.f32 %v1239_v14, 0.0  ;;  %v1212_v50 = vmax.f32 %v964_v42, %v1037_v53  ;;  %v1041_v41 = vadd.f32 %v1040_v2, %v5234_v30 }
 0x117   :  { %v969_v37 = vpop.f32.mrf.mxu0  ;;  %v1042_v6 = vpop.f32.mrf.mxu1 }
 0x118   :  { %v970_v3 = vadd.f32 %v969_v37, %v5239_v19  ;;  %1271 = vst [vmem:[#allocation2 + $0x20] sm:$0xff] %v1247_v35  ;;  %v1240_v25 = vmax.f32 %v1211_v9, %v1212_v50  ;;  %v1213_v17 = vmax.f32 %v968_v47, %v1041_v41  ;;  %v1043_v23 = vadd.f32 %v1042_v6, %v5242_v7 }
 0x119   :  { %v971_v57 = vpop.f32.mrf.mxu0  ;;  %v1044_v21 = vpop.f32.mrf.mxu1 }
 0x11a   :  { %v972_v16 = vadd.f32 %v971_v57, %v5231_v20  ;;  %v1248_v59 = vmax.f32 %v1240_v25, 0.0  ;;  %v1214_v18 = vmax.f32 %v970_v3, %v1043_v23  ;;  %v1045_v14 = vadd.f32 %v1044_v21, %v5234_v30 }
 0x11b   :  { %v973_v42 = vpop.f32.mrf.mxu0  ;;  %v1046_v5 = vpop.f32.mrf.mxu1 }
 0x11c   :  { %v974_v53 = vadd.f32 %v973_v42, %v5239_v19  ;;  %1272 = vst [vmem:[#allocation2 + $0x30] sm:$0xff] %v1248_v59  ;;  %v1241_v2 = vmax.f32 %v1213_v17, %v1214_v18  ;;  %v1215_v37 = vmax.f32 %v972_v16, %v1045_v14  ;;  %v1047_v9 = vadd.f32 %v1046_v5, %v5242_v7 }
 0x11d   :  { %v977_v47 = vpop.f32.mrf.mxu0  ;;  %v1050_v41 = vpop.f32.mrf.mxu1  ;;  %v5271_v6 = vpack.c.bf16 %v1248_v59, %v1247_v35 }
 0x11e   :  { %v978_v50 = vadd.f32 %v977_v47, %v5231_v20  ;;  %v1249_v57 = vmax.f32 %v1241_v2, 0.0  ;;  %v1216_v25 = vmax.f32 %v974_v53, %v1047_v9  ;;  %v1051_v3 = vadd.f32 %v1050_v41, %v5234_v30 }
 0x11f   :  { %v979_v23 = vpop.f32.mrf.mxu0  ;;  %v1052_v42 = vpop.f32.mrf.mxu1 }
 0x120   :  { %v980_v21 = vadd.f32 %v979_v23, %v5239_v19  ;;  %1273 = vst [vmem:[#allocation2 + $0x40] sm:$0xff] %v1249_v57  ;;  %v1242_v46 = vmax.f32 %v1215_v37, %v1216_v25  ;;  %v1217_v17 = vmax.f32 %v978_v50, %v1051_v3  ;;  %v1053_v16 = vadd.f32 %v1052_v42, %v5242_v7 }
 0x121   :  { %v981_v18 = vpop.f32.mrf.mxu0  ;;  %v1054_v5 = vpop.f32.mrf.mxu1 }
 0x122   :  { %v982_v14 = vadd.f32 %v981_v18, %v5231_v20  ;;  %v1250_v47 = vmax.f32 %v1242_v46, 0.0  ;;  %v1218_v35 = vmax.f32 %v980_v21, %v1053_v16  ;;  %v1055_v59 = vadd.f32 %v1054_v5, %v5234_v30 }
 0x123   :  { %v983_v53 = vpop.f32.mrf.mxu0  ;;  %v1056_v9 = vpop.f32.mrf.mxu1 }
 0x124   :  { %v984_v2 = vadd.f32 %v983_v53, %v5239_v19  ;;  %1274 = vst [vmem:[#allocation2 + $0x50] sm:$0xff] %v1250_v47  ;;  %v1243_v41 = vmax.f32 %v1217_v17, %v1218_v35  ;;  %v1219_v23 = vmax.f32 %v982_v14, %v1055_v59  ;;  %v1057_v37 = vadd.f32 %v1056_v9, %v5242_v7 }
 0x125   :  { %v5280_v50 = vpack.c.bf16 %v1250_v47, %v1249_v57 }
 0x126   :  { %v1251_v25 = vmax.f32 %v1243_v41, 0.0  ;;  %v1220_v3 = vmax.f32 %v984_v2, %v1057_v37 }
 0x128   :  { %1275 = vst [vmem:[#allocation2 + $0x60] sm:$0xff] %v1251_v25  ;;  %v1244_v20 = vmax.f32 %v1219_v23, %v1220_v3 }
 0x12a   :  { %v1252_v42 = vmax.f32 %v1244_v20, 0.0 }
 0x12c   :  { %1276 = vst [vmem:[#allocation2 + $0x70] sm:$0xff] %v1252_v42  ;;  %v5282_v46 = vpack.c.bf16 %v1252_v42, %v1251_v25 }
 0x145   :  { %v1093_v30 = vpop.f32.mrf.mxu0  ;;  %v1166_v19 = vpop.f32.mrf.mxu1 }
 0x146   :  { %v1094_v21 = vadd.f32 %v1093_v30, %v5010_v52  ;;  %v1167_v16 = vadd.f32 %v1166_v19, %v5086_v4 }
 0x147   :  { %v1095_v17 = vpop.f32.mrf.mxu0  ;;  %v1168_v7 = vpop.f32.mrf.mxu1 }
 0x148   :  { %v1096_v18 = vadd.f32 %v1095_v17, %v5113_v12  ;;  %v1221_v57 = vmax.f32 %v1094_v21, %v1167_v16  ;;  %v1169_v14 = vadd.f32 %v1168_v7, %v5116_v13 }
 0x149   :  { %v1097_v5 = vpop.f32.mrf.mxu0  ;;  %v1170_v35 = vpop.f32.mrf.mxu1 }
 0x14a   :  { %v1098_v47 = vadd.f32 %v1097_v5, %v5010_v52  ;;  %v1222_v59 = vmax.f32 %v1096_v18, %v1169_v14  ;;  %v1171_v53 = vadd.f32 %v1170_v35, %v5086_v4 }
 0x14b   :  { %v1099_v2 = vpop.f32.mrf.mxu0  ;;  %v1172_v41 = vpop.f32.mrf.mxu1 }
 0x14c   :  { %v1100_v9 = vadd.f32 %v1099_v2, %v5113_v12  ;;  %v1253_v23 = vmax.f32 %v1221_v57, %v1222_v59  ;;  %v1223_v37 = vmax.f32 %v1098_v47, %v1171_v53  ;;  %v1173_v25 = vadd.f32 %v1172_v41, %v5116_v13 }
 0x14d   :  { %v1103_v3 = vpop.f32.mrf.mxu0  ;;  %v1176_v42 = vpop.f32.mrf.mxu1 }
 0x14e   :  { %v1104_v20 = vadd.f32 %v1103_v3, %v5010_v52  ;;  %v1261_v30 = vmax.f32 %v1253_v23, 0.0  ;;  %v1224_v21 = vmax.f32 %v1100_v9, %v1173_v25  ;;  %v1177_v19 = vadd.f32 %v1176_v42, %v5086_v4 }
 0x14f   :  { %v1105_v16 = vpop.f32.mrf.mxu0  ;;  %v1178_v18 = vpop.f32.mrf.mxu1 }
 0x150   :  { %v1106_v17 = vadd.f32 %v1105_v16, %v5113_v12  ;;  %1277 = vst [vmem:[#allocation3] sm:$0xff] %v1261_v30  ;;  %v1254_v7 = vmax.f32 %v1223_v37, %v1224_v21  ;;  %v1225_v14 = vmax.f32 %v1104_v20, %v1177_v19  ;;  %v1179_v57 = vadd.f32 %v1178_v18, %v5116_v13  ;;  %v5305_v21 = vld [vmem:[%s6052_s3 + $0x270] ss:$8 sps:$4 sm:$0xff]  }
 0x151   :  { %v1107_v5 = vpop.f32.mrf.mxu0  ;;  %v1180_v35 = vpop.f32.mrf.mxu1  ;;  %6122 = vst [vmem:[#allocation31_spill] sm:$0xff] %v5305_v21 }
 0x152   :  { %v1108_v47 = vadd.f32 %v1107_v5, %v5010_v52  ;;  %v1262_v59 = vmax.f32 %v1254_v7, 0.0  ;;  %v1226_v53 = vmax.f32 %v1106_v17, %v1179_v57  ;;  %v1181_v2 = vadd.f32 %v1180_v35, %v5086_v4  ;;  %v5311_v17 = vld [vmem:[%s6052_s3 + $0x264] ss:$8 sps:$4 sm:$0xff]  }
 0x153   :  { %v1109_v9 = vpop.f32.mrf.mxu0  ;;  %v1182_v23 = vpop.f32.mrf.mxu1  ;;  %6123 = vst [vmem:[#allocation32_spill] sm:$0xff] %v5311_v17 }
 0x154   :  { %v1110_v41 = vadd.f32 %v1109_v9, %v5113_v12  ;;  %1278 = vst [vmem:[#allocation3 + $0x10] sm:$0xff] %v1262_v59  ;;  %v1255_v25 = vmax.f32 %v1225_v14, %v1226_v53  ;;  %v1227_v3 = vmax.f32 %v1108_v47, %v1181_v2  ;;  %v1183_v37 = vadd.f32 %v1182_v23, %v5116_v13  ;;  %v5322_v2 = vld [vmem:[%s6052_s3 + $0x260] ss:$8 sps:$4 sm:$0xff]  }
 0x155   :  { %v1113_v20 = vpop.f32.mrf.mxu0  ;;  %v5300_v42 = vpack.c.bf16 %v1262_v59, %v1261_v30  ;;  %v1186_v16 = vpop.f32.mrf.mxu1 }
 0x156   :  { %v1114_v19 = vadd.f32 %v1113_v20, %v5010_v52  ;;  %v1263_v18 = vmax.f32 %v1255_v25, 0.0  ;;  %v1228_v7 = vmax.f32 %v1110_v41, %v1183_v37  ;;  %v1187_v14 = vadd.f32 %v1186_v16, %v5086_v4  ;;  %v1318_v20 = vld [vmem:[#allocation2 + $0x11] sm:$0xff] }
 0x157   :  { %6121 = vst [vmem:[#allocation30_spill] sm:$0xff] %v5300_v42  ;;  %v1115_v57 = vpop.f32.mrf.mxu0  ;;  %2041 = vmatprep.mubr.bf16.mxu0 %v5300_v42  ;;  %v1188_v5 = vpop.f32.mrf.mxu1  ;;  %v1317_v42 = vld [vmem:[#allocation2 + $0x1] sm:$0xff] }
 0x158   :  { %v1116_v30 = vadd.f32 %v1115_v57, %v5113_v12  ;;  %2042 = vmatmul.mubr.bf16.vlgmr.msra.gmra.mxu0 %v5260_v61  ;;  %1279 = vst [vmem:[#allocation3 + $0x20] sm:$0xff] %v1263_v18  ;;  %v1256_v47 = vmax.f32 %v1227_v3, %v1228_v7  ;;  %v1229_v35 = vmax.f32 %v1114_v19, %v1187_v14  ;;  %v5329_v61 = vld [vmem:[%s6052_s3 + $0x254] ss:$8 sps:$4 sm:$0xff]   ;;  %v1333_v7 = vld [vmem:[#allocation3 + $0x1] sm:$0xff] }
 0x159   :  { %v1189_v59 = vadd.f32 %v1188_v5, %v5116_v13  ;;  %v1117_v53 = vpop.f32.mrf.mxu0  ;;  %2156 = vmatpush1.bf16.msra.mxu0 %v5305_v21  ;;  %v1190_v41 = vpop.f32.mrf.mxu1 }
 0x15a   :  { %v1118_v9 = vadd.f32 %v1117_v53, %v5010_v52  ;;  %2157 = vmatprep.subr.bf16.mxu0 %v5311_v17  ;;  %v1264_v23 = vmax.f32 %v1256_v47, 0.0  ;;  %v1191_v3 = vadd.f32 %v1190_v41, %v5086_v4 }
 0x15b   :  { %v1230_v25 = vmax.f32 %v1116_v30, %v1189_v59  ;;  %v1119_v37 = vpop.f32.mrf.mxu0  ;;  %v1192_v16 = vpop.f32.mrf.mxu1  ;;  %v1334_v14 = vld [vmem:[#allocation3 + $0x11] sm:$0xff]  ;;  %v5338_v59 = vpack.c.bf16 %v1318_v20, %v1317_v42  ;;  %v5353_v42 = vld [vmem:[%s6052_s3 + $0x244] ss:$8 sps:$4 sm:$0xff]  }
 0x15c   :  { %v1120_v19 = vadd.f32 %v1119_v37, %v5113_v12  ;;  %1280 = vst [vmem:[#allocation3 + $0x30] sm:$0xff] %v1264_v23  ;;  %v1231_v5 = vmax.f32 %v1118_v9, %v1191_v3  ;;  %v1193_v53 = vadd.f32 %v1192_v16, %v5116_v13  ;;  %v5334_v21 = vpack.c.bf16 %v1334_v14, %v1333_v7 }
 0x15d   :  { %v1257_v57 = vmax.f32 %v1229_v35, %v1230_v25  ;;  %v1123_v17 = vpop.f32.mrf.mxu0  ;;  %2158 = vmatpush1.bf16.msra.mxu0 %v5322_v2  ;;  %v1196_v47 = vpop.f32.mrf.mxu1  ;;  %v5340_v41 = vpack.c.bf16 %v1264_v23, %v1263_v18  ;;  %v5345_v35 = vld [vmem:[%s6052_s3 + $0x250] ss:$8 sps:$4 sm:$0xff]  }
 0x15e   :  { %v1124_v30 = vadd.f32 %v1123_v17, %v5010_v52  ;;  %2159 = vmatprep.subr.bf16.mxu0 %v5329_v61  ;;  %v1232_v25 = vmax.f32 %v1120_v19, %v1193_v53  ;;  %v1197_v3 = vadd.f32 %v1196_v47, %v5086_v4  ;;  %2114 = vmatprep.mubr.bf16.mxu1 %v5334_v21 }
 0x15f   :  { %v1265_v9 = vmax.f32 %v1257_v57, 0.0  ;;  %v1125_v37 = vpop.f32.mrf.mxu0  ;;  %v1198_v18 = vpop.f32.mrf.mxu1  ;;  %2115 = vmatmul.mubr.bf16.vlgmr.msra.gmra.mxu1 %v5338_v59  ;;  %2051 = vmatprep.mubr.bf16.mxu0 %v5340_v41  ;;  %v1335_v57 = vld [vmem:[#allocation3 + $0x21] sm:$0xff] }
 0x160   :  { %v1126_v17 = vadd.f32 %v1125_v37, %v5113_v12  ;;  %v1258_v23 = vmax.f32 %v1231_v5, %v1232_v25  ;;  %v1233_v20 = vmax.f32 %v1124_v30, %v1197_v3  ;;  %v1199_v19 = vadd.f32 %v1198_v18, %v5116_v13  ;;  %2237 = vmatpush1.bf16.msra.mxu1 %v4829_v10  ;;  %v5367_v5 = vld [vmem:[%s6052_s3 + $0x240] ss:$8 sps:$4 sm:$0xff]  }
 0x161   :  { %1281 = vst [vmem:[#allocation3 + $0x40] sm:$0xff] %v1265_v9  ;;  %v1127_v16 = vpop.f32.mrf.mxu0  ;;  %2052 = vmatmul.mubr.bf16.gmra.mxu0 %v5271_v6  ;;  %v1200_v14 = vpop.f32.mrf.mxu1  ;;  %2238 = vmatprep.subr.bf16.mxu1 %v4849_v48  ;;  %v1319_v25 = vld [vmem:[#allocation2 + $0x21] sm:$0xff]  ;;  %v1320_v6 = vld [vmem:[#allocation2 + $0x31] sm:$0xff] }
 0x162   :  { %v1128_v7 = vadd.f32 %v1127_v16, %v5010_v52  ;;  %2160 = vmatpush1.bf16.msra.mxu0 %v5345_v35  ;;  %v1266_v53 = vmax.f32 %v1258_v23, 0.0  ;;  %v1234_v30 = vmax.f32 %v1126_v17, %v1199_v19  ;;  %v1201_v10 = vadd.f32 %v1200_v14, %v5086_v4  ;;  %v5374_v48 = vld [vmem:[%s6052_s3 + $0x234] ss:$8 sps:$4 sm:$0xff]  }
 0x163   :  { %v1129_v47 = vpop.f32.mrf.mxu0  ;;  %2161 = vmatprep.subr.bf16.mxu0 %v5353_v42  ;;  %v1202_v3 = vpop.f32.mrf.mxu1  ;;  %v1336_v37 = vld [vmem:[#allocation3 + $0x31] sm:$0xff]  ;;  %v5382_v19 = vpack.c.bf16 %v1320_v6, %v1319_v25  ;;  %v5446_v25 = vld [vmem:[%s6052_s3 + $0x200] ss:$8 sps:$4 sm:$0xff]  }
 0x164   :  { %v1130_v52 = vadd.f32 %v1129_v47, %v5113_v12  ;;  %1282 = vst [vmem:[#allocation3 + $0x50] sm:$0xff] %v1266_v53  ;;  %v1259_v18 = vmax.f32 %v1233_v20, %v1234_v30  ;;  %v1235_v23 = vmax.f32 %v1128_v7, %v1201_v10  ;;  %v1203_v17 = vadd.f32 %v1202_v3, %v5116_v13  ;;  %v5390_v12 = vld [vmem:[%s6052_s3 + $0x230] ss:$8 sps:$4 sm:$0xff]   ;;  %v1323_v6 = vld [vmem:[#allocation2 + $0x61] sm:$0xff] }
 0x165   :  { %2239 = vmatpush1.bf16.msra.mxu1 %v4855_v55  ;;  %v5379_v4 = vpack.c.bf16 %v1336_v37, %v1335_v57  ;;  %v5385_v16 = vpack.c.bf16 %v1266_v53, %v1265_v9  ;;  %v5397_v55 = vld [vmem:[%s6052_s3 + $0x224] ss:$8 sps:$4 sm:$0xff]   ;;  %v5408_v9 = vld [vmem:[%s6052_s3 + $0x220] ss:$8 sps:$4 sm:$0xff]   ;;  %v1322_v53 = vld [vmem:[#allocation2 + $0x51] sm:$0xff]  ;;  %v4297_v3 = vmov 0  }
 0x166   :  { %2240 = vmatprep.subr.bf16.mxu1 %v4867_v22  ;;  %2162 = vmatpush1.bf16.msra.mxu0 %v5367_v5  ;;  %v1267_v20 = vmax.f32 %v1259_v18, 0.0  ;;  %v1236_v7 = vmax.f32 %v1130_v52, %v1203_v17  ;;  %v1321_v57 = vld [vmem:[#allocation2 + $0x41] sm:$0xff]  ;;  %v5428_v47 = vld [vmem:[%s6052_s3 + $0x210] ss:$8 sps:$4 sm:$0xff]   ;;  %v4289_v18 = vld [vmem:[%s6052_s3 + $0x174] ss:$8 sps:$4 sm:$0xff]  }
 0x167   :  { %2124 = vmatprep.mubr.bf16.mxu1 %v5379_v4  ;;  %2163 = vmatprep.subr.bf16.mxu0 %v5374_v48  ;;  %v5422_v10 = vpack.c.bf16 %v1322_v53, %v1321_v57  ;;  %v1324_v52 = vld [vmem:[#allocation2 + $0x71] sm:$0xff]  ;;  %v4291_v17 = vld [vmem:[%s6052_s3 + $0x164] ss:$8 sps:$4 sm:$0xff]  }
 0x168   :  { %2125 = vmatmul.mubr.bf16.gmra.mxu1 %v5382_v19  ;;  %2061 = vmatprep.mubr.bf16.mxu0 %v5385_v16  ;;  %1283 = vst [vmem:[#allocation3 + $0x60] sm:$0xff] %v1267_v20  ;;  %v1260_v22 = vmax.f32 %v1235_v23, %v1236_v7  ;;  %v1337_v13 = vld [vmem:[#allocation3 + $0x41] sm:$0xff]  ;;  %v5454_v37 = vpack.c.bf16 %v1324_v52, %v1323_v6  ;;  %v6138_v57 = vld [vmem:[#allocation31_spill] sm:$0xff]  ;;  %v6139_v53 = vld [vmem:[#allocation32_spill] sm:$0xff] }
 0x169   :  { %2241 = vmatpush1.bf16.msra.mxu1 %v4878_v24  ;;  %2062 = vmatmul.mubr.bf16.gmra.mxu0 %v5280_v50  ;;  %v5414_v24 = vld [vmem:[%s6052_s3 + $0x214] ss:$8 sps:$4 sm:$0xff]   ;;  %v1349_v23 = vld [vmem:[#allocation2 + $0x2] sm:$0xff] }
 0x16a   :  { %2242 = vmatprep.subr.bf16.mxu1 %v4887_v26  ;;  %2164 = vmatpush1.bf16.msra.mxu0 %v5390_v12  ;;  %v1268_v14 = vmax.f32 %v1260_v22, 0.0  ;;  %v1353_v22 = vld [vmem:[#allocation2 + $0x42] sm:$0xff]  ;;  %v6142_v6 = vld [vmem:[#allocation15_spill] sm:$0xff] }
 0x16b   :  { %2165 = vmatprep.subr.bf16.mxu0 %v5397_v55  ;;  %v1338_v30 = vld [vmem:[#allocation3 + $0x51] sm:$0xff]  ;;  %v6143_v52 = vld [vmem:[#allocation17_spill] sm:$0xff] }
 0x16c   :  { %1284 = vst [vmem:[#allocation3 + $0x70] sm:$0xff] %v1268_v14  ;;  %v5417_v26 = vpack.c.bf16 %v1338_v30, %v1337_v13  ;;  %v5419_v50 = vpack.c.bf16 %v1268_v14, %v1267_v20  ;;  %v1352_v20 = vld [vmem:[#allocation2 + $0x32] sm:$0xff]  ;;  %v6136_v13 = vld [vmem:[#allocation30_spill] sm:$0xff]  ;;  %v6140_v30 = vld [vmem:[#allocation13_spill] sm:$0xff] }
 0x16d   :  { %2243 = vmatpush1.bf16.msra.mxu1 %v4896_v27  ;;  %v5435_v27 = vld [vmem:[%s6052_s3 + $0x204] ss:$8 sps:$4 sm:$0xff]   ;;  %v6137_v14 = vld [vmem:[#allocation12_spill] sm:$0xff] }
 0x16e   :  { %2244 = vmatprep.subr.bf16.mxu1 %v4907_v28  ;;  %2166 = vmatpush1.bf16.msra.mxu0 %v5408_v9 }
 0x16f   :  { %2134 = vmatprep.mubr.bf16.mxu1 %v5417_v26  ;;  %2071 = vmatprep.mubr.bf16.mxu0 %v5419_v50  ;;  %v1339_v28 = vld [vmem:[#allocation3 + $0x61] sm:$0xff] }
 0x170   :  { %2135 = vmatmul.mubr.bf16.gmra.mxu1 %v5422_v10  ;;  %2167 = vmatprep.subr.bf16.mxu0 %v5414_v24 }
 0x171   :  { %2245 = vmatpush1.bf16.msra.mxu1 %v4917_v31  ;;  %2072 = vmatmul.mubr.bf16.gmra.mxu0 %v5282_v46 }
 0x172   :  { %2246 = vmatprep.subr.bf16.mxu1 %v4930_v33  ;;  %2168 = vmatpush1.bf16.msra.mxu0 %v5428_v47  ;;  %v1350_v33 = vld [vmem:[#allocation2 + $0x12] sm:$0xff] }
 0x173   :  { %2169 = vmatprep.subr.bf16.mxu0 %v5435_v27  ;;  %2187 = vmatprep.mubr.bf16.mxu0 %v4297_v3  ;;  %v1340_v31 = vld [vmem:[#allocation3 + $0x71] sm:$0xff] }
 0x174   :  { %v5451_v46 = vpack.c.bf16 %v1340_v31, %v1339_v28  ;;  %v6141_v28 = vld [vmem:[#allocation14_spill] sm:$0xff]  ;;  %v6145_v31 = vld [vmem:[#allocation21_spill] sm:$0xff] }
 0x175   :  { %2247 = vmatpush1.bf16.msra.mxu1 %v4941_v36  ;;  %v3875_v36 = vpack.c.bf16 %v1350_v33, %v1349_v23  ;;  %v4233_v33 = vld [vmem:[%s6055_s5 + $0x78] sm:$0xff]  }
 0x176   :  { %2248 = vmatprep.subr.bf16.mxu1 %v4951_v39  ;;  %2170 = vmatpush1.bf16.msra.mxu0 %v5446_v25  ;;  %v4290_v39 = vld [vmem:[%s6052_s3 + $0x170] ss:$8 sps:$4 sm:$0xff]  }
 0x177   :  { %2144 = vmatprep.mubr.bf16.mxu1 %v5451_v46  ;;  %2309 = vmatprep.subr.bf16.mxu0 %v4289_v18 }
 0x178   :  { %2145 = vmatmul.mubr.bf16.gmra.mxu1 %v5454_v37 }
 0x179   :  { %2249 = vmatpush1.bf16.msra.mxu1 %v4973_v43  ;;  %2268 = vmatprep.mubr.bf16.mxu1 %v5338_v59  ;;  %v1351_v43 = vld [vmem:[#allocation2 + $0x22] sm:$0xff]  ;;  %v4293_v59 = vld [vmem:[%s6052_s3 + $0x154] ss:$8 sps:$4 sm:$0xff]  }
 0x17a   :  { %2250 = vmatprep.subr.bf16.mxu1 %v4985_v45  ;;  %2188 = vmatmul.mubr.bf16.vlgmr.msra.gmra.mxu0 %v3875_v36  ;;  %v4292_v45 = vld [vmem:[%s6052_s3 + $0x160] ss:$8 sps:$4 sm:$0xff]   ;;  %v5480_v7 = vpack.c.bf16 %v1352_v20, %v1351_v43 }
 0x17b   :  { %2310 = vmatpush1.bf16.msra.mxu0 %v4290_v39  ;;  %2197 = vmatprep.mubr.bf16.mxu0 %v4297_v3  ;;  %v4235_v39 = vld [vmem:[%s6055_s5 + $0x70] sm:$0xff]  }
 0x17c   :  { %2311 = vmatprep.subr.bf16.mxu0 %v4291_v17  ;;  %v4236_v17 = vld [vmem:[%s6055_s5 + $0x30] sm:$0xff]  }
 0x17d   :  { %2251 = vmatpush1.bf16.msra.mxu1 %v4997_v49  ;;  %v4294_v49 = vld [vmem:[%s6052_s3 + $0x150] ss:$8 sps:$4 sm:$0xff]  }
 0x17e   :  { %2252 = vmatprep.subr.bf16.mxu1 %v5007_v51  ;;  %v4295_v51 = vld [vmem:[%s6052_s3 + $0x144] ss:$8 sps:$4 sm:$0xff]  }
 0x17f   :  { %2312 = vmatpush1.bf16.msra.mxu0 %v4292_v45 }
 0x180   :  { %2313 = vmatprep.subr.bf16.mxu0 %v4293_v59  ;;  %v4237_v59 = vld [vmem:[%s6055_s5 + $0x68] sm:$0xff]  }
 0x181   :  { %2253 = vmatpush2.bf16.msra.mxu1 %v5024_v54  ;;  %v1354_v54 = vld [vmem:[#allocation2 + $0x52] sm:$0xff] }
 0x182   :  { %2254 = vmatprep.subr.bf16.mxu1 %v5034_v58  ;;  %2198 = vmatmul.mubr.bf16.gmra.mxu0 %v5480_v7  ;;  %v5496_v58 = vpack.c.bf16 %v1354_v54, %v1353_v22 }
 0x183   :  { %2314 = vmatpush1.bf16.msra.mxu0 %v4294_v49  ;;  %2207 = vmatprep.mubr.bf16.mxu0 %v4297_v3 }
 0x184   :  { %2315 = vmatprep.subr.bf16.mxu0 %v4295_v51 }
 0x185   :  { %2255 = vmatpush2.bf16.msra.mxu1 %v5048_v60  ;;  %v1355_v60 = vld [vmem:[#allocation2 + $0x62] sm:$0xff] }
 0x186   :  { %2256 = vmatprep.subr.bf16.mxu1 %v5062_v62  ;;  %v6126_v62 = vld [vmem:[#allocation18_spill] sm:$0xff] }
 0x187   :  { %2316 = vmatpush1.bf16.msra.mxu0 %v4902_v56  ;;  %v1356_v56 = vld [vmem:[#allocation2 + $0x72] sm:$0xff] }
 0x188   :  { %2317 = vmatprep.subr.bf16.mxu0 %v4912_v29  ;;  %v5508_v29 = vpack.c.bf16 %v1356_v56, %v1355_v60  ;;  %v4239_v56 = vld [vmem:[%s6055_s5 + $0x60] sm:$0xff]  }
 0x189   :  { %2257 = vmatpush2.bf16.msra.mxu1 %v5068_v63  ;;  %v6129_v63 = vld [vmem:[#allocation20_spill] sm:$0xff] }
 0x18a   :  { %2258 = vmatprep.subr.bf16.mxu1 %v5075_v0  ;;  %2208 = vmatmul.mubr.bf16.gmra.mxu0 %v5496_v58  ;;  %v6130_v0 = vld [vmem:[#allocation22_spill] sm:$0xff] }
 0x18b   :  { %2318 = vmatpush1.bf16.msra.mxu0 %v4923_v32  ;;  %2217 = vmatprep.mubr.bf16.mxu0 %v4297_v3  ;;  %v6124_v32 = vld [vmem:[#allocation6_spill] sm:$0xff] }
 0x18c   :  { %2319 = vmatprep.subr.bf16.mxu0 %v4935_v34  ;;  %v6125_v34 = vld [vmem:[#allocation16_spill] sm:$0xff] }
 0x18d   :  { %2259 = vmatpush2.bf16.msra.mxu1 %v5081_v1  ;;  %v6131_v1 = vld [vmem:[#allocation9_spill] sm:$0xff] }
 0x18e   :  { %2260 = vmatprep.subr.bf16.mxu1 %v5098_v8  ;;  %v6132_v8 = vld [vmem:[#allocation10_spill] sm:$0xff] }
 0x18f   :  { %2320 = vmatpush1.bf16.msra.mxu0 %v4946_v38  ;;  %v6127_v38 = vld [vmem:[#allocation7_spill] sm:$0xff] }
 0x190   :  { %2321 = vmatprep.subr.bf16.mxu0 %v4957_v40  ;;  %v6128_v40 = vld [vmem:[#allocation8_spill] sm:$0xff] }
 0x191   :  { %2261 = vmatpush2.bf16.msra.mxu1 %v5109_v11  ;;  %v6134_v11 = vld [vmem:[#allocation26_spill] sm:$0xff] }
 0x192   :  { %2262 = vmatprep.subr.bf16.mxu1 %v5128_v15  ;;  %2218 = vmatmul.mubr.bf16.gmra.mxu0 %v5508_v29  ;;  %v6135_v15 = vld [vmem:[#allocation11_spill] sm:$0xff] }
 0x193   :  { %2322 = vmatpush1.bf16.msra.mxu0 %v4978_v44  ;;  %2341 = vmatprep.mubr.bf16.mxu0 %v3875_v36  ;;  %v6133_v44 = vld [vmem:[#allocation24_spill] sm:$0xff] }
 0x194   :  { %2323 = vmatprep.subr.bf16.mxu0 %v6124_v32 }
 0x195   :  { %2263 = vmatpush2.bf16.msra.mxu1 %v6125_v34 }
 0x196   :  { %2264 = vmatprep.subr.bf16.mxu1 %v6126_v62 }
 0x197   :  { %2324 = vmatpush1.bf16.msra.mxu0 %v6127_v38 }
 0x198   :  { %2325 = vmatprep.subr.bf16.mxu0 %v6128_v40 }
 0x199   :  { %2265 = vmatpush2.bf16.msra.mxu1 %v6129_v63  ;;  %v4241_v63 = vld [vmem:[%s6055_s5 + $0x58] sm:$0xff]  }
 0x19a   :  { %2266 = vmatprep.subr.bf16.mxu1 %v6130_v0  ;;  %v4242_v0 = vld [vmem:[%s6055_s5 + $0x18] sm:$0xff]  }
 0x19b   :  { %2326 = vmatpush2.bf16.msra.mxu0 %v6131_v1 }
 0x19c   :  { %2327 = vmatprep.subr.bf16.mxu0 %v6132_v8 }
 0x19d   :  { %2267 = vmatpush2.bf16.msra.mxu1 %v6133_v44 }
 0x19e   :  { %2382 = vmatprep.subr.bf16.mxu1 %v6134_v11  ;;  %v4243_v11 = vld [vmem:[%s6055_s5 + $0x50] sm:$0xff]  }
 0x19f   :  { %2328 = vmatpush2.bf16.msra.mxu0 %v6135_v15 }
 0x1a0   :  { %2269 = vmatmul.mubr.bf16.vlgmr.msra.gmra.mxu1 %v6136_v13  ;;  %2329 = vmatprep.subr.bf16.mxu0 %v6137_v14  ;;  %v4244_v13 = vld [vmem:[%s6055_s5 + $0x10] sm:$0xff]  }
 0x1a1   :  { %2278 = vmatprep.mubr.bf16.mxu1 %v5382_v19  ;;  %2383 = vmatpush1.bf16.msra.mxu1 %v6138_v57  ;;  %v6144_v19 = vld [vmem:[#allocation19_spill] sm:$0xff] }
 0x1a2   :  { %2384 = vmatprep.subr.bf16.mxu1 %v6139_v53 }
 0x1a3   :  { %2330 = vmatpush2.bf16.msra.mxu0 %v6140_v30  ;;  %v4245_v30 = vld [vmem:[%s6055_s5 + $0x48] sm:$0xff]  }
 0x1a4   :  { %2331 = vmatprep.subr.bf16.mxu0 %v6141_v28 }
 0x1a5   :  { %2385 = vmatpush1.bf16.msra.mxu1 %v5322_v2  ;;  %v6146_v2 = vld [vmem:[#allocation23_spill] sm:$0xff] }
 0x1a6   :  { %2386 = vmatprep.subr.bf16.mxu1 %v5329_v61  ;;  %v6147_v61 = vld [vmem:[#allocation25_spill] sm:$0xff] }
 0x1a7   :  { %2332 = vmatpush2.bf16.msra.mxu0 %v6142_v6 }
 0x1a8   :  { %2279 = vmatmul.mubr.bf16.gmra.mxu1 %v5340_v41  ;;  %2333 = vmatprep.subr.bf16.mxu0 %v6143_v52  ;;  %v6148_v41 = vld [vmem:[#allocation27_spill] sm:$0xff] }
 0x1a9   :  { %2288 = vmatprep.mubr.bf16.mxu1 %v5422_v10  ;;  %2387 = vmatpush1.bf16.msra.mxu1 %v5345_v35  ;;  %v6149_v35 = vld [vmem:[#allocation28_spill] sm:$0xff] }
 0x1aa   :  { %2388 = vmatprep.subr.bf16.mxu1 %v5353_v42  ;;  %v6150_v42 = vld [vmem:[#allocation29_spill] sm:$0xff] }
 0x1ab   :  { %2334 = vmatpush2.bf16.msra.mxu0 %v6144_v19  ;;  %v4246_v19 = vld [vmem:[%s6055_s5 + $0x8] sm:$0xff]  }
 0x1ac   :  { %2335 = vmatprep.subr.bf16.mxu0 %v6145_v31 }
 0x1ad   :  { %2389 = vmatpush1.bf16.msra.mxu1 %v5367_v5  ;;  %v6151_v5 = vmov 0.0  }
 0x1ae   :  { %2390 = vmatprep.subr.bf16.mxu1 %v5374_v48  ;;  %v1366_v48 = vld [vmem:[#allocation3 + $0x12] sm:$0xff] }
 0x1af   :  { %2336 = vmatpush2.bf16.msra.mxu0 %v6146_v2 }
 0x1b0   :  { %2289 = vmatmul.mubr.bf16.gmra.mxu1 %v5385_v16  ;;  %2337 = vmatprep.subr.bf16.mxu0 %v6147_v61  ;;  %v1365_v16 = vld [vmem:[#allocation3 + $0x2] sm:$0xff] }
 0x1b1   :  { %2298 = vmatprep.mubr.bf16.mxu1 %v5454_v37  ;;  %2391 = vmatpush1.bf16.msra.mxu1 %v5390_v12  ;;  %v3891_v12 = vpack.c.bf16 %v1366_v48, %v1365_v16 }
 0x1b2   :  { %2392 = vmatprep.subr.bf16.mxu1 %v5397_v55  ;;  %v1367_v55 = vld [vmem:[#allocation3 + $0x22] sm:$0xff] }
 0x1b3   :  { %2338 = vmatpush2.bf16.msra.mxu0 %v6148_v41 }
 0x1b4   :  { %2339 = vmatprep.subr.bf16.mxu0 %v6149_v35 }
 0x1b5   :  { %2393 = vmatpush1.bf16.msra.mxu1 %v5408_v9  ;;  %v1368_v9 = vld [vmem:[#allocation3 + $0x32] sm:$0xff] }
 0x1b6   :  { %2394 = vmatprep.subr.bf16.mxu1 %v5414_v24  ;;  %v3892_v24 = vpack.c.bf16 %v1368_v9, %v1367_v55  ;;  %v4248_v55 = vld [vmem:[%s6055_s5] sm:$0xff]  }
 0x1b7   :  { %2340 = vmatpush2.bf16.msra.mxu0 %v6150_v42  ;;  %v4247_v42 = vld [vmem:[%s6055_s5 + $0x40] sm:$0xff]  }
 0x1b8   :  { %2299 = vmatmul.mubr.bf16.gmra.mxu1 %v5419_v50  ;;  %3958 = vmatprep.subr.bf16.mxu0 %v6151_v5  ;;  %v1370_v50 = vld [vmem:[#allocation3 + $0x52] sm:$0xff] }
 0x1b9   :  { %2395 = vmatpush1.bf16.msra.mxu1 %v5428_v47  ;;  %2414 = vmatprep.mubr.bf16.mxu1 %v4297_v3  ;;  %v1372_v47 = vld [vmem:[#allocation3 + $0x72] sm:$0xff] }
 0x1ba   :  { %2396 = vmatprep.subr.bf16.mxu1 %v5435_v27  ;;  %2342 = vmatmul.mubr.bf16.vlgmr.msra.gmra.mxu0 %v5334_v21  ;;  %v1369_v21 = vld [vmem:[#allocation3 + $0x42] sm:$0xff] }
 0x1bb   :  { %2351 = vmatprep.mubr.bf16.mxu0 %v5480_v7  ;;  %v3893_v10 = vpack.c.bf16 %v1370_v50, %v1369_v21  ;;  %3959 = vmatpush3.bf16.msra.mxu0 %v4233_v33  ;;  %v4238_v7 = vld [vmem:[%s6055_s5 + $0x28] sm:$0xff]  }
 0x1bc   :  { %3960 = vmatprep.subr.bf16.mxu0 %v6151_v5 }
 0x1bd   :  { %2397 = vmatpush1.bf16.msra.mxu1 %v5446_v25  ;;  %v5576_v25 = vld [vmem:[%s6054_s4] sm:$0x3] }
 0x1be   :  { %3978 = vmatprep.subr.bf16.mxu1 %v6151_v5 }
 0x1bf   :  { %3961 = vmatpush3.bf16.msra.mxu0 %v4235_v39 }
 0x1c0   :  { %2415 = vmatmul.mubr.bf16.vlgmr.msra.gmra.mxu1 %v3891_v12  ;;  %3962 = vmatprep.subr.bf16.mxu0 %v6151_v5 }
 0x1c1   :  { %2424 = vmatprep.mubr.bf16.mxu1 %v4297_v3 }
 0x1c2   :  { %2352 = vmatmul.mubr.bf16.gmra.mxu0 %v5379_v4  ;;  %v1371_v4 = vld [vmem:[#allocation3 + $0x62] sm:$0xff] }
 0x1c3   :  { %2361 = vmatprep.mubr.bf16.mxu0 %v5496_v58  ;;  %v3894_v27 = vpack.c.bf16 %v1372_v47, %v1371_v4  ;;  %3963 = vmatpush3.bf16.msra.mxu0 %v4237_v59 }
 0x1c4   :  { %3964 = vmatprep.subr.bf16.mxu0 %v6151_v5 }
 0x1c7   :  { %3965 = vmatpush3.bf16.msra.mxu0 %v4239_v56 }
 0x1c8   :  { %2425 = vmatmul.mubr.bf16.gmra.mxu1 %v3892_v24  ;;  %3966 = vmatprep.subr.bf16.mxu0 %v6151_v5 }
 0x1c9   :  { %2434 = vmatprep.mubr.bf16.mxu1 %v4297_v3 }
 0x1ca   :  { %2362 = vmatmul.mubr.bf16.gmra.mxu0 %v5417_v26 }
 0x1cb   :  { %2371 = vmatprep.mubr.bf16.mxu0 %v5508_v29  ;;  %v4240_v29 = vld [vmem:[%s6055_s5 + $0x20] sm:$0xff]   ;;  %3967 = vmatpush3.bf16.msra.mxu0 %v4241_v63 }
 0x1cc   :  { %3968 = vmatprep.subr.bf16.mxu0 %v6151_v5 }
 0x1cf   :  { %3969 = vmatpush3.bf16.msra.mxu0 %v4243_v11 }
 0x1d0   :  { %2435 = vmatmul.mubr.bf16.gmra.mxu1 %v3893_v10  ;;  %3970 = vmatprep.subr.bf16.mxu0 %v6151_v5 }
 0x1d1   :  { %2444 = vmatprep.mubr.bf16.mxu1 %v4297_v3  ;;  %v4234_v3 = vld [vmem:[%s6055_s5 + $0x38] sm:$0xff]  }
 0x1d2   :  { %2372 = vmatmul.mubr.bf16.gmra.mxu0 %v5451_v46  ;;  %v6152_v46 = vld [vmem:[#allocation5_spill] sm:$0xff]  ;;  %3979 = vmatpush3.bf16.msra.mxu1 %v4234_v3 }
 0x1d3   :  { %v6153_v18 = vsub.s32 0, %v6152_v46  ;;  %3980 = vmatprep.subr.bf16.mxu1 %v6151_v5  ;;  %3974 = vmatprep.mubr.msk.bf16.mxu0 %vm4298_vm0, %v6151_v5 }
 0x1d4   :  { %3971 = vmatpush3.bf16.msra.mxu0 %v4245_v30 }
 0x1d5   :  { %v5589_v23 = vrot.slane %v5576_v25, %v6153_v18  ;;  %3972 = vmatprep.subr.bf16.mxu0 %v6151_v5 }
 0x1d6   :  { %3981 = vmatpush3.bf16.msra.mxu1 %v4236_v17 }
 0x1d7   :  { %3982 = vmatprep.subr.bf16.mxu1 %v6151_v5 }
 0x1d8   :  { %2445 = vmatmul.mubr.bf16.gmra.mxu1 %v3894_v27  ;;  %3973 = vmatpush3.bf16.msra.mxu0 %v4247_v42 }
 0x1d9   :  { %3994 = vmatprep.mubr.msk.bf16.mxu1 %vm4298_vm0, %v6151_v5  ;;  %3998 = vmatprep.subr.bf16.mxu0 %v6151_v5 }
 0x1da   :  { %3983 = vmatpush3.bf16.msra.mxu1 %v4238_v7 }
 0x1db   :  { %3984 = vmatprep.subr.bf16.mxu1 %v6151_v5 }
 0x1de   :  { %3985 = vmatpush3.bf16.msra.mxu1 %v4240_v29 }
 0x1df   :  { %3986 = vmatprep.subr.bf16.mxu1 %v6151_v5 }
 0x1e2   :  { %3987 = vmatpush3.bf16.msra.mxu1 %v4242_v0 }
 0x1e3   :  { %3988 = vmatprep.subr.bf16.mxu1 %v6151_v5 }
 0x1e6   :  { %3989 = vmatpush3.bf16.msra.mxu1 %v4244_v13 }
 0x1e7   :  { %3990 = vmatprep.subr.bf16.mxu1 %v6151_v5 }
 0x1ea   :  { %3991 = vmatpush3.bf16.msra.mxu1 %v4246_v19 }
 0x1eb   :  { %3992 = vmatprep.subr.bf16.mxu1 %v6151_v5 }
 0x1ee   :  { %3993 = vmatpush3.bf16.msra.mxu1 %v4248_v55 }
 0x1ef   :  { %4018 = vmatprep.subr.bf16.mxu1 %v6151_v5 }
 0x218   :  { %v2043_v26 = vpop.f32.mrf.mxu0 }
 0x219   :  { %v2044_v20 = vadd.f32 %v2043_v26, %v5589_v23 }
 0x21a   :  { %v5584_v37 = vpop.f32.mrf.mxu0 }
 0x21c   :  { %v2047_v36 = vpop.f32.mrf.mxu0 }
 0x21d   :  { %v2048_v54 = vadd.f32 %v2047_v36, %v5589_v23 }
 0x21e   :  { %v5599_v43 = vpop.f32.mrf.mxu0 }
 0x21f   :  { %v2116_v45 = vpop.f32.mrf.mxu1 }
 0x220   :  { %v5610_v49 = vadd.f32 %v2116_v45, %v2044_v20 }
 0x221   :  { %v2053_v51 = vpop.f32.mrf.mxu0  ;;  %v5612_v22 = vpop.f32.mrf.mxu1 }
 0x222   :  { %v2054_v38 = vadd.f32 %v2053_v51, %v5589_v23 }
 0x223   :  { %v5615_v58 = vpop.f32.mrf.mxu0  ;;  %v2120_v60 = vpop.f32.mrf.mxu1 }
 0x224   :  { %v5625_v32 = vadd.f32 %v2120_v60, %v2048_v54 }
 0x225   :  { %v2057_v34 = vpop.f32.mrf.mxu0  ;;  %v5627_v62 = vpop.f32.mrf.mxu1 }
 0x226   :  { %v2058_v14 = vadd.f32 %v2057_v34, %v5589_v23 }
 0x227   :  { %v5630_v40 = vpop.f32.mrf.mxu0 }
 0x228   :  { %v2126_v1 = vpop.f32.mrf.mxu1 }
 0x229   :  { %v5642_v8 = vadd.f32 %v2126_v1, %v2054_v38  ;;  %v2063_v44 = vpop.f32.mrf.mxu0 }
 0x22a   :  { %v5649_v15 = vpop.f32.mrf.mxu1  ;;  %v2064_v31 = vadd.f32 %v2063_v44, %v5589_v23 }
 0x22b   :  { %v5655_v57 = vpop.f32.mrf.mxu0 }
 0x22c   :  { %v2130_v53 = vpop.f32.mrf.mxu1 }
 0x22d   :  { %v5662_v28 = vadd.f32 %v2130_v53, %v2058_v14  ;;  %v2067_v6 = vpop.f32.mrf.mxu0 }
 0x22e   :  { %v5664_v52 = vpop.f32.mrf.mxu1  ;;  %v2068_v16 = vadd.f32 %v2067_v6, %v5589_v23 }
 0x22f   :  { %v5670_v2 = vpop.f32.mrf.mxu0 }
 0x230   :  { %v2136_v61 = vpop.f32.mrf.mxu1 }
 0x231   :  { %v5674_v41 = vadd.f32 %v2136_v61, %v2064_v31  ;;  %v2073_v35 = vpop.f32.mrf.mxu0 }
 0x232   :  { %v5679_v48 = vpop.f32.mrf.mxu1  ;;  %v2074_v10 = vadd.f32 %v2073_v35, %v5589_v23 }
 0x233   :  { %v5682_v12 = vpop.f32.mrf.mxu0 }
 0x234   :  { %v2140_v9 = vpop.f32.mrf.mxu1 }
 0x235   :  { %v5689_v24 = vadd.f32 %v2140_v9, %v2068_v16  ;;  %v2077_v21 = vpop.f32.mrf.mxu0 }
 0x236   :  { %v5691_v50 = vpop.f32.mrf.mxu1  ;;  %v2078_v33 = vadd.f32 %v2077_v21, %v5589_v23  ;;  %v6163_v21 = vsub.s32 1, %v6152_v46 }
 0x237   :  { %v5695_v47 = vpop.f32.mrf.mxu0 }
 0x238   :  { %v2146_v4 = vpop.f32.mrf.mxu1  ;;  %6154 = vst [vmem:[#allocation6_spill] sm:$0xff] %v5695_v47 }
 0x239   :  { %v5698_v27 = vadd.f32 %v2146_v4, %v2074_v10  ;;  %v5748_v10 = vrot.slane %v5576_v25, %v6163_v21 }
 0x23a   :  { %v5700_v26 = vpop.f32.mrf.mxu1  ;;  %v2189_v18 = vpop.f32.mrf.mxu0 }
 0x23b   :  { %6155 = vst [vmem:[#allocation16_spill] sm:$0xff] %v5698_v27  ;;  %6156 = vst [vmem:[#allocation18_spill] sm:$0xff] %v5700_v26 }
 0x23c   :  { %v2150_v3 = vpop.f32.mrf.mxu1  ;;  %v2191_v39 = vpop.f32.mrf.mxu0 }
 0x23d   :  { %v5703_v36 = vadd.f32 %v2150_v3, %v2078_v33 }
 0x23e   :  { %v2193_v17 = vpop.f32.mrf.mxu0  ;;  %v5717_v60 = vpop.f32.mrf.mxu1 }
 0x23f   :  { %6157 = vst [vmem:[#allocation7_spill] sm:$0xff] %v5703_v36  ;;  %6158 = vst [vmem:[#allocation8_spill] sm:$0xff] %v5717_v60 }
 0x240   :  { %v5705_v20 = vpop.f32.mrf.mxu0 }
 0x242   :  { %v5707_v45 = vpop.f32.mrf.mxu0 }
 0x244   :  { %v5709_v59 = vpop.f32.mrf.mxu0 }
 0x246   :  { %v5711_v7 = vpop.f32.mrf.mxu0 }
 0x248   :  { %v5713_v51 = vpop.f32.mrf.mxu0 }
 0x24a   :  { %v5715_v54 = vpop.f32.mrf.mxu0 }
 0x24c   :  { %v5719_v56 = vpop.f32.mrf.mxu0 }
 0x24e   :  { %v5721_v38 = vpop.f32.mrf.mxu0 }
 0x250   :  { %v5723_v1 = vpop.f32.mrf.mxu0 }
 0x252   :  { %v5725_v13 = vpop.f32.mrf.mxu0 }
 0x253   :  { %6159 = vst [vmem:[#allocation20_spill] sm:$0xff] %v5725_v13 }
 0x254   :  { %v5727_v30 = vpop.f32.mrf.mxu0 }
 0x255   :  { %6160 = vst [vmem:[#allocation22_spill] sm:$0xff] %v5727_v30 }
 0x256   :  { %v5733_v31 = vpop.f32.mrf.mxu0 }
 0x257   :  { %6161 = vst [vmem:[#allocation9_spill] sm:$0xff] %v5733_v31 }
 0x258   :  { %v5739_v42 = vpop.f32.mrf.mxu0 }
 0x259   :  { %6162 = vst [vmem:[#allocation10_spill] sm:$0xff] %v5739_v42  ;;  %v2046_v42 = vadd.f32 %v5584_v37, %v5748_v10 }
 0x25b   :  { %v2119_v46 = vadd.f32 %v5612_v22, %v2046_v42 }
 0x25d   :  { %v2192_v26 = vadd.f32 %v2191_v39, %v2119_v46 }
 0x260   :  { %v2270_v29 = vpop.f32.mrf.mxu1 }
 0x261   :  { %v2271_v3 = vadd.f32 %v2270_v29, %v5589_v23  ;;  %v2050_v29 = vadd.f32 %v5599_v43, %v5748_v10  ;;  %v2056_v43 = vadd.f32 %v5615_v58, %v5748_v10 }
 0x262   :  { %v2272_v34 = vpop.f32.mrf.mxu1 }
 0x263   :  { %v2273_v36 = vadd.f32 %v2272_v34, %v5748_v10 }
 0x264   :  { %v2274_v63 = vpop.f32.mrf.mxu1 }
 0x265   :  { %v2275_v25 = vadd.f32 %v2274_v63, %v5589_v23 }
 0x266   :  { %v2276_v0 = vpop.f32.mrf.mxu1 }
 0x267   :  { %v2277_v37 = vadd.f32 %v2276_v0, %v5748_v10 }
 0x268   :  { %v2280_v44 = vpop.f32.mrf.mxu1 }
 0x269   :  { %v2281_v22 = vadd.f32 %v2280_v44, %v5589_v23 }
 0x26a   :  { %v2282_v11 = vpop.f32.mrf.mxu1 }
 0x26c   :  { %v2284_v14 = vpop.f32.mrf.mxu1 }
 0x26e   :  { %v2286_v53 = vpop.f32.mrf.mxu1 }
 0x270   :  { %v5729_v6 = vpop.f32.mrf.mxu1 }
 0x272   :  { %v5731_v19 = vpop.f32.mrf.mxu1 }
 0x274   :  { %v5735_v61 = vpop.f32.mrf.mxu1 }
 0x276   :  { %v5737_v35 = vpop.f32.mrf.mxu1 }
 0x278   :  { %v5741_v16 = vpop.f32.mrf.mxu1 }
 0x27a   :  { %v5743_v55 = vpop.f32.mrf.mxu1  ;;  %v2343_v9 = vpop.f32.mrf.mxu0 }
 0x27b   :  { %v2344_v60 = vadd.f32 %v2343_v9, %v2271_v3  ;;  %v2123_v3 = vadd.f32 %v5627_v62, %v2050_v29 }
 0x27c   :  { %v5750_v4 = vpop.f32.mrf.mxu1  ;;  %v2345_v33 = vpop.f32.mrf.mxu0 }
 0x27d   :  { %6164 = vst [vmem:[#allocation24_spill] sm:$0xff] %v5750_v4  ;;  %v2346_v27 = vadd.f32 %v2345_v33, %v2273_v36 }
 0x27e   :  { %v5753_v5 = vpop.f32.mrf.mxu1  ;;  %v2347_v31 = vpop.f32.mrf.mxu0 }
 0x27f   :  { %6165 = vst [vmem:[#allocation26_spill] sm:$0xff] %v5753_v5  ;;  %v2190_v5 = vadd.f32 %v2189_v18, %v5610_v49  ;;  %v2348_v9 = vadd.f32 %v2347_v31, %v2275_v25  ;;  %v2194_v49 = vadd.f32 %v2193_v17, %v5625_v32  ;;  %v2283_v18 = vadd.f32 %v2282_v11, %v5748_v10 }
 0x280   :  { %v2416_v30 = vpop.f32.mrf.mxu1  ;;  %v2349_v13 = vpop.f32.mrf.mxu0  ;;  %v2129_v31 = vadd.f32 %v5649_v15, %v2056_v43  ;;  %v2060_v17 = vadd.f32 %v5630_v40, %v5748_v10  ;;  %v2287_v11 = vadd.f32 %v2286_v53, %v5748_v10 }
 0x281   :  { %v2417_v21 = vadd.f32 %v2416_v30, %v2344_v60  ;;  %v2350_v33 = vadd.f32 %v2349_v13, %v2277_v37 }
 0x282   :  { %v2418_v47 = vpop.f32.mrf.mxu1  ;;  %v2353_v4 = vpop.f32.mrf.mxu0  ;;  %v2202_v15 = vadd.f32 %v5709_v59, %v2129_v31  ;;  %v2204_v59 = vadd.f32 %v5711_v7, %v5662_v28 }
 0x283   :  { %v2419_v34 = vadd.f32 %v2418_v47, %v2346_v27  ;;  %v2455_v60 = vmax.f32 %v2190_v5, %v2417_v21  ;;  %v2196_v27 = vadd.f32 %v5705_v20, %v2123_v3  ;;  %v2354_v44 = vadd.f32 %v2353_v4, %v2281_v22 }
 0x284   :  { %v2420_v42 = vpop.f32.mrf.mxu1  ;;  %v2355_v63 = vpop.f32.mrf.mxu0  ;;  %v2285_v5 = vadd.f32 %v2284_v14, %v5589_v23  ;;  %v2200_v20 = vadd.f32 %v5707_v45, %v5642_v8  ;;  %v2291_v3 = vadd.f32 %v5729_v6, %v5589_v23 }
 0x285   :  { %v2456_v36 = vmax.f32 %v2192_v26, %v2419_v34  ;;  %v2421_v30 = vadd.f32 %v2420_v42, %v2348_v9  ;;  %v2356_v13 = vadd.f32 %v2355_v63, %v2283_v18  ;;  %v2133_v9 = vadd.f32 %v5664_v52, %v2060_v17 }
 0x286   :  { %v2422_v39 = vpop.f32.mrf.mxu1  ;;  %v2357_v47 = vpop.f32.mrf.mxu0  ;;  %v2076_v17 = vadd.f32 %v5682_v12, %v5748_v10 }
 0x287   :  { %v2471_v62 = vmax.f32 %v2455_v60, %v2456_v36  ;;  %v2423_v0 = vadd.f32 %v2422_v39, %v2350_v33  ;;  %v2457_v58 = vmax.f32 %v2194_v49, %v2421_v30  ;;  %v2358_v34 = vadd.f32 %v2357_v47, %v2285_v5 }
 0x288   :  { %v2426_v26 = vpop.f32.mrf.mxu1  ;;  %v2359_v46 = vpop.f32.mrf.mxu0  ;;  %v2066_v60 = vadd.f32 %v5655_v57, %v5748_v10  ;;  %v2293_v36 = vadd.f32 %v5731_v19, %v5748_v10  ;;  %v2206_v6 = vadd.f32 %v5713_v51, %v2133_v9  ;;  %v2295_v39 = vadd.f32 %v5735_v61, %v5589_v23 }
 0x289   :  { %v2479_v25 = vmax.f32 %v2471_v62, 0.0  ;;  %v2458_v21 = vmax.f32 %v2196_v27, %v2423_v0  ;;  %v2427_v32 = vadd.f32 %v2426_v26, %v2354_v44  ;;  %v2360_v40 = vadd.f32 %v2359_v46, %v2287_v11 }
 0x28a   :  { %v2428_v4 = vpop.f32.mrf.mxu1  ;;  %v2363_v29 = vpop.f32.mrf.mxu0  ;;  %v2139_v18 = vadd.f32 %v5679_v48, %v2066_v60  ;;  %v2070_v0 = vadd.f32 %v5670_v2, %v5748_v10  ;;  %v2210_v51 = vadd.f32 %v5715_v54, %v5674_v41  ;;  %v2297_v44 = vadd.f32 %v5737_v35, %v5748_v10 }
 0x28b   :  { %2487 = vst [vmem:[#allocation4] sm:$0xff] %v2479_v25  ;;  %v2472_v14 = vmax.f32 %v2457_v58, %v2458_v21  ;;  %v2429_v37 = vadd.f32 %v2428_v4, %v2356_v13  ;;  %v2459_v8 = vmax.f32 %v2200_v20, %v2427_v32  ;;  %v2364_v49 = vadd.f32 %v2363_v29, %v2291_v3 }
 0x28c   :  { %v2430_v22 = vpop.f32.mrf.mxu1  ;;  %v2365_v42 = vpop.f32.mrf.mxu0  ;;  %v2212_v61 = vadd.f32 %v5719_v56, %v2139_v18  ;;  %v2143_v46 = vadd.f32 %v5691_v50, %v2070_v0  ;;  %v2301_v25 = vadd.f32 %v5741_v16, %v5589_v23  ;;  %v2214_v56 = vadd.f32 %v5721_v38, %v5689_v24 }
 0x28d   :  { %v2480_v63 = vmax.f32 %v2472_v14, 0.0  ;;  %v2460_v45 = vmax.f32 %v2202_v15, %v2429_v37  ;;  %v2431_v53 = vadd.f32 %v2430_v22, %v2358_v34  ;;  %v2366_v47 = vadd.f32 %v2365_v42, %v2293_v36  ;;  %v6166_v14 = vld [vmem:[#allocation18_spill] sm:$0xff]  ;;  %v6167_v34 = vld [vmem:[#allocation24_spill] sm:$0xff] }
 0x28e   :  { %v2432_v52 = vpop.f32.mrf.mxu1  ;;  %v2367_v30 = vpop.f32.mrf.mxu0  ;;  %v2303_v20 = vadd.f32 %v5743_v55, %v5748_v10  ;;  %v2216_v16 = vadd.f32 %v5723_v1, %v2143_v46  ;;  %v2149_v37 = vadd.f32 %v6166_v14, %v2076_v17  ;;  %v2305_v9 = vadd.f32 %v6167_v34, %v5589_v23  ;;  %v6168_v42 = vld [vmem:[#allocation6_spill] sm:$0xff]  ;;  %v6169_v1 = vld [vmem:[#allocation16_spill] sm:$0xff] }
 0x28f   :  { %2488 = vst [vmem:[#allocation4 + $0x8] sm:$0xff] %v2480_v63  ;;  %v2473_v33 = vmax.f32 %v2459_v8, %v2460_v45  ;;  %v2433_v43 = vadd.f32 %v2432_v52, %v2360_v40  ;;  %v2461_v7 = vmax.f32 %v2204_v59, %v2431_v53  ;;  %v2368_v13 = vadd.f32 %v2367_v30, %v2295_v39  ;;  %v6170_v8 = vld [vmem:[#allocation20_spill] sm:$0xff]  ;;  %v6171_v53 = vld [vmem:[#allocation26_spill] sm:$0xff] }
 0x290   :  { %v2436_v57 = vpop.f32.mrf.mxu1  ;;  %v2369_v27 = vpop.f32.mrf.mxu0  ;;  %v2080_v63 = vadd.f32 %v6168_v42, %v5748_v10  ;;  %v2220_v45 = vadd.f32 %v6170_v8, %v6169_v1  ;;  %v2307_v60 = vadd.f32 %v6171_v53, %v5748_v10  ;;  %v6172_v36 = vld [vmem:[#allocation22_spill] sm:$0xff] }
 0x291   :  { %v2481_v28 = vmax.f32 %v2473_v33, 0.0  ;;  %v2462_v62 = vmax.f32 %v2206_v6, %v2433_v43  ;;  %v2437_v19 = vadd.f32 %v2436_v57, %v2364_v49  ;;  %v2370_v58 = vadd.f32 %v2369_v27, %v2297_v44  ;;  %v6173_v33 = vld [vmem:[#allocation8_spill] sm:$0xff]  ;;  %v6176_v10 = vld [vmem:[#allocation10_spill] sm:$0xff] }
 0x292   :  { %v2438_v48 = vpop.f32.mrf.mxu1  ;;  %v2373_v31 = vpop.f32.mrf.mxu0  ;;  %v2222_v52 = vadd.f32 %v6172_v36, %v2149_v37  ;;  %v2153_v43 = vadd.f32 %v6173_v33, %v2080_v63 }
 0x293   :  { %2489 = vst [vmem:[#allocation4 + $0x10] sm:$0xff] %v2481_v28  ;;  %v2474_v5 = vmax.f32 %v2461_v7, %v2462_v62  ;;  %v2439_v26 = vadd.f32 %v2438_v48, %v2366_v47  ;;  %v2463_v54 = vmax.f32 %v2210_v51, %v2437_v19  ;;  %v2374_v15 = vadd.f32 %v2373_v31, %v2301_v25  ;;  %v6174_v7 = vld [vmem:[#allocation7_spill] sm:$0xff]  ;;  %v6175_v62 = vld [vmem:[#allocation9_spill] sm:$0xff] }
 0x294   :  { %v2440_v2 = vpop.f32.mrf.mxu1  ;;  %v2375_v21 = vpop.f32.mrf.mxu0  ;;  %v2224_v19 = vadd.f32 %v6175_v62, %v6174_v7  ;;  %v2226_v0 = vadd.f32 %v6176_v10, %v2153_v43 }
 0x295   :  { %v2482_v41 = vmax.f32 %v2474_v5, 0.0  ;;  %v2464_v32 = vmax.f32 %v2212_v61, %v2439_v26  ;;  %v2441_v35 = vadd.f32 %v2440_v2, %v2368_v13  ;;  %v2376_v3 = vadd.f32 %v2375_v21, %v2303_v20  ;;  %v2527_v20 = vld [vmem:[#allocation4 + $0x1] sm:$0x1] }
 0x296   :  { %v2442_v50 = vpop.f32.mrf.mxu1  ;;  %v2377_v11 = vpop.f32.mrf.mxu0  ;;  %v2528_v48 = vld [vmem:[#allocation4 + $0x9] sm:$0x1]  ;;  %v2496_v31 = vld [vmem:[#allocation4 + $0x8] sm:$0x1] }
 0x297   :  { %2490 = vst [vmem:[#allocation4 + $0x18] sm:$0xff] %v2482_v41  ;;  %v2475_v4 = vmax.f32 %v2463_v54, %v2464_v32  ;;  %v2443_v29 = vadd.f32 %v2442_v50, %v2370_v58  ;;  %v2465_v24 = vmax.f32 %v2214_v56, %v2441_v35  ;;  %v2378_v6 = vadd.f32 %v2377_v11, %v2305_v9  ;;  %v2495_v11 = vld [vmem:[#allocation4] sm:$0x1] }
 0x298   :  { %v2446_v12 = vpop.f32.mrf.mxu1  ;;  %v2379_v55 = vpop.f32.mrf.mxu0  ;;  %v2536_v2 = vpack.c.bf16 %v2528_v48, %v2528_v48  ;;  %v2504_v21 = vpack.c.bf16 %v2496_v31, %v2496_v31 }
 0x299   :  { %v2483_v22 = vmax.f32 %v2475_v4, 0.0  ;;  %v2466_v38 = vmax.f32 %v2216_v16, %v2443_v29  ;;  %v2447_v40 = vadd.f32 %v2446_v12, %v2374_v15  ;;  %v2380_v18 = vadd.f32 %v2379_v55, %v2307_v60 }
 0x29a   :  { %v2448_v59 = vpop.f32.mrf.mxu1  ;;  %v2529_v13 = vld [vmem:[#allocation4 + $0x11] sm:$0x1]  ;;  %v2497_v46 = vld [vmem:[#allocation4 + $0x10] sm:$0x1]  ;;  %v2569_v15 = vunpack.c.l.b16 %v2536_v2  ;;  %v2696_v34 = vunpack.c.l.b16 %v2504_v21 }
 0x29b   :  { %2491 = vst [vmem:[#allocation4 + $0x20] sm:$0xff] %v2483_v22  ;;  %v2476_v23 = vmax.f32 %v2465_v24, %v2466_v38  ;;  %v2449_v30 = vadd.f32 %v2448_v59, %v2376_v3  ;;  %v2467_v57 = vmax.f32 %v2220_v45, %v2447_v40  ;;  %v2537_v35 = vpack.c.bf16 %v2529_v13, %v2529_v13 }
 0x29c   :  { %v2450_v49 = vpop.f32.mrf.mxu1  ;;  %v2505_v17 = vpack.c.bf16 %v2497_v46, %v2497_v46  ;;  %v2535_v3 = vpack.c.bf16 %v2527_v20, %v2527_v20  ;;  %v2503_v24 = vpack.c.bf16 %v2495_v11, %v2495_v11  ;;  %v2576_v1 = vrot.slane %v2569_v15, 7  ;;  %v3115_v11 = vld [vmem:[#allocation4 + $0x4] sm:$0x1]  ;;  %v3117_v15 = vld [vmem:[#allocation4 + $0x14] sm:$0x1] }
 0x29d   :  { %v2484_v39 = vmax.f32 %v2476_v23, 0.0  ;;  %v2468_v47 = vmax.f32 %v2222_v52, %v2449_v30  ;;  %v2451_v27 = vadd.f32 %v2450_v49, %v2378_v6  ;;  %v2570_v22 = vunpack.c.l.b16 %v2537_v35 }
 0x29e   :  { %v2452_v28 = vpop.f32.mrf.mxu1  ;;  %v2530_v25 = vld [vmem:[#allocation4 + $0x19] sm:$0x1]  ;;  %v2498_v58 = vld [vmem:[#allocation4 + $0x18] sm:$0x1]  ;;  %v2697_v38 = vunpack.c.l.b16 %v2505_v17  ;;  %v2703_v53 = vrot.slane %v2696_v34, 7  ;;  %v2568_v23 = vunpack.c.l.b16 %v2535_v3  ;;  %v2695_v6 = vunpack.c.l.b16 %v2503_v24  ;;  %v4251_v24 = vld [vmem:[%s6055_s5 + $0xb0] sm:$0xff]  }
 0x29f   :  { %2492 = vst [vmem:[#allocation4 + $0x28] sm:$0xff] %v2484_v39  ;;  %v2477_v51 = vmax.f32 %v2467_v57, %v2468_v47  ;;  %v2453_v44 = vadd.f32 %v2452_v28, %v2380_v18  ;;  %v2469_v5 = vmax.f32 %v2224_v19, %v2451_v27  ;;  %v2538_v50 = vpack.c.bf16 %v2530_v25, %v2530_v25  ;;  %v4249_v17 = vld [vmem:[%s6055_s5 + $0xb8] sm:$0xff]  }
 0x2a0   :  { %v2506_v16 = vpack.c.bf16 %v2498_v58, %v2498_v58  ;;  %v2579_v30 = vrot.slane %v2570_v22, 6  ;;  %v2705_v33 = vrot.slane %v2697_v38, 6  ;;  %v2578_v47 = vsel %vm2577_vm1, %v2576_v1, %v2568_v23  ;;  %v4252_v38 = vld [vmem:[%s6055_s5 + $0xf0] sm:$0xff]  }
 0x2a1   :  { %v2485_v61 = vmax.f32 %v2477_v51, 0.0  ;;  %v2470_v26 = vmax.f32 %v2226_v0, %v2453_v44  ;;  %v2571_v40 = vunpack.c.l.b16 %v2538_v50  ;;  %v2704_v7 = vsel %vm2577_vm1, %v2703_v53, %v2695_v6  ;;  %v4250_v50 = vld [vmem:[%s6055_s5 + $0xf8] sm:$0xff]   ;;  %v5861_v6 = vld [vmem:[#allocation4 + $0x2] sm:$0x1] }
 0x2a2   :  { %v2531_v54 = vld [vmem:[#allocation4 + $0x21] sm:$0x1]  ;;  %v2499_v32 = vld [vmem:[#allocation4 + $0x20] sm:$0x1]  ;;  %v2698_v55 = vunpack.c.l.b16 %v2506_v16  ;;  %v2581_v44 = vsel %vm2580_vm2, %v2579_v30, %v2578_v47  ;;  %v2706_v31 = vsel %vm2580_vm2, %v2705_v33, %v2704_v7  ;;  %v3116_v16 = vld [vmem:[#allocation4 + $0xc] sm:$0x1]  ;;  %v3123_v3 = vpack.c.bf16 %v3115_v11, %v3115_v11 }
 0x2a3   :  { %2493 = vst [vmem:[#allocation4 + $0x30] sm:$0xff] %v2485_v61  ;;  %v2478_v41 = vmax.f32 %v2469_v5, %v2470_v26  ;;  %v2539_v29 = vpack.c.bf16 %v2531_v54, %v2531_v54  ;;  %v2507_v37 = vpack.c.bf16 %v2499_v32, %v2499_v32  ;;  %v2582_v49 = vrot.slane %v2571_v40, 5  ;;  %v4254_v30 = vld [vmem:[%s6055_s5 + $0xe8] sm:$0xff]  }
 0x2a4   :  { %v2707_v39 = vrot.slane %v2698_v55, 5  ;;  %v3124_v22 = vpack.c.bf16 %v3116_v16, %v3116_v16  ;;  %v3125_v40 = vpack.c.bf16 %v3117_v15, %v3117_v15  ;;  %v2808_v33 = vld [vmem:[#allocation4 + $0xa] sm:$0x1]  ;;  %v2962_v47 = vld [vmem:[#allocation4 + $0xb] sm:$0x1] }
 0x2a5   :  { %v2486_v56 = vmax.f32 %v2478_v41, 0.0  ;;  %v2572_v63 = vunpack.c.l.b16 %v2539_v29  ;;  %v2699_v45 = vunpack.c.l.b16 %v2507_v37  ;;  %v2584_v26 = vsel %vm2583_vm3, %v2582_v49, %v2581_v44  ;;  %v3119_v37 = vld [vmem:[#allocation4 + $0x24] sm:$0x1]  ;;  %v2810_v44 = vld [vmem:[#allocation4 + $0x1a] sm:$0x1] }
 0x2a6   :  { %v2532_v4 = vld [vmem:[#allocation4 + $0x29] sm:$0x1]  ;;  %v2500_v14 = vld [vmem:[#allocation4 + $0x28] sm:$0x1]  ;;  %v2708_v46 = vsel %vm2583_vm3, %v2707_v39, %v2706_v31  ;;  %v3120_v34 = vld [vmem:[#allocation4 + $0x2c] sm:$0x1]  ;;  %v3157_v53 = vunpack.c.l.b16 %v3124_v22 }
 0x2a7   :  { %2494 = vst [vmem:[#allocation4 + $0x38] sm:$0xff] %v2486_v56  ;;  %v2540_v9 = vpack.c.bf16 %v2532_v4, %v2532_v4  ;;  %v2508_v12 = vpack.c.bf16 %v2500_v14, %v2500_v14  ;;  %v2585_v27 = vrot.slane %v2572_v63, 4  ;;  %v2709_v62 = vrot.slane %v2699_v45, 4  ;;  %v3118_v14 = vld [vmem:[#allocation4 + $0x1c] sm:$0x1] }
 0x2a8   :  { %v3126_v55 = vpack.c.bf16 %v3118_v14, %v3118_v14  ;;  %v3127_v63 = vpack.c.bf16 %v3119_v37, %v3119_v37  ;;  %v3128_v1 = vpack.c.bf16 %v3120_v34, %v3120_v34  ;;  %v3164_v39 = vrot.slane %v3157_v53, 7  ;;  %v2964_v31 = vld [vmem:[#allocation4 + $0x1b] sm:$0x1] }
 0x2a9   :  { %v2573_v59 = vunpack.c.l.b16 %v2540_v9  ;;  %v2700_v52 = vunpack.c.l.b16 %v2508_v12  ;;  %v2587_v25 = vsel %vm2586_vm4, %v2585_v27, %v2584_v26  ;;  %v2710_v2 = vsel %vm2586_vm4, %v2709_v62, %v2708_v46  ;;  %v2809_v62 = vld [vmem:[#allocation4 + $0x12] sm:$0x1]  ;;  %v4256_v26 = vld [vmem:[%s6055_s5 + $0xe0] sm:$0xff]  }
 0x2aa   :  { %v2533_v42 = vld [vmem:[#allocation4 + $0x31] sm:$0x1]  ;;  %v2501_v8 = vld [vmem:[#allocation4 + $0x30] sm:$0x1]  ;;  %v3121_v9 = vld [vmem:[#allocation4 + $0x34] sm:$0x1]  ;;  %v3160_v23 = vunpack.c.l.b16 %v3127_v63  ;;  %v2815_v46 = vpack.c.bf16 %v5861_v6, %v5861_v6  ;;  %v2972_v16 = vpack.c.bf16 %v2964_v31, %v2964_v31 }
 0x2ab   :  { %v2541_v60 = vpack.c.bf16 %v2533_v42, %v2533_v42  ;;  %v2509_v36 = vpack.c.bf16 %v2501_v8, %v2501_v8  ;;  %v2588_v10 = vrot.slane %v2573_v59, 3  ;;  %v2711_v51 = vrot.slane %v2700_v52, 3  ;;  %v4259_v6 = vld [vmem:[%s6055_s5 + $0x90] sm:$0xff]  }
 0x2ac   :  { %v6177_v42 = vmov 0.0   ;;  %v3129_v8 = vpack.c.bf16 %v3121_v9, %v3121_v9  ;;  %v3156_v59 = vunpack.c.l.b16 %v3123_v3  ;;  %v3159_v52 = vunpack.c.l.b16 %v3126_v55  ;;  %v4258_v3 = vld [vmem:[%s6055_s5 + $0xd8] sm:$0xff]  }
 0x2ad   :  { %v2574_v43 = vunpack.c.l.b16 %v2541_v60  ;;  %v2701_v18 = vunpack.c.l.b16 %v2509_v36  ;;  %v2590_v58 = vsel %vm2589_vm5, %v2588_v10, %v2587_v25  ;;  %v2712_v41 = vsel %vm2589_vm5, %v2711_v51, %v2710_v2  ;;  %v4253_v60 = vld [vmem:[%s6055_s5 + $0xa8] sm:$0xff]   ;;  %v4255_v51 = vld [vmem:[%s6055_s5 + $0xa0] sm:$0xff]  }
 0x2ae   :  { %v2534_v57 = vld [vmem:[#allocation4 + $0x39] sm:$0x1]  ;;  %v2502_v28 = vld [vmem:[#allocation4 + $0x38] sm:$0x1]  ;;  %v3122_v12 = vld [vmem:[#allocation4 + $0x3c] sm:$0x1]  ;;  %v3158_v36 = vunpack.c.l.b16 %v3125_v40  ;;  %v3162_v49 = vunpack.c.l.b16 %v3129_v8  ;;  %v3165_v10 = vsel %vm2577_vm1, %v3164_v39, %v3156_v59  ;;  %v2970_v2 = vpack.c.bf16 %v2962_v47, %v2962_v47 }
 0x2af   :  { %v2542_v19 = vpack.c.bf16 %v2534_v57, %v2534_v57  ;;  %v2510_v0 = vpack.c.bf16 %v2502_v28, %v2502_v28  ;;  %v2591_v48 = vrot.slane %v2574_v43, 2  ;;  %v2713_v61 = vrot.slane %v2701_v18, 2  ;;  %v5865_v57 = vld [vmem:[#allocation4 + $0x3] sm:$0x1]  ;;  %v2968_v37 = vld [vmem:[#allocation4 + $0x3b] sm:$0x1] }
 0x2b0   :  { %v3130_v45 = vpack.c.bf16 %v3122_v12, %v3122_v12  ;;  %v3161_v43 = vunpack.c.l.b16 %v3128_v1  ;;  %v3166_v27 = vrot.slane %v3158_v36, 6  ;;  %v3168_v28 = vrot.slane %v3159_v52, 5  ;;  %v2965_v25 = vld [vmem:[#allocation4 + $0x23] sm:$0x1]  ;;  %v4257_v12 = vld [vmem:[%s6055_s5 + $0x98] sm:$0xff]  }
 0x2b1   :  { %v2575_v5 = vunpack.c.l.b16 %v2542_v19  ;;  %v2702_v13 = vunpack.c.l.b16 %v2510_v0  ;;  %v2593_v32 = vsel %vm2592_vm6, %v2591_v48, %v2590_v58  ;;  %v2714_v35 = vsel %vm2592_vm6, %v2713_v61, %v2712_v41  ;;  %v2963_v19 = vld [vmem:[#allocation4 + $0x13] sm:$0x1]  ;;  %v2812_v41 = vld [vmem:[#allocation4 + $0x2a] sm:$0x1] }
 0x2b2   :  { %v3163_v18 = vunpack.c.l.b16 %v3130_v45  ;;  %v3170_v7 = vrot.slane %v3160_v23, 4  ;;  %v3172_v0 = vrot.slane %v3161_v43, 3  ;;  %v2816_v48 = vpack.c.bf16 %v2808_v33, %v2808_v33  ;;  %v4260_v33 = vld [vmem:[%s6055_s5 + $0xd0] sm:$0xff]  }
 0x2b3   :  { %v2594_v21 = vrot.slane %v2575_v5, 1  ;;  %v2715_v54 = vrot.slane %v2702_v13, 1  ;;  %v3167_v61 = vsel %vm2580_vm2, %v3166_v27, %v3165_v10  ;;  %v3174_v5 = vrot.slane %v3162_v49, 2  ;;  %v2811_v13 = vld [vmem:[#allocation4 + $0x22] sm:$0x1] }
 0x2b4   :  { %v3169_v58 = vsel %vm2583_vm3, %v3168_v28, %v3167_v61  ;;  %v2969_v11 = vpack.c.bf16 %v5865_v57, %v5865_v57  ;;  %v2819_v15 = vpack.c.bf16 %v2811_v13, %v2811_v13  ;;  %v2849_v14 = vunpack.c.l.b16 %v2816_v48  ;;  %v4262_v48 = vld [vmem:[%s6055_s5 + $0xc8] sm:$0xff]  }
 0x2b5   :  { %v2596_v56 = vsel %vm2595_vm7, %v2594_v21, %v2593_v32  ;;  %v2716_v20 = vsel %vm2595_vm7, %v2715_v54, %v2714_v35  ;;  %v3176_v21 = vrot.slane %v3163_v18, 1  ;;  %v2817_v54 = vpack.c.bf16 %v2809_v62, %v2809_v62  ;;  %v2966_v32 = vld [vmem:[#allocation4 + $0x2b] sm:$0x1] }
 0x2b6   :  { %v2597_v4 = vpack.c.b16 %v2596_v56, %v2596_v56  ;;  %v2717_v29 = vpack.c.b16 %v2716_v20, %v2716_v20  ;;  %v2971_v35 = vpack.c.bf16 %v2963_v19, %v2963_v19  ;;  %v2813_v56 = vld [vmem:[#allocation4 + $0x32] sm:$0x1]  ;;  %v2818_v20 = vpack.c.bf16 %v2810_v44, %v2810_v44  ;;  %v4261_v44 = vld [vmem:[%s6055_s5 + $0x88] sm:$0xff]  }
 0x2b7   :  { %v2973_v34 = vpack.c.bf16 %v2965_v25, %v2965_v25  ;;  %v2820_v22 = vpack.c.bf16 %v2812_v41, %v2812_v41  ;;  %v2821_v55 = vpack.c.bf16 %v2813_v56, %v2813_v56  ;;  %v2850_v63 = vunpack.c.l.b16 %v2817_v54  ;;  %v4264_v56 = vld [vmem:[%s6055_s5 + $0xc0] sm:$0xff]  }
 0x2b8   :  { %3975 = vmatmul.mubr.bf16.vlgmr.msra.gmra.mxu0 %v2597_v4  ;;  %3995 = vmatmul.mubr.bf16.vlgmr.msra.gmra.mxu1 %v2717_v29  ;;  %v2814_v29 = vld [vmem:[#allocation4 + $0x3a] sm:$0x1]  ;;  %v3004_v8 = vunpack.c.l.b16 %v2971_v35  ;;  %v2851_v53 = vunpack.c.l.b16 %v2818_v20  ;;  %v3005_v59 = vunpack.c.l.b16 %v2972_v16  ;;  %v2848_v36 = vunpack.c.l.b16 %v2815_v46 }
 0x2b9   :  { %3999 = vmatpush3.bf16.msra.mxu0 %v4249_v17  ;;  %4019 = vmatpush3.bf16.msra.mxu1 %v4250_v50  ;;  %v3171_v17 = vsel %vm2586_vm4, %v3170_v7, %v3169_v58  ;;  %v2967_v50 = vld [vmem:[#allocation4 + $0x33] sm:$0x1]  ;;  %v2822_v45 = vpack.c.bf16 %v2814_v29, %v2814_v29  ;;  %v2852_v52 = vunpack.c.l.b16 %v2819_v15  ;;  %v3002_v23 = vunpack.c.l.b16 %v2969_v11  ;;  %v4265_v15 = vld [vmem:[%s6055_s5 + $0x138] sm:$0xff]  }
 0x2ba   :  { %4000 = vmatprep.subr.bf16.mxu0 %v6177_v42  ;;  %4020 = vmatprep.subr.bf16.mxu1 %v6177_v42  ;;  %v3173_v4 = vsel %vm2589_vm5, %v3172_v0, %v3171_v17  ;;  %v2975_v1 = vpack.c.bf16 %v2967_v50, %v2967_v50  ;;  %v2853_v43 = vunpack.c.l.b16 %v2820_v22  ;;  %v2856_v49 = vrot.slane %v2849_v14, 7  ;;  %v4263_v17 = vld [vmem:[%s6055_s5 + $0x80] sm:$0xff]   ;;  %v4270_v22 = vld [vmem:[%s6055_s5 + $0x110] sm:$0xff]  }
 0x2bb   :  { %4014 = vmatprep.mubr.msk.bf16.mxu0 %vm4298_vm0, %v6177_v42  ;;  %4034 = vmatprep.mubr.msk.bf16.mxu1 %vm4298_vm0, %v6177_v42  ;;  %v3175_v9 = vsel %vm2592_vm6, %v3174_v5, %v3173_v4  ;;  %v2854_v57 = vunpack.c.l.b16 %v2821_v55  ;;  %v2858_v47 = vrot.slane %v2850_v63, 6  ;;  %v3012_v28 = vrot.slane %v3004_v8, 6  ;;  %v4273_v63 = vld [vmem:[%s6056_s7 + $0x38] sm:$0xff]   ;;  %v4276_v8 = vld [vmem:[%s6056_s7 + $0x20] sm:$0xff]  }
 0x2bc   :  { %v5892_v40 = vsel %vm2595_vm7, %v3176_v21, %v3175_v9  ;;  %v3008_v27 = vunpack.c.l.b16 %v2975_v1  ;;  %v2855_v7 = vunpack.c.l.b16 %v2822_v45  ;;  %v2860_v62 = vrot.slane %v2851_v53, 5  ;;  %v4267_v9 = vld [vmem:[%s6055_s5 + $0x128] sm:$0xff]   ;;  %v4274_v1 = vld [vmem:[%s6056_s7 + $0x30] sm:$0xff]   ;;  %v4277_v45 = vld [vmem:[%s6056_s7 + $0x18] sm:$0xff]  }
 0x2bd   :  { %4001 = vmatpush3.bf16.msra.mxu0 %v4251_v24  ;;  %4021 = vmatpush3.bf16.msra.mxu1 %v4252_v38  ;;  %v2974_v24 = vpack.c.bf16 %v2966_v32, %v2966_v32  ;;  %v3003_v38 = vunpack.c.l.b16 %v2970_v2  ;;  %v3014_v10 = vrot.slane %v3005_v59, 5  ;;  %v2862_v0 = vrot.slane %v2852_v52, 4  ;;  %v4278_v53 = vld [vmem:[%s6056_s7 + $0x10] sm:$0xff]   ;;  %v4280_v59 = vld [vmem:[%s6056_s7] sm:$0xff]  }
 0x2be   :  { %4002 = vmatprep.subr.bf16.mxu0 %v6177_v42  ;;  %4022 = vmatprep.subr.bf16.mxu1 %v6177_v42  ;;  %v2857_v31 = vsel %vm2577_vm1, %v2856_v49, %v2848_v36  ;;  %v2864_v61 = vrot.slane %v2853_v43, 3  ;;  %v2866_v46 = vrot.slane %v2854_v57, 2  ;;  %v3020_v2 = vrot.slane %v3008_v27, 2  ;;  %v4281_v36 = vld [vmem:[%s6057_s9 + $0x38] sm:$0xff]   ;;  %v4282_v52 = vld [vmem:[%s6057_s9 + $0x30] sm:$0xff]  }
 0x2bf   :  { %v3007_v18 = vunpack.c.l.b16 %v2974_v24  ;;  %v3010_v39 = vrot.slane %v3003_v38, 7  ;;  %v2859_v13 = vsel %vm2580_vm2, %v2858_v47, %v2857_v31  ;;  %v2868_v21 = vrot.slane %v2855_v7, 1  ;;  %v4271_v24 = vld [vmem:[%s6055_s5 + $0x108] sm:$0xff]   ;;  %v4272_v38 = vld [vmem:[%s6055_s5 + $0x100] sm:$0xff]  }
 0x2c0   :  { %v2861_v58 = vsel %vm2583_vm3, %v2860_v62, %v2859_v13  ;;  %v3178_v55 = vpack.c.b16 %v5892_v40, %v5892_v40  ;;  %v4275_v40 = vld [vmem:[%s6056_s7 + $0x28] sm:$0xff]   ;;  %v3852_v13 = vld [vmem:[%s6058_s6] ss:$0 sm:$0xff] }
 0x2c1   :  { %4003 = vmatpush3.bf16.msra.mxu0 %v4253_v60  ;;  %4023 = vmatpush3.bf16.msra.mxu1 %v4254_v30  ;;  %v2976_v60 = vpack.c.bf16 %v2968_v37, %v2968_v37  ;;  %v3006_v30 = vunpack.c.l.b16 %v2973_v34  ;;  %v3011_v5 = vsel %vm2577_vm1, %v3010_v39, %v3002_v23  ;;  %v2863_v32 = vsel %vm2586_vm4, %v2862_v0, %v2861_v58  ;;  %v4266_v34 = vld [vmem:[%s6055_s5 + $0x130] sm:$0xff]   ;;  %v4283_v23 = vld [vmem:[%s6057_s9 + $0x28] sm:$0xff]  }
 0x2c2   :  { %4004 = vmatprep.subr.bf16.mxu0 %v6177_v42  ;;  %4024 = vmatprep.subr.bf16.mxu1 %v6177_v42  ;;  %v3013_v25 = vsel %vm2580_vm2, %v3012_v28, %v3011_v5  ;;  %v2865_v20 = vsel %vm2589_vm5, %v2864_v61, %v2863_v32  ;;  %v4287_v32 = vld [vmem:[%s6057_s9 + $0x8] sm:$0xff]  }
 0x2c3   :  { %v3009_v19 = vunpack.c.l.b16 %v2976_v60  ;;  %v3015_v41 = vsel %vm2583_vm3, %v3014_v10, %v3013_v25  ;;  %v2867_v11 = vsel %vm2592_vm6, %v2866_v46, %v2865_v20  ;;  %v4279_v60 = vld [vmem:[%s6056_s7 + $0x8] sm:$0xff]  }
 0x2c4   :  { %v2869_v4 = vsel %vm2595_vm7, %v2868_v21, %v2867_v11 }
 0x2c5   :  { %4005 = vmatpush3.bf16.msra.mxu0 %v4255_v51  ;;  %4025 = vmatpush3.bf16.msra.mxu1 %v4256_v26  ;;  %v3016_v51 = vrot.slane %v3006_v30, 4  ;;  %v3018_v26 = vrot.slane %v3007_v18, 3  ;;  %v3022_v54 = vrot.slane %v3009_v19, 1  ;;  %v2870_v14 = vpack.c.b16 %v2869_v4, %v2869_v4  ;;  %v4284_v30 = vld [vmem:[%s6057_s9 + $0x20] sm:$0xff]  }
 0x2c6   :  { %4006 = vmatprep.subr.bf16.mxu0 %v6177_v42  ;;  %4026 = vmatprep.subr.bf16.mxu1 %v6177_v42 }
 0x2c7   :  { %v3017_v35 = vsel %vm2586_vm4, %v3016_v51, %v3015_v41 }
 0x2c8   :  { %v3019_v50 = vsel %vm2589_vm5, %v3018_v26, %v3017_v35  ;;  %v4288_v35 = vld [vmem:[%s6057_s9] sm:$0xff]  }
 0x2c9   :  { %4007 = vmatpush3.bf16.msra.mxu0 %v4257_v12  ;;  %4027 = vmatpush3.bf16.msra.mxu1 %v4258_v3  ;;  %v3021_v16 = vsel %vm2592_vm6, %v3020_v2, %v3019_v50  ;;  %v4268_v12 = vld [vmem:[%s6055_s5 + $0x120] sm:$0xff]   ;;  %v4269_v3 = vld [vmem:[%s6055_s5 + $0x118] sm:$0xff]  }
 0x2ca   :  { %4008 = vmatprep.subr.bf16.mxu0 %v6177_v42  ;;  %4028 = vmatprep.subr.bf16.mxu1 %v6177_v42  ;;  %v3023_v29 = vsel %vm2595_vm7, %v3022_v54, %v3021_v16 }
 0x2cb   :  { %v3024_v37 = vpack.c.b16 %v3023_v29, %v3023_v29 }
 0x2cd   :  { %4009 = vmatpush3.bf16.msra.mxu0 %v4259_v6  ;;  %4029 = vmatpush3.bf16.msra.mxu1 %v4260_v33  ;;  %v4285_v6 = vld [vmem:[%s6057_s9 + $0x18] sm:$0xff]   ;;  %v4286_v33 = vld [vmem:[%s6057_s9 + $0x10] sm:$0xff]  }
 0x2ce   :  { %4010 = vmatprep.subr.bf16.mxu0 %v6177_v42  ;;  %4030 = vmatprep.subr.bf16.mxu1 %v6177_v42 }
 0x2d1   :  { %4011 = vmatpush3.bf16.msra.mxu0 %v4261_v44  ;;  %4031 = vmatpush3.bf16.msra.mxu1 %v4262_v48 }
 0x2d2   :  { %4012 = vmatprep.subr.bf16.mxu0 %v6177_v42  ;;  %4032 = vmatprep.subr.bf16.mxu1 %v6177_v42 }
 0x2d5   :  { %4013 = vmatpush3.bf16.msra.mxu0 %v4263_v17  ;;  %4033 = vmatpush3.bf16.msra.mxu1 %v4264_v56  ;;  %v3853_v17 = vld [vmem:[%s6059_s8] ss:$0 sm:$0xff] }
 0x2d6   :  { %4038 = vmatprep.subr.bf16.mxu0 %v6177_v42  ;;  %4058 = vmatprep.subr.bf16.mxu1 %v6177_v42 }
 0x2d8   :  { %4015 = vmatmul.mubr.bf16.vlgmr.msra.gmra.mxu0 %v2870_v14  ;;  %4035 = vmatmul.mubr.bf16.vlgmr.msra.gmra.mxu1 %v3024_v37 }
 0x2d9   :  { %4039 = vmatpush3.bf16.msra.mxu0 %v4265_v15  ;;  %4054 = vmatprep.mubr.msk.bf16.mxu0 %vm4298_vm0, %v6177_v42  ;;  %v3862_v15 = vld [vmem:[%s6060_s10] ss:$0 sm:$0xff] }
 0x2da   :  { %4040 = vmatprep.subr.bf16.mxu0 %v6177_v42  ;;  %4074 = vmatprep.mubr.msk.bf16.mxu1 %vm4298_vm0, %v6177_v42 }
 0x2db   :  { %4059 = vmatpush3.bf16.msra.mxu1 %v4273_v63 }
 0x2dc   :  { %4060 = vmatprep.subr.bf16.mxu1 %v6177_v42 }
 0x2dd   :  { %4041 = vmatpush3.bf16.msra.mxu0 %v4266_v34 }
 0x2de   :  { %4042 = vmatprep.subr.bf16.mxu0 %v6177_v42 }
 0x2df   :  { %4061 = vmatpush3.bf16.msra.mxu1 %v4274_v1 }
 0x2e0   :  { %4062 = vmatprep.subr.bf16.mxu1 %v6177_v42 }
 0x2e1   :  { %4043 = vmatpush3.bf16.msra.mxu0 %v4267_v9 }
 0x2e2   :  { %4044 = vmatprep.subr.bf16.mxu0 %v6177_v42 }
 0x2e3   :  { %4063 = vmatpush3.bf16.msra.mxu1 %v4275_v40 }
 0x2e4   :  { %4064 = vmatprep.subr.bf16.mxu1 %v6177_v42 }
 0x2e5   :  { %4045 = vmatpush3.bf16.msra.mxu0 %v4268_v12 }
 0x2e6   :  { %4046 = vmatprep.subr.bf16.mxu0 %v6177_v42 }
 0x2e7   :  { %4065 = vmatpush3.bf16.msra.mxu1 %v4276_v8 }
 0x2e8   :  { %4066 = vmatprep.subr.bf16.mxu1 %v6177_v42 }
 0x2e9   :  { %4047 = vmatpush3.bf16.msra.mxu0 %v4269_v3 }
 0x2ea   :  { %4048 = vmatprep.subr.bf16.mxu0 %v6177_v42 }
 0x2eb   :  { %4067 = vmatpush3.bf16.msra.mxu1 %v4277_v45 }
 0x2ec   :  { %4068 = vmatprep.subr.bf16.mxu1 %v6177_v42 }
 0x2ed   :  { %4049 = vmatpush3.bf16.msra.mxu0 %v4270_v22 }
 0x2ee   :  { %4050 = vmatprep.subr.bf16.mxu0 %v6177_v42 }
 0x2ef   :  { %4069 = vmatpush3.bf16.msra.mxu1 %v4278_v53 }
 0x2f0   :  { %4070 = vmatprep.subr.bf16.mxu1 %v6177_v42 }
 0x2f1   :  { %4051 = vmatpush3.bf16.msra.mxu0 %v4271_v24 }
 0x2f2   :  { %4052 = vmatprep.subr.bf16.mxu0 %v6177_v42 }
 0x2f3   :  { %4071 = vmatpush3.bf16.msra.mxu1 %v4279_v60 }
 0x2f4   :  { %4072 = vmatprep.subr.bf16.mxu1 %v6177_v42 }
 0x2f5   :  { %4053 = vmatpush3.bf16.msra.mxu0 %v4272_v38 }
 0x2f6   :  { %4078 = vmatprep.subr.bf16.mxu0 %v6177_v42 }
 0x2f7   :  { %4073 = vmatpush3.bf16.msra.mxu1 %v4280_v59 }
 0x2f8   :  { %4055 = vmatmul.mubr.bf16.vlgmr.msra.gmra.mxu0 %v3178_v55 }
 0x2f9   :  { %4094 = vmatprep.mubr.msk.bf16.mxu0 %vm4298_vm0, %v6177_v42  ;;  %4079 = vmatpush3.bf16.msra.mxu0 %v4281_v36 }
 0x2fa   :  { %4080 = vmatprep.subr.bf16.mxu0 %v6177_v42 }
 0x2fd   :  { %4081 = vmatpush3.bf16.msra.mxu0 %v4282_v52 }
 0x2fe   :  { %4082 = vmatprep.subr.bf16.mxu0 %v6177_v42 }
 0x301   :  { %4083 = vmatpush3.bf16.msra.mxu0 %v4283_v23 }
 0x302   :  { %4084 = vmatprep.subr.bf16.mxu0 %v6177_v42 }
 0x305   :  { %4085 = vmatpush3.bf16.msra.mxu0 %v4284_v30 }
 0x306   :  { %4086 = vmatprep.subr.bf16.mxu0 %v6177_v42 }
 0x309   :  { %4087 = vmatpush3.bf16.msra.mxu0 %v4285_v6 }
 0x30a   :  { %4088 = vmatprep.subr.bf16.mxu0 %v6177_v42 }
 0x30d   :  { %4089 = vmatpush3.bf16.msra.mxu0 %v4286_v33 }
 0x30e   :  { %4090 = vmatprep.subr.bf16.mxu0 %v6177_v42 }
 0x311   :  { %4091 = vmatpush3.bf16.msra.mxu0 %v4287_v32 }
 0x312   :  { %4092 = vmatprep.subr.bf16.mxu0 %v6177_v42 }
 0x315   :  { %4093 = vmatpush3.bf16.msra.mxu0 %v4288_v35 }
 0x378   :  { %v2681_v43 = vpop.f32.mrf.mxu0  ;;  %v2801_v49 = vpop.f32.mrf.mxu1 }
 0x379   :  { %v2802_v31 = vadd.f32 %v2801_v49, %v2681_v43 }
 0x37a   :  { %v3976_v18 = vpop.f32.mrf.mxu0  ;;  %v3996_v39 = vpop.f32.mrf.mxu1 }
 0x37c   :  { %v2684_v57 = vpop.f32.mrf.mxu0  ;;  %v2804_v47 = vpop.f32.mrf.mxu1 }
 0x37e   :  { %v3977_v27 = vpop.f32.mrf.mxu0  ;;  %v3997_v28 = vpop.f32.mrf.mxu1 }
 0x398   :  { %v2954_v7 = vpop.f32.mrf.mxu0  ;;  %v3108_v62 = vpop.f32.mrf.mxu1 }
 0x399   :  { %v2960_v61 = vadd.f32 %v2954_v7, %v2802_v31 }
 0x39a   :  { %v4016_v19 = vpop.f32.mrf.mxu0  ;;  %v4036_v10 = vpop.f32.mrf.mxu1 }
 0x39b   :  { %v3114_v5 = vadd.f32 %v3108_v62, %v2960_v61 }
 0x39c   :  { %v2957_v0 = vpop.f32.mrf.mxu0  ;;  %v3111_v51 = vpop.f32.mrf.mxu1 }
 0x39e   :  { %v4017_v44 = vpop.f32.mrf.mxu0  ;;  %v4037_v48 = vpop.f32.mrf.mxu1 }
 0x3b8   :  { %v3262_v26 = vpop.f32.mrf.mxu0 }
 0x3b9   :  { %v3268_v46 = vadd.f32 %v3262_v26, %v3114_v5 }
 0x3ba   :  { %v4056_v25 = vpop.f32.mrf.mxu0 }
 0x3bb   :  { %v3276_v2 = vadd.f32 %v3852_v13, %v3268_v46 }
 0x3bc   :  { %v3265_v58 = vpop.f32.mrf.mxu0 }
 0x3bd   :  { %v3277_v21 = vmax.f32 %v3276_v2, 0.0 }
 0x3be   :  { %v4057_v41 = vpop.f32.mrf.mxu0 }
 0x3bf   :  { %v3278_v54 = vpack.c.bf16 %v3277_v21, %v3277_v21 }
 0x3c1   :  { %4075 = vmatmul.mubr.bf16.vlgmr.msra.gmra.mxu1 %v3278_v54 }
 0x481   :  { %v3384_v56 = vpop.f32.mrf.mxu1 }
 0x482   :  { %v3385_v20 = vadd.f32 %v3853_v17, %v3384_v56 }
 0x483   :  { %v4076_v50 = vpop.f32.mrf.mxu1 }
 0x484   :  { %v3390_v11 = vmax.f32 %v3385_v20, 0.0 }
 0x485   :  { %v3387_v16 = vpop.f32.mrf.mxu1 }
 0x486   :  { %v3391_v4 = vpack.c.bf16 %v3390_v11, %v3390_v11 }
 0x487   :  { %v4077_v29 = vpop.f32.mrf.mxu1 }
 0x488   :  { %4095 = vmatmul.mubr.bf16.vlgmr.msra.gmra.mxu0 %v3391_v4 }
 0x548   :  { %v3497_v14 = vpop.f32.mrf.mxu0 }
 0x549   :  { %v3498_v37 = vadd.f32 %v3862_v15, %v3497_v14 }
 0x54a   :  { %v4096_v42 = vpop.f32.mrf.mxu0 }
 0x54b   :  { %3503 = vst [vmem:[%s6061_s11] sm:$0xff] %v3498_v37 }
 0x54c   :  { %v3500_v34 = vpop.f32.mrf.mxu0 }
 0x54e   :  { %v4097_v9 = vpop.f32.mrf.mxu0 }

</bundles_post_ra>
